<compile_context>
chip_gen: v7x
topology: tpu7x:2x2x1
jax: 0.10.0
libtpu: 0.0.40
codegen_flags: <defaults>
</compile_context>

<pallas_src>
import jax
import jax.numpy as jnp
import numpy as np
from jax.experimental import pallas as pl
from jax.experimental.pallas import tpu as pltpu

EXPANSION = 4
EPS = 1e-5


def _round_up(v, m):
    return ((v + m - 1) // m) * m


def _pad_to(a, shape):
    pads = [(0, t - s) for s, t in zip(a.shape, shape)]
    return jnp.pad(a, pads)


def _fold_bn(bn_params, cpad):
    """Eval-mode BatchNorm -> per-channel scale/shift, zero-padded to (1, cpad)."""
    gamma, beta, mean, var = bn_params
    scale = gamma / jnp.sqrt(var + EPS)
    shift = beta - mean * scale
    scale = _pad_to(scale.astype(jnp.float32), (cpad,)).reshape(1, cpad)
    shift = _pad_to(shift.astype(jnp.float32), (cpad,)).reshape(1, cpad)
    return scale, shift


# ---------------- Pallas kernels (built per spatial geometry) ----------------

def _make_kernels(Wp, Mv):
    """Wp: padded image width (mult of 8); Mv = H * Wp rows of conv output per image."""

    def _head(xp, mask, w1_ref, s1_ref, b1_ref, hp_ref):
        # h1 = relu(bn1(conv1(x))) over the whole padded slab; mask forces exact zeros
        # at spatial-padding positions so conv2's taps see true zero padding.
        h1 = jnp.dot(xp, w1_ref[...], preferred_element_type=jnp.float32)
        h1 = jnp.maximum(h1 * s1_ref[...] + b1_ref[...], 0.0) * mask
        hp_ref[...] = h1.astype(hp_ref.dtype)

    def _mid(hp_ref, w2_ref, s2_ref, b2_ref, w3_ref, s3_ref, b3_ref):
        # conv2 (3x3, pad=1) as 9 accumulated matmuls over row-shifted halo slices.
        acc = None
        for di in range(3):
            for dj in range(3):
                off = (di + 1) * Wp + (dj - 1)            # static, always in-bounds
                tap = hp_ref[pl.ds(off, Mv), :].astype(jnp.bfloat16)
                part = jnp.dot(tap, w2_ref[3 * di + dj],
                               preferred_element_type=jnp.float32)
                acc = part if acc is None else acc + part
        h2 = jnp.maximum(acc * s2_ref[...] + b2_ref[...], 0.0).astype(jnp.bfloat16)
        # conv3 + bn3 (1x1 conv == matmul)
        h3 = jnp.dot(h2, w3_ref[...], preferred_element_type=jnp.float32)
        return h3 * s3_ref[...] + b3_ref[...]

    def proj_kernel(mask_ref, xp_ref, w1_ref, s1_ref, b1_ref,
                    w2_ref, s2_ref, b2_ref, w3_ref, s3_ref, b3_ref,
                    ws_ref, ss_ref, bs_ref, o_ref, hp_ref):
        xp = xp_ref[0]                                    # (Hp*Wp, Ci) bf16
        _head(xp, mask_ref[...], w1_ref, s1_ref, b1_ref, hp_ref)
        h3 = _mid(hp_ref, w2_ref, s2_ref, b2_ref, w3_ref, s3_ref, b3_ref)
        # projection shortcut = bn_s(conv_s(x)) on the same row window
        xc = xp[2 * Wp:2 * Wp + Mv, :]
        sc = jnp.dot(xc, ws_ref[...], preferred_element_type=jnp.float32)
        sc = sc * ss_ref[...] + bs_ref[...]
        o_ref[0] = jnp.maximum(h3 + sc, 0.0).astype(o_ref.dtype)

    def ident_kernel(mask_ref, xp_ref, w1_ref, s1_ref, b1_ref,
                     w2_ref, s2_ref, b2_ref, w3_ref, s3_ref, b3_ref,
                     o_ref, hp_ref):
        xp = xp_ref[0]
        _head(xp, mask_ref[...], w1_ref, s1_ref, b1_ref, hp_ref)
        h3 = _mid(hp_ref, w2_ref, s2_ref, b2_ref, w3_ref, s3_ref, b3_ref)
        sc = xp[2 * Wp:2 * Wp + Mv, :].astype(jnp.float32)   # identity shortcut
        o_ref[0] = jnp.maximum(h3 + sc, 0.0).astype(o_ref.dtype)

    return proj_kernel, ident_kernel


# ---------------- Wrapper ----------------

@jax.jit
def bottleneck_forward(x_nchw, params):
    # TODO(synk): stride > 1 path (strided 1x1 / 3x3 convs) not implemented; stride=1 assumed.
    # TODO(synk): very large H*W slabs would want an H-tiled grid with explicit halo DMA;
    #             here each grid step processes one full image, which fits VMEM easily.
    N, Cin, H, W = x_nchw.shape
    P = params["w1"].shape[1]
    Cout = EXPANSION * P

    Ci = _round_up(Cin, 128)          # lane-padded channel counts
    Pp = _round_up(P, 128)
    Co = _round_up(Cout, 128)
    Wp = _round_up(W + 2, 8)          # padded width (>= W+2, sublane aligned)
    Hp = H + 4                        # 2 halo rows above/below keep all 9 taps in-bounds
    Mv = H * Wp                       # conv-output rows computed per image (pad cols = garbage)

    # --- plain-JAX glue: NCHW -> zero-padded, channel-padded, pixel-major bf16 slab ---
    x_nhwc = jnp.transpose(x_nchw, (0, 2, 3, 1))
    xp = jnp.pad(x_nhwc, ((0, 0), (2, 2), (1, Wp - W - 1), (0, Ci - Cin)))
    xp_flat = xp.reshape(N, Hp * Wp, Ci).astype(jnp.bfloat16)

    # interior mask: 1 on real pixels, 0 on spatial padding (bn1 shift would otherwise
    # leak nonzero values into the conv2 halo).
    mask = jnp.zeros((Hp, Wp), jnp.float32).at[2:H + 2, 1:W + 1].set(1.0)
    mask = mask.reshape(Hp * Wp, 1)

    w1 = _pad_to(params["w1"].astype(jnp.float32), (Ci, Pp)).astype(jnp.bfloat16)
    w2 = _pad_to(params["w2"].astype(jnp.float32), (3, 3, Pp, Pp))
    w2 = w2.reshape(9, Pp, Pp).astype(jnp.bfloat16)
    w3 = _pad_to(params["w3"].astype(jnp.float32), (Pp, Co)).astype(jnp.bfloat16)
    s1, b1 = _fold_bn(params["bn1"], Pp)
    s2, b2 = _fold_bn(params["bn2"], Pp)
    s3, b3 = _fold_bn(params["bn3"], Co)

    proj_kernel, ident_kernel = _make_kernels(Wp, Mv)

    full2 = lambda s: pl.BlockSpec(s, lambda n: (0, 0))
    full3 = lambda s: pl.BlockSpec(s, lambda n: (0, 0, 0))
    per_img = lambda s: pl.BlockSpec(s, lambda n: (n, 0, 0))

    in_specs = [
        full2((Hp * Wp, 1)),                                   # interior mask
        per_img((1, Hp * Wp, Ci)),                             # x slab (per image)
        full2((Ci, Pp)), full2((1, Pp)), full2((1, Pp)),       # conv1 / bn1
        full3((9, Pp, Pp)), full2((1, Pp)), full2((1, Pp)),    # conv2 / bn2
        full2((Pp, Co)), full2((1, Co)), full2((1, Co)),       # conv3 / bn3
    ]
    args = [mask, xp_flat, w1, s1, b1, w2, s2, b2, w3, s3, b3]

    if params.get("ws") is not None:
        ws = _pad_to(params["ws"].astype(jnp.float32), (Ci, Co)).astype(jnp.bfloat16)
        ss, bs = _fold_bn(params["bns"], Co)
        kernel = proj_kernel
        in_specs = in_specs + [full2((Ci, Co)), full2((1, Co)), full2((1, Co))]
        args = args + [ws, ss, bs]
    else:
        assert Ci == Co, "identity shortcut requires in_planes == expansion*planes"
        kernel = ident_kernel

    out_flat = pl.pallas_call(
        kernel,
        out_shape=jax.ShapeDtypeStruct((N, Mv, Co), jnp.float32),
        grid=(N,),
        in_specs=in_specs,
        out_specs=per_img((1, Mv, Co)),
        scratch_shapes=[pltpu.VMEM((Hp * Wp, Pp), jnp.float32)],   # halo'd h1 (never hits HBM)
        compiler_params=pltpu.CompilerParams(
            dimension_semantics=("parallel",)),
    )(*args)

    # strip padding columns / padded channels, back to NCHW
    out = out_flat.reshape(N, H, Wp, Co)[:, :, 1:W + 1, :Cout]
    return jnp.transpose(out, (0, 3, 1, 2))


# ---------------- Deterministic parameter init ----------------

def init_params(key, in_planes, planes):
    cout = EXPANSION * planes
    ks = jax.random.split(key, 8)

    def bn_params(k, c):
        k1, k2, k3, k4 = jax.random.split(k, 4)
        gamma = jax.random.uniform(k1, (c,), jnp.float32, 0.5, 1.5)
        beta = 0.1 * jax.random.normal(k2, (c,), jnp.float32)
        mean = 0.1 * jax.random.normal(k3, (c,), jnp.float32)
        var = jax.random.uniform(k4, (c,), jnp.float32, 0.5, 1.5)
        return gamma, beta, mean, var

    params = dict(
        w1=0.2 * jax.random.normal(ks[0], (in_planes, planes), jnp.float32),
        w2=0.1 * jax.random.normal(ks[1], (3, 3, planes, planes), jnp.float32),
        w3=0.2 * jax.random.normal(ks[2], (planes, cout), jnp.float32),
        bn1=bn_params(ks[3], planes),
        bn2=bn_params(ks[4], planes),
        bn3=bn_params(ks[5], cout),
    )
    if in_planes != cout:  # stride == 1 case of the PyTorch condition
        params["ws"] = 0.2 * jax.random.normal(ks[6], (in_planes, cout), jnp.float32)
        params["bns"] = bn_params(ks[7], cout)
    else:
        params["ws"] = None
    return params


# ---------------- Pure-JAX reference (mirrors the PyTorch forward, eval-mode BN) ----------------

def ref_forward(x, params):
    def bn(y, bnp):
        g, b, m, v = bnp
        s = g / jnp.sqrt(v + EPS)
        sh = b - m * s
        return y * s[None, :, None, None] + sh[None, :, None, None]

    def conv(y, w_oihw, pad=0):
        return jax.lax.conv_general_dilated(
            y, w_oihw, (1, 1), [(pad, pad), (pad, pad)],
            dimension_numbers=("NCHW", "OIHW", "NCHW"))

    w1 = jnp.transpose(params["w1"])[:, :, None, None]
    w2 = jnp.transpose(params["w2"], (3, 2, 0, 1))
    w3 = jnp.transpose(params["w3"])[:, :, None, None]

    out = jax.nn.relu(bn(conv(x, w1), params["bn1"]))
    out = jax.nn.relu(bn(conv(out, w2, pad=1), params["bn2"]))
    out = bn(conv(out, w3), params["bn3"])
    if params.get("ws") is not None:
        ws = jnp.transpose(params["ws"])[:, :, None, None]
        sc = bn(conv(x, ws), params["bns"])
    else:
        sc = x
    return jax.nn.relu(out + sc)


if __name__ == "__main__":
    key = jax.random.PRNGKey(0)
    k_x, k_p, k_x2, k_p2 = jax.random.split(key, 4)

    # Case 1: projection shortcut (in_planes != expansion * planes)
    N, in_planes, planes, H, W = 2, 4, 4, 16, 16
    x = jax.random.normal(k_x, (N, in_planes, H, W), jnp.float32)
    params = init_params(k_p, in_planes, planes)
    out = jax.block_until_ready(bottleneck_forward(x, params))
    ref = jax.block_until_ready(ref_forward(x, params))
    np.testing.assert_allclose(np.asarray(out), np.asarray(ref), rtol=3e-2, atol=3e-2)

    # Case 2: identity shortcut (in_planes == expansion * planes) -> no-eye kernel variant
    in_planes2, planes2 = 16, 4
    x2 = jax.random.normal(k_x2, (N, in_planes2, H, W), jnp.float32)
    params2 = init_params(k_p2, in_planes2, planes2)
    out2 = jax.block_until_ready(bottleneck_forward(x2, params2))
    ref2 = jax.block_until_ready(ref_forward(x2, params2))
    np.testing.assert_allclose(np.asarray(out2), np.asarray(ref2), rtol=3e-2, atol=3e-2)

    print("KERNEL_OK")
</pallas_src>

<mosaic_0001>
module attributes {stable_mosaic.version = 11 : i64} {
  func.func @proj_kernel(%arg0: i32, %arg1: memref<480x1xf32, #tpu.memory_space<vmem>>, %arg2: memref<1x480x128xbf16, #tpu.memory_space<vmem>>, %arg3: memref<128x128xbf16, #tpu.memory_space<vmem>>, %arg4: memref<1x128xf32, #tpu.memory_space<vmem>>, %arg5: memref<1x128xf32, #tpu.memory_space<vmem>>, %arg6: memref<9x128x128xbf16, #tpu.memory_space<vmem>>, %arg7: memref<1x128xf32, #tpu.memory_space<vmem>>, %arg8: memref<1x128xf32, #tpu.memory_space<vmem>>, %arg9: memref<128x128xbf16, #tpu.memory_space<vmem>>, %arg10: memref<1x128xf32, #tpu.memory_space<vmem>>, %arg11: memref<1x128xf32, #tpu.memory_space<vmem>>, %arg12: memref<128x128xbf16, #tpu.memory_space<vmem>>, %arg13: memref<1x128xf32, #tpu.memory_space<vmem>>, %arg14: memref<1x128xf32, #tpu.memory_space<vmem>>, %arg15: memref<1x384x128xf32, #tpu.memory_space<vmem>>, %arg16: memref<480x128xf32, #tpu.memory_space<vmem>>) attributes {dimension_semantics = [#tpu.dimension_semantics<parallel>], iteration_bounds = array<i64: 2>, scalar_prefetch = 0 : i64, scratch_operands = 1 : i64, tpu.core_type = #tpu.core_type<tc>, window_params = [{pipeline_mode = #tpu.pipeline_mode<synchronous>, transform_indices = @transform_0, window_bounds = array<i64: 480, 1>}, {transform_indices = @transform_1, window_bounds = array<i64: 1, 480, 128>}, {pipeline_mode = #tpu.pipeline_mode<synchronous>, transform_indices = @transform_2, window_bounds = array<i64: 128, 128>}, {pipeline_mode = #tpu.pipeline_mode<synchronous>, transform_indices = @transform_3, window_bounds = array<i64: 1, 128>}, {pipeline_mode = #tpu.pipeline_mode<synchronous>, transform_indices = @transform_4, window_bounds = array<i64: 1, 128>}, {pipeline_mode = #tpu.pipeline_mode<synchronous>, transform_indices = @transform_5, window_bounds = array<i64: 9, 128, 128>}, {pipeline_mode = #tpu.pipeline_mode<synchronous>, transform_indices = @transform_6, window_bounds = array<i64: 1, 128>}, {pipeline_mode = #tpu.pipeline_mode<synchronous>, transform_indices = @transform_7, window_bounds = array<i64: 1, 128>}, {pipeline_mode = #tpu.pipeline_mode<synchronous>, transform_indices = @transform_8, window_bounds = array<i64: 128, 128>}, {pipeline_mode = #tpu.pipeline_mode<synchronous>, transform_indices = @transform_9, window_bounds = array<i64: 1, 128>}, {pipeline_mode = #tpu.pipeline_mode<synchronous>, transform_indices = @transform_10, window_bounds = array<i64: 1, 128>}, {pipeline_mode = #tpu.pipeline_mode<synchronous>, transform_indices = @transform_11, window_bounds = array<i64: 128, 128>}, {pipeline_mode = #tpu.pipeline_mode<synchronous>, transform_indices = @transform_12, window_bounds = array<i64: 1, 128>}, {pipeline_mode = #tpu.pipeline_mode<synchronous>, transform_indices = @transform_13, window_bounds = array<i64: 1, 128>}, {transform_indices = @transform_14, window_bounds = array<i64: 1, 384, 128>}]} {
    %c0 = arith.constant 0 : index
    %c0_0 = arith.constant 0 : index
    %c0_1 = arith.constant 0 : index
    %0 = vector.load %arg2[%c0, %c0_0, %c0_1] : memref<1x480x128xbf16, #tpu.memory_space<vmem>>, vector<1x480x128xbf16>
    %1 = vector.shape_cast %0 : vector<1x480x128xbf16> to vector<480x128xbf16>
    %c0_2 = arith.constant 0 : index
    %c0_3 = arith.constant 0 : index
    %2 = vector.load %arg1[%c0_2, %c0_3] : memref<480x1xf32, #tpu.memory_space<vmem>>, vector<480x1xf32>
    %c0_4 = arith.constant 0 : index
    %c0_5 = arith.constant 0 : index
    %3 = vector.load %arg3[%c0_4, %c0_5] : memref<128x128xbf16, #tpu.memory_space<vmem>>, vector<128x128xbf16>
    %cst = arith.constant dense<0.000000e+00> : vector<480x128xf32>
    %4 = tpu.matmul %1, %3, %cst {dimension_numbers = #tpu.dot_dimension_numbers<[1], [0], [0], [1], [0, 0, 1, 1], [], []>} : vector<480x128xbf16>, vector<128x128xbf16>, vector<480x128xf32> -> vector<480x128xf32>
    %c0_6 = arith.constant 0 : index
    %c0_7 = arith.constant 0 : index
    %5 = vector.load %arg4[%c0_6, %c0_7] : memref<1x128xf32, #tpu.memory_space<vmem>>, vector<1x128xf32>
    %6 = vector.broadcast %5 : vector<1x128xf32> to vector<480x128xf32>
    %7 = arith.mulf %4, %6 : vector<480x128xf32>
    %c0_8 = arith.constant 0 : index
    %c0_9 = arith.constant 0 : index
    %8 = vector.load %arg5[%c0_8, %c0_9] : memref<1x128xf32, #tpu.memory_space<vmem>>, vector<1x128xf32>
    %9 = vector.broadcast %8 : vector<1x128xf32> to vector<480x128xf32>
    %10 = arith.addf %7, %9 : vector<480x128xf32>
    %cst_10 = arith.constant 0.000000e+00 : f32
    %11 = vector.broadcast %cst_10 : f32 to vector<480x128xf32>
    %12 = arith.maximumf %10, %11 : vector<480x128xf32>
    %13 = vector.broadcast %2 : vector<480x1xf32> to vector<480x128xf32>
    %14 = arith.mulf %12, %13 : vector<480x128xf32>
    %c0_11 = arith.constant 0 : index
    %c0_12 = arith.constant 0 : index
    %15 = vector.load %arg16[%c0_11, %c0_12] : memref<480x128xf32, #tpu.memory_space<vmem>>, vector<480x128xf32>
    tpu.vector_store %arg16[%c0_11, %c0_12], %14 {strides = array<i32>} : memref<480x128xf32, #tpu.memory_space<vmem>>, vector<480x128xf32>,
    %c23 = arith.constant 23 : index
    %c0_13 = arith.constant 0 : index
    %16 = vector.load %arg16[%c23, %c0_13] : memref<480x128xf32, #tpu.memory_space<vmem>>, vector<384x128xf32>
    %17 = arith.truncf %16 : vector<384x128xf32> to vector<384x128xbf16>
    %c0_14 = arith.constant 0 : index
    %c0_15 = arith.constant 0 : index
    %c0_16 = arith.constant 0 : index
    %18 = vector.load %arg6[%c0_14, %c0_15, %c0_16] : memref<9x128x128xbf16, #tpu.memory_space<vmem>>, vector<1x128x128xbf16>
    %19 = vector.shape_cast %18 : vector<1x128x128xbf16> to vector<128x128xbf16>
    %cst_17 = arith.constant dense<0.000000e+00> : vector<384x128xf32>
    %20 = tpu.matmul %17, %19, %cst_17 {dimension_numbers = #tpu.dot_dimension_numbers<[1], [0], [0], [1], [0, 0, 1, 1], [], []>} : vector<384x128xbf16>, vector<128x128xbf16>, vector<384x128xf32> -> vector<384x128xf32>
    %c24 = arith.constant 24 : index
    %c0_18 = arith.constant 0 : index
    %21 = vector.load %arg16[%c24, %c0_18] : memref<480x128xf32, #tpu.memory_space<vmem>>, vector<384x128xf32>
    %22 = arith.truncf %21 : vector<384x128xf32> to vector<384x128xbf16>
    %c1 = arith.constant 1 : index
    %c0_19 = arith.constant 0 : index
    %c0_20 = arith.constant 0 : index
    %23 = vector.load %arg6[%c1, %c0_19, %c0_20] : memref<9x128x128xbf16, #tpu.memory_space<vmem>>, vector<1x128x128xbf16>
    %24 = vector.shape_cast %23 : vector<1x128x128xbf16> to vector<128x128xbf16>
    %cst_21 = arith.constant dense<0.000000e+00> : vector<384x128xf32>
    %25 = tpu.matmul %22, %24, %cst_21 {dimension_numbers = #tpu.dot_dimension_numbers<[1], [0], [0], [1], [0, 0, 1, 1], [], []>} : vector<384x128xbf16>, vector<128x128xbf16>, vector<384x128xf32> -> vector<384x128xf32>
    %26 = arith.addf %20, %25 : vector<384x128xf32>
    %c25 = arith.constant 25 : index
    %c0_22 = arith.constant 0 : index
    %27 = vector.load %arg16[%c25, %c0_22] : memref<480x128xf32, #tpu.memory_space<vmem>>, vector<384x128xf32>
    %28 = arith.truncf %27 : vector<384x128xf32> to vector<384x128xbf16>
    %c2 = arith.constant 2 : index
    %c0_23 = arith.constant 0 : index
    %c0_24 = arith.constant 0 : index
    %29 = vector.load %arg6[%c2, %c0_23, %c0_24] : memref<9x128x128xbf16, #tpu.memory_space<vmem>>, vector<1x128x128xbf16>
    %30 = vector.shape_cast %29 : vector<1x128x128xbf16> to vector<128x128xbf16>
    %cst_25 = arith.constant dense<0.000000e+00> : vector<384x128xf32>
    %31 = tpu.matmul %28, %30, %cst_25 {dimension_numbers = #tpu.dot_dimension_numbers<[1], [0], [0], [1], [0, 0, 1, 1], [], []>} : vector<384x128xbf16>, vector<128x128xbf16>, vector<384x128xf32> -> vector<384x128xf32>
    %32 = arith.addf %26, %31 : vector<384x128xf32>
    %c47 = arith.constant 47 : index
    %c0_26 = arith.constant 0 : index
    %33 = vector.load %arg16[%c47, %c0_26] : memref<480x128xf32, #tpu.memory_space<vmem>>, vector<384x128xf32>
    %34 = arith.truncf %33 : vector<384x128xf32> to vector<384x128xbf16>
    %c3 = arith.constant 3 : index
    %c0_27 = arith.constant 0 : index
    %c0_28 = arith.constant 0 : index
    %35 = vector.load %arg6[%c3, %c0_27, %c0_28] : memref<9x128x128xbf16, #tpu.memory_space<vmem>>, vector<1x128x128xbf16>
    %36 = vector.shape_cast %35 : vector<1x128x128xbf16> to vector<128x128xbf16>
    %cst_29 = arith.constant dense<0.000000e+00> : vector<384x128xf32>
    %37 = tpu.matmul %34, %36, %cst_29 {dimension_numbers = #tpu.dot_dimension_numbers<[1], [0], [0], [1], [0, 0, 1, 1], [], []>} : vector<384x128xbf16>, vector<128x128xbf16>, vector<384x128xf32> -> vector<384x128xf32>
    %38 = arith.addf %32, %37 : vector<384x128xf32>
    %c48 = arith.constant 48 : index
    %c0_30 = arith.constant 0 : index
    %39 = vector.load %arg16[%c48, %c0_30] : memref<480x128xf32, #tpu.memory_space<vmem>>, vector<384x128xf32>
    %40 = arith.truncf %39 : vector<384x128xf32> to vector<384x128xbf16>
    %c4 = arith.constant 4 : index
    %c0_31 = arith.constant 0 : index
    %c0_32 = arith.constant 0 : index
    %41 = vector.load %arg6[%c4, %c0_31, %c0_32] : memref<9x128x128xbf16, #tpu.memory_space<vmem>>, vector<1x128x128xbf16>
    %42 = vector.shape_cast %41 : vector<1x128x128xbf16> to vector<128x128xbf16>
    %cst_33 = arith.constant dense<0.000000e+00> : vector<384x128xf32>
    %43 = tpu.matmul %40, %42, %cst_33 {dimension_numbers = #tpu.dot_dimension_numbers<[1], [0], [0], [1], [0, 0, 1, 1], [], []>} : vector<384x128xbf16>, vector<128x128xbf16>, vector<384x128xf32> -> vector<384x128xf32>
    %44 = arith.addf %38, %43 : vector<384x128xf32>
    %c49 = arith.constant 49 : index
    %c0_34 = arith.constant 0 : index
    %45 = vector.load %arg16[%c49, %c0_34] : memref<480x128xf32, #tpu.memory_space<vmem>>, vector<384x128xf32>
    %46 = arith.truncf %45 : vector<384x128xf32> to vector<384x128xbf16>
    %c5 = arith.constant 5 : index
    %c0_35 = arith.constant 0 : index
    %c0_36 = arith.constant 0 : index
    %47 = vector.load %arg6[%c5, %c0_35, %c0_36] : memref<9x128x128xbf16, #tpu.memory_space<vmem>>, vector<1x128x128xbf16>
    %48 = vector.shape_cast %47 : vector<1x128x128xbf16> to vector<128x128xbf16>
    %cst_37 = arith.constant dense<0.000000e+00> : vector<384x128xf32>
    %49 = tpu.matmul %46, %48, %cst_37 {dimension_numbers = #tpu.dot_dimension_numbers<[1], [0], [0], [1], [0, 0, 1, 1], [], []>} : vector<384x128xbf16>, vector<128x128xbf16>, vector<384x128xf32> -> vector<384x128xf32>
    %50 = arith.addf %44, %49 : vector<384x128xf32>
    %c71 = arith.constant 71 : index
    %c0_38 = arith.constant 0 : index
    %51 = vector.load %arg16[%c71, %c0_38] : memref<480x128xf32, #tpu.memory_space<vmem>>, vector<384x128xf32>
    %52 = arith.truncf %51 : vector<384x128xf32> to vector<384x128xbf16>
    %c6 = arith.constant 6 : index
    %c0_39 = arith.constant 0 : index
    %c0_40 = arith.constant 0 : index
    %53 = vector.load %arg6[%c6, %c0_39, %c0_40] : memref<9x128x128xbf16, #tpu.memory_space<vmem>>, vector<1x128x128xbf16>
    %54 = vector.shape_cast %53 : vector<1x128x128xbf16> to vector<128x128xbf16>
    %cst_41 = arith.constant dense<0.000000e+00> : vector<384x128xf32>
    %55 = tpu.matmul %52, %54, %cst_41 {dimension_numbers = #tpu.dot_dimension_numbers<[1], [0], [0], [1], [0, 0, 1, 1], [], []>} : vector<384x128xbf16>, vector<128x128xbf16>, vector<384x128xf32> -> vector<384x128xf32>
    %56 = arith.addf %50, %55 : vector<384x128xf32>
    %c72 = arith.constant 72 : index
    %c0_42 = arith.constant 0 : index
    %57 = vector.load %arg16[%c72, %c0_42] : memref<480x128xf32, #tpu.memory_space<vmem>>, vector<384x128xf32>
    %58 = arith.truncf %57 : vector<384x128xf32> to vector<384x128xbf16>
    %c7 = arith.constant 7 : index
    %c0_43 = arith.constant 0 : index
    %c0_44 = arith.constant 0 : index
    %59 = vector.load %arg6[%c7, %c0_43, %c0_44] : memref<9x128x128xbf16, #tpu.memory_space<vmem>>, vector<1x128x128xbf16>
    %60 = vector.shape_cast %59 : vector<1x128x128xbf16> to vector<128x128xbf16>
    %cst_45 = arith.constant dense<0.000000e+00> : vector<384x128xf32>
    %61 = tpu.matmul %58, %60, %cst_45 {dimension_numbers = #tpu.dot_dimension_numbers<[1], [0], [0], [1], [0, 0, 1, 1], [], []>} : vector<384x128xbf16>, vector<128x128xbf16>, vector<384x128xf32> -> vector<384x128xf32>
    %62 = arith.addf %56, %61 : vector<384x128xf32>
    %c73 = arith.constant 73 : index
    %c0_46 = arith.constant 0 : index
    %63 = vector.load %arg16[%c73, %c0_46] : memref<480x128xf32, #tpu.memory_space<vmem>>, vector<384x128xf32>
    %64 = arith.truncf %63 : vector<384x128xf32> to vector<384x128xbf16>
    %c8 = arith.constant 8 : index
    %c0_47 = arith.constant 0 : index
    %c0_48 = arith.constant 0 : index
    %65 = vector.load %arg6[%c8, %c0_47, %c0_48] : memref<9x128x128xbf16, #tpu.memory_space<vmem>>, vector<1x128x128xbf16>
    %66 = vector.shape_cast %65 : vector<1x128x128xbf16> to vector<128x128xbf16>
    %cst_49 = arith.constant dense<0.000000e+00> : vector<384x128xf32>
    %67 = tpu.matmul %64, %66, %cst_49 {dimension_numbers = #tpu.dot_dimension_numbers<[1], [0], [0], [1], [0, 0, 1, 1], [], []>} : vector<384x128xbf16>, vector<128x128xbf16>, vector<384x128xf32> -> vector<384x128xf32>
    %68 = arith.addf %62, %67 : vector<384x128xf32>
    %c0_50 = arith.constant 0 : index
    %c0_51 = arith.constant 0 : index
    %69 = vector.load %arg7[%c0_50, %c0_51] : memref<1x128xf32, #tpu.memory_space<vmem>>, vector<1x128xf32>
    %70 = vector.broadcast %69 : vector<1x128xf32> to vector<384x128xf32>
    %71 = arith.mulf %68, %70 : vector<384x128xf32>
    %c0_52 = arith.constant 0 : index
    %c0_53 = arith.constant 0 : index
    %72 = vector.load %arg8[%c0_52, %c0_53] : memref<1x128xf32, #tpu.memory_space<vmem>>, vector<1x128xf32>
    %73 = vector.broadcast %72 : vector<1x128xf32> to vector<384x128xf32>
    %74 = arith.addf %71, %73 : vector<384x128xf32>
    %cst_54 = arith.constant 0.000000e+00 : f32
    %75 = vector.broadcast %cst_54 : f32 to vector<384x128xf32>
    %76 = arith.maximumf %74, %75 : vector<384x128xf32>
    %77 = arith.truncf %76 : vector<384x128xf32> to vector<384x128xbf16>
    %c0_55 = arith.constant 0 : index
    %c0_56 = arith.constant 0 : index
    %78 = vector.load %arg9[%c0_55, %c0_56] : memref<128x128xbf16, #tpu.memory_space<vmem>>, vector<128x128xbf16>
    %cst_57 = arith.constant dense<0.000000e+00> : vector<384x128xf32>
    %79 = tpu.matmul %77, %78, %cst_57 {dimension_numbers = #tpu.dot_dimension_numbers<[1], [0], [0], [1], [0, 0, 1, 1], [], []>} : vector<384x128xbf16>, vector<128x128xbf16>, vector<384x128xf32> -> vector<384x128xf32>
    %c0_58 = arith.constant 0 : index
    %c0_59 = arith.constant 0 : index
    %80 = vector.load %arg10[%c0_58, %c0_59] : memref<1x128xf32, #tpu.memory_space<vmem>>, vector<1x128xf32>
    %81 = vector.broadcast %80 : vector<1x128xf32> to vector<384x128xf32>
    %82 = arith.mulf %79, %81 : vector<384x128xf32>
    %c0_60 = arith.constant 0 : index
    %c0_61 = arith.constant 0 : index
    %83 = vector.load %arg11[%c0_60, %c0_61] : memref<1x128xf32, #tpu.memory_space<vmem>>, vector<1x128xf32>
    %84 = vector.broadcast %83 : vector<1x128xf32> to vector<384x128xf32>
    %85 = arith.addf %82, %84 : vector<384x128xf32>
    %86 = vector.extract_strided_slice %1 {offsets = [48, 0], sizes = [384, 128], strides = [1, 1]} : vector<480x128xbf16> to vector<384x128xbf16>
    %c0_62 = arith.constant 0 : index
    %c0_63 = arith.constant 0 : index
    %87 = vector.load %arg12[%c0_62, %c0_63] : memref<128x128xbf16, #tpu.memory_space<vmem>>, vector<128x128xbf16>
    %cst_64 = arith.constant dense<0.000000e+00> : vector<384x128xf32>
    %88 = tpu.matmul %86, %87, %cst_64 {dimension_numbers = #tpu.dot_dimension_numbers<[1], [0], [0], [1], [0, 0, 1, 1], [], []>} : vector<384x128xbf16>, vector<128x128xbf16>, vector<384x128xf32> -> vector<384x128xf32>
    %c0_65 = arith.constant 0 : index
    %c0_66 = arith.constant 0 : index
    %89 = vector.load %arg13[%c0_65, %c0_66] : memref<1x128xf32, #tpu.memory_space<vmem>>, vector<1x128xf32>
    %90 = vector.broadcast %89 : vector<1x128xf32> to vector<384x128xf32>
    %91 = arith.mulf %88, %90 : vector<384x128xf32>
    %c0_67 = arith.constant 0 : index
    %c0_68 = arith.constant 0 : index
    %92 = vector.load %arg14[%c0_67, %c0_68] : memref<1x128xf32, #tpu.memory_space<vmem>>, vector<1x128xf32>
    %93 = vector.broadcast %92 : vector<1x128xf32> to vector<384x128xf32>
    %94 = arith.addf %91, %93 : vector<384x128xf32>
    %95 = arith.addf %85, %94 : vector<384x128xf32>
    %cst_69 = arith.constant 0.000000e+00 : f32
    %96 = vector.broadcast %cst_69 : f32 to vector<384x128xf32>
    %97 = arith.maximumf %95, %96 : vector<384x128xf32>
    %c0_70 = arith.constant 0 : index
    %c0_71 = arith.constant 0 : index
    %c0_72 = arith.constant 0 : index
    %98 = vector.load %arg15[%c0_70, %c0_71, %c0_72] : memref<1x384x128xf32, #tpu.memory_space<vmem>>, vector<1x384x128xf32>
    %99 = vector.shape_cast %98 : vector<1x384x128xf32> to vector<384x128xf32>
    %100 = vector.shape_cast %97 : vector<384x128xf32> to vector<1x384x128xf32>
    tpu.vector_store %arg15[%c0_70, %c0_71, %c0_72], %100 {strides = array<i32>} : memref<1x384x128xf32, #tpu.memory_space<vmem>>, vector<1x384x128xf32>,
    return
  }
  func.func @transform_0(%arg0: i32) -> (i32, i32) {
    %c0_i32 = arith.constant 0 : i32
    %c0_i32_0 = arith.constant 0 : i32
    %c0_i32_1 = arith.constant 0 : i32
    return %c0_i32, %c0_i32_0 : i32, i32
  }
  func.func @transform_1(%arg0: i32) -> (i32, i32, i32) {
    %c0_i32 = arith.constant 0 : i32
    %c0_i32_0 = arith.constant 0 : i32
    %c0_i32_1 = arith.constant 0 : i32
    return %arg0, %c0_i32, %c0_i32_0 : i32, i32, i32
  }
  func.func @transform_2(%arg0: i32) -> (i32, i32) {
    %c0_i32 = arith.constant 0 : i32
    %c0_i32_0 = arith.constant 0 : i32
    %c0_i32_1 = arith.constant 0 : i32
    return %c0_i32, %c0_i32_0 : i32, i32
  }
  func.func @transform_3(%arg0: i32) -> (i32, i32) {
    %c0_i32 = arith.constant 0 : i32
    %c0_i32_0 = arith.constant 0 : i32
    %c0_i32_1 = arith.constant 0 : i32
    return %c0_i32, %c0_i32_0 : i32, i32
  }
  func.func @transform_4(%arg0: i32) -> (i32, i32) {
    %c0_i32 = arith.constant 0 : i32
    %c0_i32_0 = arith.constant 0 : i32
    %c0_i32_1 = arith.constant 0 : i32
    return %c0_i32, %c0_i32_0 : i32, i32
  }
  func.func @transform_5(%arg0: i32) -> (i32, i32, i32) {
    %c0_i32 = arith.constant 0 : i32
    %c0_i32_0 = arith.constant 0 : i32
    %c0_i32_1 = arith.constant 0 : i32
    %c0_i32_2 = arith.constant 0 : i32
    return %c0_i32, %c0_i32_0, %c0_i32_1 : i32, i32, i32
  }
  func.func @transform_6(%arg0: i32) -> (i32, i32) {
    %c0_i32 = arith.constant 0 : i32
    %c0_i32_0 = arith.constant 0 : i32
    %c0_i32_1 = arith.constant 0 : i32
    return %c0_i32, %c0_i32_0 : i32, i32
  }
  func.func @transform_7(%arg0: i32) -> (i32, i32) {
    %c0_i32 = arith.constant 0 : i32
    %c0_i32_0 = arith.constant 0 : i32
    %c0_i32_1 = arith.constant 0 : i32
    return %c0_i32, %c0_i32_0 : i32, i32
  }
  func.func @transform_8(%arg0: i32) -> (i32, i32) {
    %c0_i32 = arith.constant 0 : i32
    %c0_i32_0 = arith.constant 0 : i32
    %c0_i32_1 = arith.constant 0 : i32
    return %c0_i32, %c0_i32_0 : i32, i32
  }
  func.func @transform_9(%arg0: i32) -> (i32, i32) {
    %c0_i32 = arith.constant 0 : i32
    %c0_i32_0 = arith.constant 0 : i32
    %c0_i32_1 = arith.constant 0 : i32
    return %c0_i32, %c0_i32_0 : i32, i32
  }
  func.func @transform_10(%arg0: i32) -> (i32, i32) {
    %c0_i32 = arith.constant 0 : i32
    %c0_i32_0 = arith.constant 0 : i32
    %c0_i32_1 = arith.constant 0 : i32
    return %c0_i32, %c0_i32_0 : i32, i32
  }
  func.func @transform_11(%arg0: i32) -> (i32, i32) {
    %c0_i32 = arith.constant 0 : i32
    %c0_i32_0 = arith.constant 0 : i32
    %c0_i32_1 = arith.constant 0 : i32
    return %c0_i32, %c0_i32_0 : i32, i32
  }
  func.func @transform_12(%arg0: i32) -> (i32, i32) {
    %c0_i32 = arith.constant 0 : i32
    %c0_i32_0 = arith.constant 0 : i32
    %c0_i32_1 = arith.constant 0 : i32
    return %c0_i32, %c0_i32_0 : i32, i32
  }
  func.func @transform_13(%arg0: i32) -> (i32, i32) {
    %c0_i32 = arith.constant 0 : i32
    %c0_i32_0 = arith.constant 0 : i32
    %c0_i32_1 = arith.constant 0 : i32
    return %c0_i32, %c0_i32_0 : i32, i32
  }
  func.func @transform_14(%arg0: i32) -> (i32, i32, i32) {
    %c0_i32 = arith.constant 0 : i32
    %c0_i32_0 = arith.constant 0 : i32
    %c0_i32_1 = arith.constant 0 : i32
    return %arg0, %c0_i32, %c0_i32_0 : i32, i32, i32
  }
}

</mosaic_0001>

<bundles_post_ra>
// kernel: bottleneck_forward.1
= control target key start
LH: loop header
LB: loop body
LE: loop exit
PB: predicated region body
PF: predicated region fallthrough
CT: control target
= control target key end

     0   :  { %s8607_s29 = smov 0   ;;  %s10642_s0 = inlined_call_operand.vmem [shape: f32[480,1], index: 0, kind: input, shape index: {}]   ;;  %s10643_s1 = inlined_call_operand.vmem [shape: bf16[2,480,128], index: 1, kind: input, shape index: {}]   ;;  %s10644_s2 = inlined_call_operand.vmem [shape: bf16[128,128], index: 2, kind: input, shape index: {}]   ;;  %s10645_s3 = inlined_call_operand.vmem [shape: f32[1,128], index: 3, kind: input, shape index: {}]   ;;  %s10646_s4 = inlined_call_operand.vmem [shape: f32[1,128], index: 4, kind: input, shape index: {}]   ;;  %s10647_s5 = inlined_call_operand.vmem [shape: bf16[9,128,128], index: 5, kind: input, shape index: {}]   ;;  %s10648_s6 = inlined_call_operand.vmem [shape: f32[1,128], index: 6, kind: input, shape index: {}]   ;;  %s10649_s7 = inlined_call_operand.vmem [shape: f32[1,128], index: 7, kind: input, shape index: {}]   ;;  %s10650_s8 = inlined_call_operand.vmem [shape: bf16[128,128], index: 8, kind: input, shape index: {}]   ;;  %s10651_s9 = inlined_call_operand.vmem [shape: f32[1,128], index: 9, kind: input, shape index: {}]   ;;  %s10652_s10 = inlined_call_operand.vmem [shape: f32[1,128], index: 10, kind: input, shape index: {}]   ;;  %s10653_s11 = inlined_call_operand.vmem [shape: bf16[128,128], index: 11, kind: input, shape index: {}]   ;;  %s10654_s12 = inlined_call_operand.vmem [shape: f32[1,128], index: 12, kind: input, shape index: {}]   ;;  %s10655_s13 = inlined_call_operand.vmem [shape: f32[1,128], index: 13, kind: input, shape index: {}]   ;;  %s10656_s14 = inlined_call_operand.vmem [shape: f32[2,384,128], index: 14, kind: output, shape index: {}]  }
   0x1 LB: > { %s6492_s30 = sadd.s32 4294967295, %s8529_s29   ;;  %p6496_p0 = scmp.ge.s32.totalorder %s8529_s29, 1  ;;  %s8529_s29 = sphi %s8607_s29, %s24_s29  }
   0x2   : > { %p412_p1 = scmp.lt.s32.totalorder %s8529_s29, 3 }
   0x4   : > { %p413_p2 = pnand %p6496_p0, %p412_p1 }
   0x6   : > { %416 = sbr.rel (%p413_p2) target bundleno = 1415 (0x587), region = 76 }
   0xd   : > { %v8346_v0 = vld [vmem:[%s10644_s2] sm:$0xff]   ;;  %v8347_v1 = vld [vmem:[%s10644_s2 + $0x8] sm:$0xff]   ;;  %v8531_v2 = vmov 0   ;;  %p458_p3 = scmp.lt.s32.totalorder %s6492_s30, 1  ;;  %v532_v3 = vld [vmem:[%s10642_s0 + $0x18] sm:$0xff] }
   0xe   : > { %8344 = vset.pattern.permute.xlu0 %v8531_v2  ;;  %8345 = vset.pattern.permute.xlu1 %v8531_v2  ;;  %v8348_v4 = vld [vmem:[%s10644_s2 + $0x10] sm:$0xff]   ;;  %v534_v5 = vld [vmem:[%s10642_s0 + $0x28] sm:$0xff]  ;;  %v533_v6 = vld [vmem:[%s10642_s0 + $0x20] sm:$0xff] }
   0xf   : > { %7153 = vmatprep.subr.bf16.mxu0 %v8346_v0  ;;  %s10879_s30 = smov (!%p458_p3, %s6492_s30), 1  ;;  %1317 = vperm.xlu0 %8344, %v532_v3   ;;  %v535_v7 = vld [vmem:[%s10642_s0 + $0x30] sm:$0xff]  ;;  %v8349_v8 = vld [vmem:[%s10644_s2 + $0x18] sm:$0xff]   ;;  %v537_v10 = vld [vmem:[%s10642_s0 + $0x40] sm:$0xff] }
  0x10   : > { %7154 = vmatpush3.bf16.msra.mxu0 %v8346_v0  ;;  %1327 = vperm.xlu1 %8345, %v534_v5   ;;  %s8333_s27 = smul.u32 240, %s10879_s30  ;;  %v536_v9 = vld [vmem:[%s10642_s0 + $0x38] sm:$0xff]  ;;  %v8350_v11 = vld [vmem:[%s10644_s2 + $0x20] sm:$0xff]   ;;  %v538_v13 = vld [vmem:[%s10642_s0 + $0x48] sm:$0xff] }
  0x11   : > { %7155 = vmatprep.subr.bf16.mxu0 %v8347_v1  ;;  %v539_v14 = vld [vmem:[%s10642_s0 + $0x50] sm:$0xff]  ;;  %v8351_v15 = vld [vmem:[%s10644_s2 + $0x28] sm:$0xff]   ;;  %v540_v16 = vld [vmem:[%s10642_s0 + $0x58] sm:$0xff]  ;;  %s8334_s28 = smul.u32 384, %s10879_s30 }
  0x12   : > { %s8648_s22 = scalar_lea.vmem %s10643_s1, %s8333_s27  ;;  %v541_v17 = vld [vmem:[%s10642_s0 + $0x60] sm:$0xff]  ;;  %v8352_v18 = vld [vmem:[%s10644_s2 + $0x30] sm:$0xff]   ;;  %v542_v19 = vld [vmem:[%s10642_s0 + $0x68] sm:$0xff] }
  0x13   : > { %1322 = vperm.xlu0 %8344, %v533_v6   ;;  %v8354_v12 = vld [vmem:[%s8648_s22] sm:$0xff]   ;;  %v543_v20 = vld [vmem:[%s10642_s0 + $0x70] sm:$0xff]  ;;  %v8353_v21 = vld [vmem:[%s10644_s2 + $0x38] sm:$0xff]   ;;  %s10368_s27 = scalar_lea.vmem %s10656_s14, %s8334_s28 }
  0x14   : > { %7156 = vmatpush3.bf16.msra.mxu0 %v8347_v1  ;;  %1332 = vperm.xlu1 %8345, %v535_v7   ;;  %v544_v22 = vld [vmem:[%s10642_s0 + $0x78] sm:$0xff]  ;;  %v545_v23 = vld [vmem:[%s10642_s0 + $0x80] sm:$0xff]  ;;  %v546_v24 = vld [vmem:[%s10642_s0 + $0x88] sm:$0xff] }
  0x15   : > { %7157 = vmatprep.subr.bf16.mxu0 %v8348_v4  ;;  %7169 = vmatprep.mubr.bf16.mxu0 %v8354_v12  ;;  %v8355_v25 = vld [vmem:[%s8648_s22 + $0x8] sm:$0xff]   ;;  %v547_v26 = vld [vmem:[%s10642_s0 + $0x90] sm:$0xff]  ;;  %v548_v28 = vld [vmem:[%s10642_s0 + $0x98] sm:$0xff] }
  0x16   : > { %v8356_v27 = vld [vmem:[%s8648_s22 + $0x10] sm:$0xff]   ;;  %v549_v29 = vld [vmem:[%s10642_s0 + $0xa0] sm:$0xff]  ;;  %v8357_v30 = vld [vmem:[%s8648_s22 + $0x18] sm:$0xff]  }
  0x17   : > { %1337 = vperm.xlu0 %8344, %v536_v9   ;;  %v550_v31 = vld [vmem:[%s10642_s0 + $0xa8] sm:$0xff]  ;;  %v551_v32 = vld [vmem:[%s10642_s0 + $0xb0] sm:$0xff]  ;;  %v8358_v33 = vld [vmem:[%s8648_s22 + $0x20] sm:$0xff]  }
  0x18   : > { %7158 = vmatpush3.bf16.msra.mxu0 %v8348_v4  ;;  %1342 = vperm.xlu1 %8345, %v537_v10   ;;  %v552_v34 = vld [vmem:[%s10642_s0 + $0xb8] sm:$0xff]  ;;  %v553_v35 = vld [vmem:[%s10642_s0 + $0xc0] sm:$0xff]  ;;  %v8359_v36 = vld [vmem:[%s8648_s22 + $0x28] sm:$0xff]  }
  0x19   : > { %7159 = vmatprep.subr.bf16.mxu0 %v8349_v8  ;;  %v554_v37 = vld [vmem:[%s10642_s0 + $0xc8] sm:$0xff]  ;;  %v555_v38 = vld [vmem:[%s10642_s0 + $0xd0] sm:$0xff]  ;;  %v556_v40 = vld [vmem:[%s10642_s0 + $0xd8] sm:$0xff] }
  0x1a   : > { %v8360_v39 = vld [vmem:[%s8648_s22 + $0x30] sm:$0xff]   ;;  %v557_v41 = vld [vmem:[%s10642_s0 + $0xe0] sm:$0xff]  ;;  %v8361_v42 = vld [vmem:[%s8648_s22 + $0x38] sm:$0xff]  }
  0x1b   : > { %1347 = vperm.xlu0 %8344, %v538_v13   ;;  %v558_v43 = vld [vmem:[%s10642_s0 + $0xe8] sm:$0xff]  ;;  %v559_v44 = vld [vmem:[%s10642_s0 + $0xf0] sm:$0xff]  ;;  %v8362_v45 = vld [vmem:[%s8648_s22 + $0x40] sm:$0xff]  }
  0x1c   : > { %7160 = vmatpush3.bf16.msra.mxu0 %v8349_v8  ;;  %1352 = vperm.xlu1 %8345, %v539_v14   ;;  %v560_v46 = vld [vmem:[%s10642_s0 + $0xf8] sm:$0xff]  ;;  %v561_v47 = vld [vmem:[%s10642_s0 + $0x100] sm:$0xff]  ;;  %v562_v48 = vld [vmem:[%s10642_s0 + $0x108] sm:$0xff] }
  0x1d   : > { %7161 = vmatprep.subr.bf16.mxu0 %v8350_v11  ;;  %v8363_v49 = vld [vmem:[%s8648_s22 + $0x48] sm:$0xff]   ;;  %v563_v50 = vld [vmem:[%s10642_s0 + $0x110] sm:$0xff]  ;;  %v564_v52 = vld [vmem:[%s10642_s0 + $0x118] sm:$0xff] }
  0x1e   : > { %v8364_v51 = vld [vmem:[%s8648_s22 + $0x50] sm:$0xff]   ;;  %v565_v53 = vld [vmem:[%s10642_s0 + $0x120] sm:$0xff]  ;;  %v566_v54 = vld [vmem:[%s10642_s0 + $0x128] sm:$0xff] }
  0x1f   : > { %1357 = vperm.xlu0 %8344, %v540_v16   ;;  %v8365_v55 = vld [vmem:[%s8648_s22 + $0x58] sm:$0xff]   ;;  %v567_v56 = vld [vmem:[%s10642_s0 + $0x130] sm:$0xff]  ;;  %v8366_v57 = vld [vmem:[%s8648_s22 + $0x60] sm:$0xff]  }
  0x20   : > { %7162 = vmatpush3.bf16.msra.mxu0 %v8350_v11  ;;  %1362 = vperm.xlu1 %8345, %v541_v17   ;;  %v568_v58 = vld [vmem:[%s10642_s0 + $0x138] sm:$0xff]  ;;  %v569_v59 = vld [vmem:[%s10642_s0 + $0x140] sm:$0xff]  ;;  %v570_v60 = vld [vmem:[%s10642_s0 + $0x148] sm:$0xff] }
  0x21   : > { %7163 = vmatprep.subr.bf16.mxu0 %v8351_v15  ;;  %v8367_v61 = vld [vmem:[%s8648_s22 + $0x68] sm:$0xff]   ;;  %v571_v62 = vld [vmem:[%s10642_s0 + $0x150] sm:$0xff]  ;;  %v572_v0 = vld [vmem:[%s10642_s0 + $0x158] sm:$0xff] }
  0x22   : > { %v8368_v63 = vld [vmem:[%s8648_s22 + $0x70] sm:$0xff]   ;;  %v573_v1 = vld [vmem:[%s10642_s0 + $0x160] sm:$0xff]  ;;  %v574_v2 = vld [vmem:[%s10642_s0 + $0x168] sm:$0xff] }
  0x23   : > { %1367 = vperm.xlu0 %8344, %v542_v19   ;;  %v8369_v3 = vld [vmem:[%s8648_s22 + $0x78] sm:$0xff]   ;;  %v575_v4 = vld [vmem:[%s10642_s0 + $0x170] sm:$0xff]  ;;  %v8370_v5 = vld [vmem:[%s8648_s22 + $0x80] sm:$0xff]  }
  0x24   : > { %7164 = vmatpush3.bf16.msra.mxu0 %v8351_v15  ;;  %1372 = vperm.xlu1 %8345, %v543_v20   ;;  %v576_v6 = vld [vmem:[%s10642_s0 + $0x178] sm:$0xff]  ;;  %v577_v7 = vld [vmem:[%s10642_s0 + $0x180] sm:$0xff]  ;;  %v578_v8 = vld [vmem:[%s10642_s0 + $0x188] sm:$0xff] }
  0x25   : > { %7165 = vmatprep.subr.bf16.mxu0 %v8352_v18  ;;  %v8371_v9 = vld [vmem:[%s8648_s22 + $0x88] sm:$0xff]   ;;  %v579_v10 = vld [vmem:[%s10642_s0 + $0x190] sm:$0xff]  ;;  %v580_v12 = vld [vmem:[%s10642_s0 + $0x198] sm:$0xff] }
  0x26   : > { %v8372_v11 = vld [vmem:[%s8648_s22 + $0x90] sm:$0xff]   ;;  %v581_v13 = vld [vmem:[%s10642_s0 + $0x1a0] sm:$0xff]  ;;  %v582_v14 = vld [vmem:[%s10642_s0 + $0x1a8] sm:$0xff] }
  0x27   : > { %1377 = vperm.xlu0 %8344, %v544_v22   ;;  %v8373_v15 = vld [vmem:[%s8648_s22 + $0x98] sm:$0xff]   ;;  %v583_v16 = vld [vmem:[%s10642_s0 + $0x1b0] sm:$0xff]  ;;  %v8374_v17 = vld [vmem:[%s8648_s22 + $0xa0] sm:$0xff]  }
  0x28   : > { %7166 = vmatpush3.bf16.msra.mxu0 %v8352_v18  ;;  %1382 = vperm.xlu1 %8345, %v545_v23   ;;  %v531_v18 = vld [vmem:[%s10642_s0 + $0x10] sm:$0xff]  ;;  %v584_v19 = vld [vmem:[%s10642_s0 + $0x1b8] sm:$0xff]  ;;  %v8384_v20 = vld [vmem:[%s10647_s5 + $0x40] sm:$0xff]  }
  0x29   : > { %7167 = vmatprep.subr.bf16.mxu0 %v8353_v21  ;;  %v585_v22 = vld [vmem:[%s10642_s0 + $0x1c0] sm:$0xff]  ;;  %v8375_v23 = vld [vmem:[%s8648_s22 + $0xa8] sm:$0xff]  }
  0x2b   : > { %1387 = vperm.xlu0 %8344, %v546_v24   ;;  %v586_v24 = vld [vmem:[%s10642_s0 + $0x1c8] sm:$0xff] }
  0x2c   : > { %7168 = vmatpush3.bf16.msra.mxu0 %v8353_v21  ;;  %1392 = vperm.xlu1 %8345, %v547_v26   ;;  %v8385_v21 = vld [vmem:[%s10647_s5 + $0x80] sm:$0xff]   ;;  %v8387_v26 = vld [vmem:[%s10647_s5 + $0x48] sm:$0xff]  }
  0x2d   : > { %7229 = vmatprep.subr.bf16.mxu0 %v8384_v20  ;;  %7357 = vmatprep.subr.bf16.mxu1 %v8385_v21 }
  0x2e   : > { %7358 = vmatpush3.bf16.msra.mxu1 %v8385_v21 }
  0x2f   : > { %7170 = vmatmul.mubr.bf16.vlgmr.msra.gmra.mrb[0].mxu0 %v8355_v25  ;;  %1397 = vperm.xlu0 %8344, %v548_v28   ;;  %v8376_v25 = vld [vmem:[%s8648_s22 + $0xb0] sm:$0xff]   ;;  %v530_v28 = vld [vmem:[%s10642_s0 + $0x8] sm:$0xff] }
  0x30   : > { %7173 = vmatprep.mubr.bf16.mxu0 %v8356_v27  ;;  %1402 = vperm.xlu1 %8345, %v549_v29   ;;  %v529_v27 = vld [vmem:[%s10642_s0] sm:$0xff]  ;;  %v8389_v29 = vld [vmem:[%s10647_s5 + $0x50] sm:$0xff]  }
  0x31   : > { %7230 = vmatpush3.bf16.msra.mxu0 %v8384_v20 }
  0x32   : > { %7231 = vmatprep.subr.bf16.mxu0 %v8387_v26 }
  0x33   : > { %1407 = vperm.xlu0 %8344, %v550_v31   ;;  %v587_v31 = vld [vmem:[%s10642_s0 + $0x1d0] sm:$0xff] }
  0x34   : > { %1412 = vperm.xlu1 %8345, %v551_v32   ;;  %v8391_v32 = vld [vmem:[%s10647_s5 + $0x58] sm:$0xff]  }
  0x35   : > { %7232 = vmatpush3.bf16.msra.mxu0 %v8387_v26 }
  0x36   : > { %7233 = vmatprep.subr.bf16.mxu0 %v8389_v29 }
  0x37   : > { %7174 = vmatmul.mubr.bf16.gmra.mrb[4].mxu0 %v8357_v30  ;;  %1417 = vperm.xlu0 %8344, %v552_v34   ;;  %v8377_v30 = vld [vmem:[%s8648_s22 + $0xb8] sm:$0xff]   ;;  %v8386_v34 = vld [vmem:[%s10647_s5 + $0x88] sm:$0xff]  }
  0x38   : > { %7177 = vmatprep.mubr.bf16.mxu0 %v8358_v33  ;;  %1422 = vperm.xlu1 %8345, %v553_v35   ;;  %v588_v33 = vld [vmem:[%s10642_s0 + $0x1d8] sm:$0xff]  ;;  %v8378_v35 = vld [vmem:[%s8648_s22 + $0xc0] sm:$0xff]  }
  0x39   : > { %7234 = vmatpush3.bf16.msra.mxu0 %v8389_v29  ;;  %7359 = vmatprep.subr.bf16.mxu1 %v8386_v34 }
  0x3a   : > { %7235 = vmatprep.subr.bf16.mxu0 %v8391_v32  ;;  %7360 = vmatpush3.bf16.msra.mxu1 %v8386_v34 }
  0x3b   : > { %1427 = vperm.xlu0 %8344, %v554_v37   ;;  %v8388_v37 = vld [vmem:[%s10647_s5 + $0x90] sm:$0xff]  }
  0x3c   : > { %1432 = vperm.xlu1 %8345, %v555_v38   ;;  %7361 = vmatprep.subr.bf16.mxu1 %v8388_v37  ;;  %v8394_v38 = vld [vmem:[%s10647_s5 + $0x68] sm:$0xff]  }
  0x3d   : > { %7236 = vmatpush3.bf16.msra.mxu0 %v8391_v32 }
  0x3e   : > { %7362 = vmatpush3.bf16.msra.mxu1 %v8388_v37 }
  0x3f   : > { %7178 = vmatmul.mubr.bf16.gmra.mrb[8].mxu0 %v8359_v36  ;;  %1437 = vperm.xlu0 %8344, %v556_v40   ;;  %v8393_v36 = vld [vmem:[%s10647_s5 + $0x60] sm:$0xff]   ;;  %v8390_v40 = vld [vmem:[%s10647_s5 + $0x98] sm:$0xff]  }
  0x40   : > { %7181 = vmatprep.mubr.bf16.mxu0 %v8360_v39  ;;  %1442 = vperm.xlu1 %8345, %v557_v41   ;;  %v8379_v39 = vld [vmem:[%s8648_s22 + $0xc8] sm:$0xff]   ;;  %v8380_v41 = vld [vmem:[%s8648_s22 + $0xd0] sm:$0xff]  }
  0x41   : > { %7237 = vmatprep.subr.bf16.mxu0 %v8393_v36  ;;  %7363 = vmatprep.subr.bf16.mxu1 %v8390_v40 }
  0x42   : > { %7238 = vmatpush3.bf16.msra.mxu0 %v8393_v36  ;;  %7364 = vmatpush3.bf16.msra.mxu1 %v8390_v40 }
  0x43   : > { %1447 = vperm.xlu0 %8344, %v558_v43   ;;  %7239 = vmatprep.subr.bf16.mxu0 %v8394_v38  ;;  %v8392_v43 = vld [vmem:[%s10647_s5 + $0xa0] sm:$0xff]  }
  0x44   : > { %1452 = vperm.xlu1 %8345, %v559_v44   ;;  %7365 = vmatprep.subr.bf16.mxu1 %v8392_v43 }
  0x46   : > { %7240 = vmatpush3.bf16.msra.mxu0 %v8394_v38  ;;  %7366 = vmatpush3.bf16.msra.mxu1 %v8392_v43  ;;  %v9026_v43 = vld [vmem:[%s10645_s3] ss:$0 sm:$0xff] }
  0x47   : > { %7182 = vmatmul.mubr.bf16.gmra.mrb[12].mxu0 %v8361_v42  ;;  %1457 = vperm.xlu0 %8344, %v560_v46   ;;  %v8396_v42 = vld [vmem:[%s10647_s5 + $0x70] sm:$0xff]   ;;  %v8398_v46 = vld [vmem:[%s10647_s5 + $0x78] sm:$0xff]  }
  0x48   : > { %7185 = vmatprep.mubr.bf16.mxu0 %v8362_v45  ;;  %1462 = vperm.xlu1 %8345, %v561_v47   ;;  %v8381_v47 = vld [vmem:[%s8648_s22 + $0xd8] sm:$0xff]  }
  0x49   : > { %7241 = vmatprep.subr.bf16.mxu0 %v8396_v42 }
  0x4a   : > { %7242 = vmatpush3.bf16.msra.mxu0 %v8396_v42 }
  0x4b   : > { %1467 = vperm.xlu0 %8344, %v562_v48   ;;  %v8395_v48 = vld [vmem:[%s10647_s5 + $0xa8] sm:$0xff]   ;;  %7243 = vmatprep.subr.bf16.mxu0 %v8398_v46 }
  0x4c   : > { %1472 = vperm.xlu1 %8345, %v563_v50   ;;  %v8382_v50 = vld [vmem:[%s8648_s22 + $0xe0] sm:$0xff]   ;;  %7367 = vmatprep.subr.bf16.mxu1 %v8395_v48 }
  0x4d   : > { %7368 = vmatpush3.bf16.msra.mxu1 %v8395_v48  ;;  %v9033_v48 = vld [vmem:[%s10646_s4] ss:$0 sm:$0xff] }
  0x4e   : > { %7244 = vmatpush3.bf16.msra.mxu0 %v8398_v46 }
  0x4f   : > { %7186 = vmatmul.mubr.bf16.gmra.mrb[16].mxu0 %v8363_v49  ;;  %1477 = vperm.xlu0 %8344, %v564_v52   ;;  %v8397_v52 = vld [vmem:[%s10647_s5 + $0xb0] sm:$0xff]  }
  0x50   : > { %7189 = vmatprep.mubr.bf16.mxu0 %v8364_v51  ;;  %1482 = vperm.xlu1 %8345, %v565_v53  }
  0x51   : > { %7369 = vmatprep.subr.bf16.mxu1 %v8397_v52 }
  0x52   : > { %7370 = vmatpush3.bf16.msra.mxu1 %v8397_v52 }
  0x53   : > { %1487 = vperm.xlu0 %8344, %v566_v54  }
  0x54   : > { %1492 = vperm.xlu1 %8345, %v567_v56   ;;  %v8399_v56 = vld [vmem:[%s10647_s5 + $0xb8] sm:$0xff]  }
  0x55   : > { %7371 = vmatprep.subr.bf16.mxu1 %v8399_v56 }
  0x56   : > { %7372 = vmatpush3.bf16.msra.mxu1 %v8399_v56 }
  0x57   : > { %7190 = vmatmul.mubr.bf16.gmra.mrb[20].mxu0 %v8365_v55  ;;  %1497 = vperm.xlu0 %8344, %v568_v58   ;;  %v8383_v55 = vld [vmem:[%s8648_s22 + $0xe8] sm:$0xff]  }
  0x58   : > { %7193 = vmatprep.mubr.bf16.mxu0 %v8366_v57  ;;  %1502 = vperm.xlu1 %8345, %v569_v59  }
  0x5b   : > { %1507 = vperm.xlu0 %8344, %v570_v60  }
  0x5c   : > { %1512 = vperm.xlu1 %8345, %v571_v62  }
  0x5f   : > { %7194 = vmatmul.mubr.bf16.gmra.mrb[24].mxu0 %v8367_v61  ;;  %1517 = vperm.xlu0 %8344, %v572_v0  }
  0x60   : > { %7197 = vmatprep.mubr.bf16.mxu0 %v8368_v63  ;;  %1522 = vperm.xlu1 %8345, %v573_v1   ;;  %v8932_v63 = vld [vmem:[%s10647_s5 + $0xc0] sm:$0xff]  }
  0x61   : > { %7421 = vmatprep.subr.bf16.mxu1 %v8932_v63 }
  0x63   : > { %1527 = vperm.xlu0 %8344, %v574_v2  }
  0x64   : > { %1532 = vperm.xlu1 %8345, %v575_v4  }
  0x67   : > { %7198 = vmatmul.mubr.bf16.gmra.mrb[28].mxu0 %v8369_v3  ;;  %1537 = vperm.xlu0 %8344, %v576_v6  }
  0x68   : > { %7201 = vmatprep.mubr.bf16.mxu0 %v8370_v5  ;;  %1542 = vperm.xlu1 %8345, %v577_v7  }
  0x6b   : > { %1547 = vperm.xlu0 %8344, %v578_v8  }
  0x6c   : > { %1552 = vperm.xlu1 %8345, %v579_v10  }
  0x6f   : > { %7202 = vmatmul.mubr.bf16.gmra.mrb[32].mxu0 %v8371_v9  ;;  %1557 = vperm.xlu0 %8344, %v580_v12  }
  0x70   : > { %7205 = vmatprep.mubr.bf16.mxu0 %v8372_v11  ;;  %1562 = vperm.xlu1 %8345, %v581_v13  }
  0x73   : > { %1567 = vperm.xlu0 %8344, %v582_v14  }
  0x74   : > { %1572 = vperm.xlu1 %8345, %v583_v16  }
  0x77   : > { %7206 = vmatmul.mubr.bf16.gmra.mrb[36].mxu0 %v8373_v15  ;;  %1312 = vperm.xlu0 %8344, %v531_v18  }
  0x78   : > { %7209 = vmatprep.mubr.bf16.mxu0 %v8374_v17  ;;  %1577 = vperm.xlu1 %8345, %v584_v19  }
  0x7b   : > { %1582 = vperm.xlu0 %8344, %v585_v22  }
  0x7c   : > { %1587 = vperm.xlu1 %8345, %v586_v24   ;;  %v8986_v24 = vld [vmem:[%s10647_s5] sm:$0xff]  }
  0x7d   : > { %7293 = vmatprep.subr.bf16.mxu0 %v8986_v24 }
  0x7f   : > { %7210 = vmatmul.mubr.bf16.gmra.mrb[40].mxu0 %v8375_v23  ;;  %1302 = vperm.xlu0 %8344, %v529_v27  }
  0x80   : > { %7213 = vmatprep.mubr.bf16.mxu0 %v8376_v25  ;;  %1307 = vperm.xlu1 %8345, %v530_v28  }
  0x83   : > { %1592 = vperm.xlu0 %8344, %v587_v31  }
  0x84   : > { %1597 = vperm.xlu1 %8345, %v588_v33  }
  0x87   : > { %7214 = vmatmul.mubr.bf16.gmra.mrb[44].mxu0 %v8377_v30 }
  0x88   : > { %7217 = vmatprep.mubr.bf16.mxu0 %v8378_v35 }
  0x8e   : > { %v8890_v44 = vpop.permute.xlu0 %1317 }
  0x8f   : > { %7218 = vmatmul.mubr.bf16.gmra.mrb[48].mxu0 %v8379_v39  ;;  %v8892_v45 = vpop.permute.xlu1 %1327 }
  0x90   : > { %7221 = vmatprep.mubr.bf16.mxu0 %v8380_v41 }
  0x92   : > { %v8901_v49 = vpop.permute.xlu0 %1322 }
  0x93   : > { %v8904_v51 = vpop.permute.xlu1 %1332 }
  0x96   : > { %v8909_v53 = vpop.permute.xlu0 %1337 }
  0x97   : > { %7222 = vmatmul.mubr.bf16.gmra.mrb[52].mxu0 %v8381_v47  ;;  %v8911_v54 = vpop.permute.xlu1 %1342 }
  0x98   : > { %7225 = vmatprep.mubr.bf16.mxu0 %v8382_v50 }
  0x9a   : > { %v8917_v57 = vpop.permute.xlu0 %1347 }
  0x9b   : > { %v8919_v58 = vpop.permute.xlu1 %1352 }
  0x9e   : > { %v8921_v59 = vpop.permute.xlu0 %1357 }
  0x9f   : > { %7226 = vmatmul.mubr.bf16.gmra.mrb[56].mxu0 %v8383_v55  ;;  %v8923_v60 = vpop.permute.xlu1 %1362 }
  0xa2   : > { %v8925_v61 = vpop.permute.xlu0 %1367 }
  0xa3   : > { %v8927_v62 = vpop.permute.xlu1 %1372 }
  0xa6   : > { %v8934_v0 = vpop.permute.xlu0 %1377 }
  0xa7   : > { %v8937_v1 = vpop.permute.xlu1 %1382 }
  0xaa   : > { %v8939_v2 = vpop.permute.xlu0 %1387 }
  0xab   : > { %v8941_v3 = vpop.permute.xlu1 %1392 }
  0xae   : > { %v8943_v4 = vpop.permute.xlu0 %1397 }
  0xaf   : > { %v8945_v5 = vpop.permute.xlu1 %1402 }
  0xb2   : > { %v8947_v6 = vpop.permute.xlu0 %1407 }
  0xb3   : > { %v8949_v7 = vpop.permute.xlu1 %1412 }
  0xb6   : > { %v8951_v8 = vpop.permute.xlu0 %1417 }
  0xb7   : > { %v8953_v9 = vpop.permute.xlu1 %1422 }
  0xba   : > { %v8955_v10 = vpop.permute.xlu0 %1427 }
  0xbb   : > { %v8957_v11 = vpop.permute.xlu1 %1432 }
  0xbe   : > { %v8959_v12 = vpop.permute.xlu0 %1437 }
  0xbf   : > { %v8961_v13 = vpop.permute.xlu1 %1442 }
  0xc2   : > { %v8963_v14 = vpop.permute.xlu0 %1447 }
  0xc3   : > { %v8965_v15 = vpop.permute.xlu1 %1452 }
  0xc6   : > { %v8967_v16 = vpop.permute.xlu0 %1457 }
  0xc7   : > { %v8969_v17 = vpop.permute.xlu1 %1462 }
  0xca   : > { %v8971_v18 = vpop.permute.xlu0 %1467 }
  0xcb   : > { %v8973_v19 = vpop.permute.xlu1 %1472 }
  0xce   : > { %v8975_v20 = vpop.permute.xlu0 %1477 }
  0xcf   : > { %v8977_v21 = vpop.permute.xlu1 %1482 }
  0xd2   : > { %v8979_v22 = vpop.permute.xlu0 %1487 }
  0xd3   : > { %v8981_v23 = vpop.permute.xlu1 %1492 }
  0xd6   : > { %v8988_v25 = vpop.permute.xlu0 %1497 }
  0xd7   : > { %v8990_v26 = vpop.permute.xlu1 %1502 }
  0xda   : > { %v8993_v27 = vpop.permute.xlu0 %1507 }
  0xdb   : > { %v8995_v28 = vpop.permute.xlu1 %1512 }
  0xde   : > { %v8997_v29 = vpop.permute.xlu0 %1517 }
  0xdf   : > { %v8999_v30 = vpop.permute.xlu1 %1522 }
  0xe2   : > { %v9001_v31 = vpop.permute.xlu0 %1527 }
  0xe3   : > { %10670 = vst [vmem:[#allocation3_spill] sm:$0xff] %v9001_v31  ;;  %v9003_v32 = vpop.permute.xlu1 %1532 }
  0xe6   : > { %v9005_v33 = vpop.permute.xlu0 %1537 }
  0xe7   : > { %10671 = vst [vmem:[#allocation4_spill] sm:$0xff] %v9005_v33  ;;  %v9007_v34 = vpop.permute.xlu1 %1542 }
  0xe8   : > { %10672 = vst [vmem:[#allocation5_spill] sm:$0xff] %v9007_v34 }
  0xea   : > { %v9009_v35 = vpop.permute.xlu0 %1547 }
  0xeb   : > { %10673 = vst [vmem:[#allocation6_spill] sm:$0xff] %v9009_v35  ;;  %v9011_v36 = vpop.permute.xlu1 %1552 }
  0xec   : > { %10674 = vst [vmem:[#allocation7_spill] sm:$0xff] %v9011_v36 }
  0xee   : > { %v9013_v37 = vpop.permute.xlu0 %1557 }
  0xef   : > { %10675 = vst [vmem:[#allocation8_spill] sm:$0xff] %v9013_v37  ;;  %v9015_v38 = vpop.permute.xlu1 %1562 }
  0xf0   : > { %10676 = vst [vmem:[#allocation9_spill] sm:$0xff] %v9015_v38 }
  0xf2   : > { %v9017_v39 = vpop.permute.xlu0 %1567 }
  0xf3   : > { %10677 = vst [vmem:[#allocation10_spill] sm:$0xff] %v9017_v39  ;;  %v9019_v40 = vpop.permute.xlu1 %1572 }
  0xf4   : > { %10678 = vst [vmem:[#allocation11_spill] sm:$0xff] %v9019_v40 }
  0xf6   : > { %v1313_v41 = vpop.permute.xlu0 %1312 }
  0xf7   : > { %v9021_v42 = vpop.permute.xlu1 %1577 }
  0xf8   : > { %10679 = vst [vmem:[#allocation12_spill] sm:$0xff] %v9021_v42 }
  0xfa   : > { %v9028_v46 = vpop.permute.xlu0 %1582 }
  0xfb   : > { %10680 = vst [vmem:[#allocation13_spill] sm:$0xff] %v9028_v46  ;;  %v9036_v55 = vpop.permute.xlu1 %1587 }
  0xfc   : > { %10681 = vst [vmem:[#allocation14_spill] sm:$0xff] %v9036_v55 }
  0xfe   : > { %v1303_v35 = vpop.permute.xlu0 %1302 }
  0xff   : > { %v1308_v36 = vpop.permute.xlu1 %1307 }
 0x102   : > { %v7171_v47 = vpop.f32.mrb[0].mxu0 }
 0x103   : > { %v1115_v50 = vmul.f32 %v7171_v47, %v9026_v43  ;;  %v867_v52 = vpop.f32.mrb[1].mxu0 }
 0x104   : > { %v7172_v56 = vpop.f32.mrb[2].mxu0 }
 0x105   : > { %v1182_v39 = vadd.f32 %v9033_v48, %v1115_v50  ;;  %v1116_v42 = vmul.f32 %v7172_v56, %v9026_v43  ;;  %v870_v38 = vpop.f32.mrb[3].mxu0 }
 0x107   : > { %v1242_v40 = vmax.f32 %v1182_v39, 0.0  ;;  %v1183_v46 = vadd.f32 %v9033_v48, %v1116_v42 }
 0x109   : > { %v1602_v37 = vmul.f32 %v1313_v41, %v1242_v40  ;;  %v1243_v34 = vmax.f32 %v1183_v46, 0.0 }
 0x10a   : > { %v7175_v31 = vpop.f32.mrb[4].mxu0 }
 0x10b   : > { %1662 = vst [vmem:[#allocation2 + $0x10] sm:$0xff] %v1602_v37  ;;  %v1603_v47 = vmul.f32 %v8890_v44, %v1243_v34  ;;  %v1119_v52 = vmul.f32 %v7175_v31, %v9026_v43  ;;  %v883_v55 = vpop.f32.mrb[5].mxu0 }
 0x10c   : > { %v1117_v33 = vmul.f32 %v9026_v43, %v883_v55  ;;  %v7176_v50 = vpop.f32.mrb[6].mxu0 }
 0x10d   : > { %1663 = vst [vmem:[#allocation2 + $0x18] sm:$0xff] %v1603_v47  ;;  %v1186_v38 = vadd.f32 %v9033_v48, %v1119_v52  ;;  %v1120_v39 = vmul.f32 %v7176_v50, %v9026_v43  ;;  %v886_v42 = vpop.f32.mrb[7].mxu0 }
 0x10e   : > { %v1184_v35 = vadd.f32 %v9033_v48, %v1117_v33  ;;  %v1118_v36 = vmul.f32 %v9026_v43, %v886_v42 }
 0x10f   : > { %v1246_v40 = vmax.f32 %v1186_v38, 0.0  ;;  %v1187_v37 = vadd.f32 %v9033_v48, %v1120_v39 }
 0x110   : > { %v1244_v44 = vmax.f32 %v1184_v35, 0.0  ;;  %v1185_v31 = vadd.f32 %v9033_v48, %v1118_v36 }
 0x111   : > { %v1606_v34 = vmul.f32 %v8904_v51, %v1246_v40  ;;  %v1247_v41 = vmax.f32 %v1187_v37, 0.0 }
 0x112   : > { %v1604_v46 = vmul.f32 %v8901_v49, %v1244_v44  ;;  %v1245_v55 = vmax.f32 %v1185_v31, 0.0  ;;  %v7179_v56 = vpop.f32.mrb[8].mxu0 }
 0x113   : > { %1666 = vst [vmem:[#allocation2 + $0x30] sm:$0xff] %v1606_v34  ;;  %v1607_v52 = vmul.f32 %v8909_v53, %v1247_v41  ;;  %v1123_v33 = vmul.f32 %v7179_v56, %v9026_v43  ;;  %v899_v50 = vpop.f32.mrb[9].mxu0 }
 0x114   : > { %1664 = vst [vmem:[#allocation2 + $0x20] sm:$0xff] %v1604_v46  ;;  %v1605_v38 = vmul.f32 %v8892_v45, %v1245_v55  ;;  %v1121_v39 = vmul.f32 %v9026_v43, %v899_v50  ;;  %v7180_v42 = vpop.f32.mrb[10].mxu0  ;;  %v1856_v35 = vpack.c.bf16 %v1604_v46, %v1603_v47  ;;  %v8407_v45 = vld [vmem:[%s10647_s5 + $0x8] sm:$0xff]  }
 0x115   : > { %1667 = vst [vmem:[#allocation2 + $0x38] sm:$0xff] %v1607_v52  ;;  %v1190_v51 = vadd.f32 %v9033_v48, %v1123_v33  ;;  %v1124_v49 = vmul.f32 %v7180_v42, %v9026_v43  ;;  %v902_v36 = vpop.f32.mrb[11].mxu0  ;;  %v8408_v42 = vld [vmem:[%s10647_s5 + $0x10] sm:$0xff]  }
 0x116   : > { %1665 = vst [vmem:[#allocation2 + $0x28] sm:$0xff] %v1605_v38  ;;  %v1188_v40 = vadd.f32 %v9033_v48, %v1121_v39  ;;  %v1122_v53 = vmul.f32 %v9026_v43, %v902_v36  ;;  %7245 = vmatprep.mubr.bf16.mxu0 %v1856_v35  ;;  %v1857_v37 = vpack.c.bf16 %v1606_v34, %v1605_v38 }
 0x117   : > { %v1250_v44 = vmax.f32 %v1190_v51, 0.0  ;;  %v1191_v47 = vadd.f32 %v9033_v48, %v1124_v49 }
 0x118   : > { %v1248_v31 = vmax.f32 %v1188_v40, 0.0  ;;  %v1189_v41 = vadd.f32 %v9033_v48, %v1122_v53  ;;  %7246 = vmatmul.mubr.bf16.vlgmr.msra.gmra.mrb[60].mxu0 %v1857_v37 }
 0x119   : > { %v1610_v46 = vmul.f32 %v8919_v58, %v1250_v44  ;;  %v1251_v55 = vmax.f32 %v1191_v47, 0.0  ;;  %7294 = vmatpush3.bf16.msra.mxu0 %v8986_v24 }
 0x11a   : > { %v1608_v56 = vmul.f32 %v8911_v54, %v1248_v31  ;;  %v1249_v33 = vmax.f32 %v1189_v41, 0.0  ;;  %v7183_v34 = vpop.f32.mrb[12].mxu0  ;;  %7295 = vmatprep.subr.bf16.mxu0 %v8407_v45 }
 0x11b   : > { %1670 = vst [vmem:[#allocation2 + $0x50] sm:$0xff] %v1610_v46  ;;  %v9069_v50 = vmul.f32 %v8921_v59, %v1251_v55  ;;  %v1127_v38 = vmul.f32 %v7183_v34, %v9026_v43  ;;  %v915_v39 = vpop.f32.mrb[13].mxu0  ;;  %v2443_v40 = vld [vmem:[#allocation2 + $0x19] sm:$0xff] }
 0x11c   : > { %1668 = vst [vmem:[#allocation2 + $0x40] sm:$0xff] %v1608_v56  ;;  %v1609_v58 = vmul.f32 %v8917_v57, %v1249_v33  ;;  %v1125_v24 = vmul.f32 %v9026_v43, %v915_v39  ;;  %v7184_v54 = vpop.f32.mrb[14].mxu0  ;;  %v2446_v35 = vld [vmem:[#allocation2 + $0x31] sm:$0xff]  ;;  %v1858_v51 = vpack.c.bf16 %v1608_v56, %v1607_v52  ;;  %v8401_v56 = vld [vmem:[%s10647_s5 + $0xc8] sm:$0xff]  }
 0x11d   : > { %1671 = vst [vmem:[#allocation2 + $0x58] sm:$0xff] %v9069_v50  ;;  %v1194_v59 = vadd.f32 %v9033_v48, %v1127_v38  ;;  %v1128_v49 = vmul.f32 %v7184_v54, %v9026_v43  ;;  %v918_v36 = vpop.f32.mrb[15].mxu0  ;;  %v2444_v53 = vld [vmem:[#allocation2 + $0x21] sm:$0xff]  ;;  %v2445_v37 = vld [vmem:[#allocation2 + $0x29] sm:$0xff]  ;;  %7296 = vmatpush3.bf16.msra.mxu0 %v8407_v45  ;;  %v8410_v45 = vld [vmem:[%s10647_s5 + $0x18] sm:$0xff]  }
 0x11e   : > { %1669 = vst [vmem:[#allocation2 + $0x48] sm:$0xff] %v1609_v58  ;;  %v1192_v44 = vadd.f32 %v9033_v48, %v1125_v24  ;;  %v1126_v57 = vmul.f32 %v9026_v43, %v918_v36  ;;  %v2491_v47 = vpack.c.bf16 %v2444_v53, %v2443_v40  ;;  %v2492_v31 = vpack.c.bf16 %v2446_v35, %v2445_v37 }
 0x11f   : > { %7249 = vmatprep.mubr.bf16.mxu0 %v1858_v51  ;;  %v1254_v52 = vmax.f32 %v1194_v59, 0.0  ;;  %v1195_v41 = vadd.f32 %v9033_v48, %v1128_v49  ;;  %v1859_v55 = vpack.c.bf16 %v1610_v46, %v1609_v58  ;;  %7297 = vmatprep.subr.bf16.mxu0 %v8408_v42 }
 0x120   : > { %v1252_v33 = vmax.f32 %v1192_v44, 0.0  ;;  %v1193_v34 = vadd.f32 %v9033_v48, %v1126_v57  ;;  %7373 = vmatprep.mubr.bf16.mxu1 %v2491_v47 }
 0x121   : > { %v1614_v38 = vmul.f32 %v8927_v62, %v1254_v52  ;;  %v1255_v39 = vmax.f32 %v1195_v41, 0.0  ;;  %7374 = vmatmul.mubr.bf16.vlgmr.msra.gmra.mrb[0].mxu1 %v2492_v31  ;;  %7250 = vmatmul.mubr.bf16.gmra.mrb[64].mxu0 %v1859_v55  ;;  %v8402_v62 = vld [vmem:[%s10647_s5 + $0xd0] sm:$0xff]  }
 0x122   : > { %v1612_v46 = vmul.f32 %v8923_v60, %v1252_v33  ;;  %v1253_v58 = vmax.f32 %v1193_v34, 0.0  ;;  %7422 = vmatpush3.bf16.msra.mxu1 %v8932_v63  ;;  %v7187_v24 = vpop.f32.mrb[16].mxu0  ;;  %7298 = vmatpush3.bf16.msra.mxu0 %v8408_v42  ;;  %v8403_v33 = vld [vmem:[%s10647_s5 + $0xd8] sm:$0xff]  }
 0x123   : > { %1674 = vst [vmem:[#allocation2 + $0x70] sm:$0xff] %v1614_v38  ;;  %v9094_v54 = vmul.f32 %v8934_v0, %v1255_v39  ;;  %v1131_v35 = vmul.f32 %v7187_v24, %v9026_v43  ;;  %v931_v51 = vpop.f32.mrb[17].mxu0  ;;  %7423 = vmatprep.subr.bf16.mxu1 %v8401_v56  ;;  %7299 = vmatprep.subr.bf16.mxu0 %v8410_v45  ;;  %v2447_v53 = vld [vmem:[#allocation2 + $0x39] sm:$0xff] }
 0x124   : > { %1672 = vst [vmem:[#allocation2 + $0x60] sm:$0xff] %v1612_v46  ;;  %v1613_v60 = vmul.f32 %v8925_v61, %v1253_v58  ;;  %v1129_v63 = vmul.f32 %v9026_v43, %v931_v51  ;;  %v7188_v59 = vpop.f32.mrb[18].mxu0  ;;  %v2450_v42 = vld [vmem:[#allocation2 + $0x51] sm:$0xff]  ;;  %v1860_v49 = vpack.c.bf16 %v1612_v46, %v9069_v50  ;;  %v8411_v50 = vld [vmem:[%s10647_s5 + $0x20] sm:$0xff]   ;;  %v8412_v58 = vld [vmem:[%s10647_s5 + $0x28] sm:$0xff]  }
 0x125   : > { %1675 = vst [vmem:[#allocation2 + $0x78] sm:$0xff] %v9094_v54  ;;  %v1198_v0 = vadd.f32 %v9033_v48, %v1131_v35  ;;  %v1132_v36 = vmul.f32 %v7188_v59, %v9026_v43  ;;  %v934_v40 = vpop.f32.mrb[19].mxu0  ;;  %v2448_v37 = vld [vmem:[#allocation2 + $0x41] sm:$0xff]  ;;  %v2449_v44 = vld [vmem:[#allocation2 + $0x49] sm:$0xff] }
 0x126   : > { %1673 = vst [vmem:[#allocation2 + $0x68] sm:$0xff] %v1613_v60  ;;  %v1196_v57 = vadd.f32 %v9033_v48, %v1129_v63  ;;  %v1130_v61 = vmul.f32 %v9026_v43, %v934_v40  ;;  %v2493_v47 = vpack.c.bf16 %v2448_v37, %v2447_v53  ;;  %v2494_v31 = vpack.c.bf16 %v2450_v42, %v2449_v44 }
 0x127   : > { %7424 = vmatpush3.bf16.msra.mxu1 %v8401_v56  ;;  %v1258_v52 = vmax.f32 %v1198_v0, 0.0  ;;  %v1199_v41 = vadd.f32 %v9033_v48, %v1132_v36  ;;  %7253 = vmatprep.mubr.bf16.mxu0 %v1860_v49  ;;  %v1861_v55 = vpack.c.bf16 %v1614_v38, %v1613_v60  ;;  %v9133_v49 = vld [vmem:[#allocation2 + $0x51] sm:$0xff] }
 0x128   : > { %7425 = vmatprep.subr.bf16.mxu1 %v8402_v62  ;;  %v1256_v34 = vmax.f32 %v1196_v57, 0.0  ;;  %v1197_v39 = vadd.f32 %v9033_v48, %v1130_v61  ;;  %7377 = vmatprep.mubr.bf16.mxu1 %v2493_v47 }
 0x129   : > { %7300 = vmatpush3.bf16.msra.mxu0 %v8410_v45  ;;  %v1618_v56 = vmul.f32 %v8941_v3, %v1258_v52  ;;  %v1259_v46 = vmax.f32 %v1199_v41, 0.0  ;;  %7378 = vmatmul.mubr.bf16.gmra.mrb[4].mxu1 %v2494_v31  ;;  %v8414_v41 = vld [vmem:[%s10647_s5 + $0x30] sm:$0xff]  }
 0x12a   : > { %7254 = vmatmul.mubr.bf16.gmra.mrb[68].mxu0 %v1861_v55  ;;  %v1616_v38 = vmul.f32 %v8937_v1, %v1256_v34  ;;  %v1257_v24 = vmax.f32 %v1197_v39, 0.0  ;;  %v7191_v35 = vpop.f32.mrb[20].mxu0  ;;  %7301 = vmatprep.subr.bf16.mxu0 %v8411_v50  ;;  %v8405_v39 = vld [vmem:[%s10647_s5 + $0xe8] sm:$0xff]  }
 0x12b   : > { %7426 = vmatpush3.bf16.msra.mxu1 %v8402_v62  ;;  %1678 = vst [vmem:[#allocation2 + $0x90] sm:$0xff] %v1618_v56  ;;  %v9122_v51 = vmul.f32 %v8943_v4, %v1259_v46  ;;  %v1135_v45 = vmul.f32 %v7191_v35, %v9026_v43  ;;  %v947_v3 = vpop.f32.mrb[21].mxu0  ;;  %v9125_v60 = vld [vmem:[#allocation2 + $0x59] sm:$0xff] }
 0x12c   : > { %7427 = vmatprep.subr.bf16.mxu1 %v8403_v33  ;;  %1676 = vst [vmem:[#allocation2 + $0x80] sm:$0xff] %v1616_v38  ;;  %v1617_v63 = vmul.f32 %v8939_v2, %v1257_v24  ;;  %v1133_v59 = vmul.f32 %v9026_v43, %v947_v3  ;;  %v7192_v1 = vpop.f32.mrb[22].mxu0  ;;  %v2454_v42 = vld [vmem:[#allocation2 + $0x71] sm:$0xff]  ;;  %v1862_v62 = vpack.c.bf16 %v1616_v38, %v9094_v54  ;;  %v8404_v4 = vld [vmem:[%s10647_s5 + $0xe0] sm:$0xff]  }
 0x12d   : > { %7302 = vmatpush3.bf16.msra.mxu0 %v8411_v50  ;;  %1679 = vst [vmem:[#allocation2 + $0x98] sm:$0xff] %v9122_v51  ;;  %v1202_v0 = vadd.f32 %v9033_v48, %v1135_v45  ;;  %v1136_v36 = vmul.f32 %v7192_v1, %v9026_v43  ;;  %v950_v2 = vpop.f32.mrb[23].mxu0  ;;  %v2451_v40 = vld [vmem:[#allocation2 + $0x59] sm:$0xff]  ;;  %v2452_v53 = vld [vmem:[#allocation2 + $0x61] sm:$0xff]  ;;  %v2453_v37 = vld [vmem:[#allocation2 + $0x69] sm:$0xff] }
 0x12e   : > { %7303 = vmatprep.subr.bf16.mxu0 %v8412_v58  ;;  %1677 = vst [vmem:[#allocation2 + $0x88] sm:$0xff] %v1617_v63  ;;  %v1200_v44 = vadd.f32 %v9033_v48, %v1133_v59  ;;  %v1134_v57 = vmul.f32 %v9026_v43, %v950_v2  ;;  %v2495_v61 = vpack.c.bf16 %v2452_v53, %v2451_v40  ;;  %v9150_v46 = vld [vmem:[#allocation2 + $0x61] sm:$0xff]  ;;  %v9152_v38 = vld [vmem:[#allocation2 + $0x69] sm:$0xff] }
 0x12f   : > { %v2496_v47 = vpack.c.bf16 %v2454_v42, %v2453_v37  ;;  %7257 = vmatprep.mubr.bf16.mxu0 %v1862_v62  ;;  %v1262_v31 = vmax.f32 %v1202_v0, 0.0  ;;  %v1203_v50 = vadd.f32 %v9033_v48, %v1136_v36  ;;  %v1863_v52 = vpack.c.bf16 %v1618_v56, %v1617_v63  ;;  %7428 = vmatpush3.bf16.msra.mxu1 %v8403_v33  ;;  %v9170_v0 = vld [vmem:[#allocation2 + $0x71] sm:$0xff] }
 0x130   : > { %v1260_v55 = vmax.f32 %v1200_v44, 0.0  ;;  %v1201_v34 = vadd.f32 %v9033_v48, %v1134_v57  ;;  %7381 = vmatprep.mubr.bf16.mxu1 %v2495_v61  ;;  %7429 = vmatprep.subr.bf16.mxu1 %v8404_v4  ;;  %10683 = vst [vmem:[#allocation16_spill] sm:$0xff] %v9170_v0 }
 0x131   : > { %v1622_v56 = vmul.f32 %v8949_v7, %v1262_v31  ;;  %v1263_v33 = vmax.f32 %v1203_v50, 0.0  ;;  %7382 = vmatmul.mubr.bf16.gmra.mrb[8].mxu1 %v2496_v47  ;;  %7304 = vmatpush3.bf16.msra.mxu0 %v8412_v58  ;;  %v8415_v31 = vld [vmem:[%s10647_s5 + $0x38] sm:$0xff]  }
 0x132   : > { %7258 = vmatmul.mubr.bf16.gmra.mrb[72].mxu0 %v1863_v52  ;;  %v1620_v24 = vmul.f32 %v8945_v5, %v1260_v55  ;;  %v1261_v35 = vmax.f32 %v1201_v34, 0.0  ;;  %v7195_v45 = vpop.f32.mrb[24].mxu0  ;;  %7305 = vmatprep.subr.bf16.mxu0 %v8414_v41 }
 0x133   : > { %1682 = vst [vmem:[#allocation2 + $0xb0] sm:$0xff] %v1622_v56  ;;  %v9157_v3 = vmul.f32 %v8951_v8, %v1263_v33  ;;  %v1139_v63 = vmul.f32 %v7195_v45, %v9026_v43  ;;  %v963_v59 = vpop.f32.mrb[25].mxu0  ;;  %7430 = vmatpush3.bf16.msra.mxu1 %v8404_v4  ;;  %v9160_v1 = vld [vmem:[#allocation2 + $0x79] sm:$0xff]  ;;  %v8409_v4 = vld [vmem:[%s10647_s5 + $0xf0] sm:$0xff]  }
 0x134   : > { %10682 = vst [vmem:[#allocation15_spill] sm:$0xff] %v9160_v1  ;;  %1680 = vst [vmem:[#allocation2 + $0xa0] sm:$0xff] %v1620_v24  ;;  %v1621_v5 = vmul.f32 %v8947_v6, %v1261_v35  ;;  %v1137_v42 = vmul.f32 %v9026_v43, %v963_v59  ;;  %v7196_v58 = vpop.f32.mrb[26].mxu0  ;;  %v2458_v62 = vld [vmem:[#allocation2 + $0x91] sm:$0xff]  ;;  %v1864_v8 = vpack.c.bf16 %v1620_v24, %v9122_v51  ;;  %7431 = vmatprep.subr.bf16.mxu1 %v8405_v39  ;;  %v2455_v40 = vld [vmem:[#allocation2 + $0x79] sm:$0xff] }
 0x135   : > { %1683 = vst [vmem:[#allocation2 + $0xb8] sm:$0xff] %v9157_v3  ;;  %v1206_v36 = vadd.f32 %v9033_v48, %v1139_v63  ;;  %v1140_v2 = vmul.f32 %v7196_v58, %v9026_v43  ;;  %v966_v6 = vpop.f32.mrb[27].mxu0  ;;  %v2456_v53 = vld [vmem:[#allocation2 + $0x81] sm:$0xff]  ;;  %v2457_v37 = vld [vmem:[#allocation2 + $0x89] sm:$0xff]  ;;  %7306 = vmatpush3.bf16.msra.mxu0 %v8414_v41  ;;  %v8413_v24 = vld [vmem:[%s10647_s5 + $0xf8] sm:$0xff]  }
 0x136   : > { %1681 = vst [vmem:[#allocation2 + $0xa8] sm:$0xff] %v1621_v5  ;;  %v1204_v44 = vadd.f32 %v9033_v48, %v1137_v42  ;;  %v1138_v57 = vmul.f32 %v9026_v43, %v966_v6  ;;  %v2497_v61 = vpack.c.bf16 %v2456_v53, %v2455_v40  ;;  %v2498_v47 = vpack.c.bf16 %v2458_v62, %v2457_v37  ;;  %v9187_v35 = vld [vmem:[#allocation2 + $0x81] sm:$0xff]  ;;  %v9189_v45 = vld [vmem:[#allocation2 + $0x89] sm:$0xff]  ;;  %v9214_v40 = vld [vmem:[#allocation2 + $0x91] sm:$0xff] }
 0x137   : > { %7261 = vmatprep.mubr.bf16.mxu0 %v1864_v8  ;;  %v1266_v50 = vmax.f32 %v1206_v36, 0.0  ;;  %v1207_v52 = vadd.f32 %v9033_v48, %v1140_v2  ;;  %v1865_v55 = vpack.c.bf16 %v1622_v56, %v1621_v5  ;;  %7432 = vmatpush3.bf16.msra.mxu1 %v8405_v39  ;;  %10684 = vst [vmem:[#allocation17_spill] sm:$0xff] %v9187_v35  ;;  %10685 = vst [vmem:[#allocation18_spill] sm:$0xff] %v9189_v45  ;;  %v9195_v41 = vld [vmem:[%s10647_s5 + $0x200] sm:$0xff]   ;;  %v8477_v1 = vld [vmem:[#allocation2 + $0x69] sm:$0xff] }
 0x138   : > { %v1264_v34 = vmax.f32 %v1204_v44, 0.0  ;;  %v1205_v33 = vadd.f32 %v9033_v48, %v1138_v57  ;;  %7385 = vmatprep.mubr.bf16.mxu1 %v2497_v61  ;;  %7433 = vmatprep.subr.bf16.mxu1 %v8409_v4  ;;  %10687 = vst [vmem:[#allocation20_spill] sm:$0xff] %v9214_v40 }
 0x139   : > { %v1626_v63 = vmul.f32 %v8957_v11, %v1266_v50  ;;  %v1267_v59 = vmax.f32 %v1207_v52, 0.0  ;;  %7386 = vmatmul.mubr.bf16.gmra.mrb[12].mxu1 %v2498_v47  ;;  %7307 = vmatprep.subr.bf16.mxu0 %v8415_v31 }
 0x13a   : > { %7262 = vmatmul.mubr.bf16.gmra.mrb[76].mxu0 %v1865_v55  ;;  %v1624_v39 = vmul.f32 %v8953_v9, %v1264_v34  ;;  %v1265_v56 = vmax.f32 %v1205_v33, 0.0  ;;  %v7199_v5 = vpop.f32.mrb[28].mxu0 }
 0x13b   : > { %1686 = vst [vmem:[#allocation2 + $0xd0] sm:$0xff] %v1626_v63  ;;  %v9199_v42 = vmul.f32 %v8959_v12, %v1267_v59  ;;  %v1143_v58 = vmul.f32 %v7199_v5, %v9026_v43  ;;  %v979_v11 = vpop.f32.mrb[29].mxu0  ;;  %7434 = vmatpush3.bf16.msra.mxu1 %v8409_v4  ;;  %7308 = vmatpush3.bf16.msra.mxu0 %v8415_v31  ;;  %v9202_v62 = vld [vmem:[#allocation2 + $0x99] sm:$0xff] }
 0x13c   : > { %10686 = vst [vmem:[#allocation19_spill] sm:$0xff] %v9202_v62  ;;  %1684 = vst [vmem:[#allocation2 + $0xc0] sm:$0xff] %v1624_v39  ;;  %v1625_v9 = vmul.f32 %v8955_v10, %v1265_v56  ;;  %v1141_v36 = vmul.f32 %v9026_v43, %v979_v11  ;;  %v7200_v2 = vpop.f32.mrb[30].mxu0  ;;  %v2462_v6 = vld [vmem:[#allocation2 + $0xb1] sm:$0xff]  ;;  %v1866_v12 = vpack.c.bf16 %v1624_v39, %v9157_v3  ;;  %7435 = vmatprep.subr.bf16.mxu1 %v8413_v24  ;;  %v9212_v4 = vld [vmem:[%s10647_s5 + $0x100] sm:$0xff]  }
 0x13d   : > { %1687 = vst [vmem:[#allocation2 + $0xd8] sm:$0xff] %v9199_v42  ;;  %v1210_v53 = vadd.f32 %v9033_v48, %v1143_v58  ;;  %v1144_v10 = vmul.f32 %v7200_v2, %v9026_v43  ;;  %v982_v37 = vpop.f32.mrb[31].mxu0  ;;  %v2459_v44 = vld [vmem:[#allocation2 + $0x99] sm:$0xff]  ;;  %v2460_v57 = vld [vmem:[#allocation2 + $0xa1] sm:$0xff]  ;;  %v2461_v61 = vld [vmem:[#allocation2 + $0xa9] sm:$0xff]  ;;  %7741 = vmatprep.subr.bf16.mxu0 %v9195_v41 }
 0x13e   : > { %1685 = vst [vmem:[#allocation2 + $0xc8] sm:$0xff] %v1625_v9  ;;  %v1208_v47 = vadd.f32 %v9033_v48, %v1141_v36  ;;  %v1142_v31 = vmul.f32 %v9026_v43, %v982_v37  ;;  %v2499_v50 = vpack.c.bf16 %v2460_v57, %v2459_v44  ;;  %v2500_v52 = vpack.c.bf16 %v2462_v6, %v2461_v61  ;;  %v9227_v56 = vld [vmem:[#allocation2 + $0xa1] sm:$0xff]  ;;  %v9229_v5 = vld [vmem:[#allocation2 + $0xa9] sm:$0xff]  ;;  %v9244_v57 = vld [vmem:[#allocation2 + $0xb1] sm:$0xff] }
 0x13f   : > { %7265 = vmatprep.mubr.bf16.mxu0 %v1866_v12  ;;  %v1270_v55 = vmax.f32 %v1210_v53, 0.0  ;;  %v1211_v34 = vadd.f32 %v9033_v48, %v1144_v10  ;;  %v1867_v33 = vpack.c.bf16 %v1626_v63, %v1625_v9  ;;  %7436 = vmatpush3.bf16.msra.mxu1 %v8413_v24  ;;  %10688 = vst [vmem:[#allocation21_spill] sm:$0xff] %v9227_v56  ;;  %10689 = vst [vmem:[#allocation22_spill] sm:$0xff] %v9229_v5  ;;  %v10701_v3 = vld [vmem:[#allocation11_spill] sm:$0xff]  ;;  %v2862_v56 = vld [vmem:[#allocation2 + $0x77] sm:$0xff] }
 0x140   : > { %v1268_v59 = vmax.f32 %v1208_v47, 0.0  ;;  %v1209_v39 = vadd.f32 %v9033_v48, %v1142_v31  ;;  %7389 = vmatprep.mubr.bf16.mxu1 %v2499_v50  ;;  %7485 = vmatprep.subr.bf16.mxu1 %v9212_v4  ;;  %10691 = vst [vmem:[#allocation24_spill] sm:$0xff] %v9244_v57  ;;  %v8419_v5 = vld [vmem:[%s10647_s5 + $0x118] sm:$0xff]  }
 0x141   : > { %v1630_v58 = vmul.f32 %v8965_v15, %v1270_v55  ;;  %v1271_v11 = vmax.f32 %v1211_v34, 0.0  ;;  %7390 = vmatmul.mubr.bf16.gmra.mrb[16].mxu1 %v2500_v52 }
 0x142   : > { %7266 = vmatmul.mubr.bf16.gmra.mrb[80].mxu0 %v1867_v33  ;;  %v1628_v36 = vmul.f32 %v8961_v13, %v1268_v59  ;;  %v1269_v2 = vmax.f32 %v1209_v39, 0.0  ;;  %v7203_v63 = vpop.f32.mrb[32].mxu0 }
 0x143   : > { %1690 = vst [vmem:[#allocation2 + $0xf0] sm:$0xff] %v1630_v58  ;;  %v9234_v24 = vmul.f32 %v8967_v16, %v1271_v11  ;;  %v1147_v9 = vmul.f32 %v7203_v63, %v9026_v43  ;;  %v995_v6 = vpop.f32.mrb[33].mxu0  ;;  %v9237_v12 = vld [vmem:[#allocation2 + $0xb9] sm:$0xff] }
 0x144   : > { %10690 = vst [vmem:[#allocation23_spill] sm:$0xff] %v9237_v12  ;;  %1688 = vst [vmem:[#allocation2 + $0xe0] sm:$0xff] %v1628_v36  ;;  %v1629_v15 = vmul.f32 %v8963_v14, %v1269_v2  ;;  %v1145_v10 = vmul.f32 %v9026_v43, %v995_v6  ;;  %v7204_v13 = vpop.f32.mrb[34].mxu0  ;;  %v2466_v37 = vld [vmem:[#allocation2 + $0xd1] sm:$0xff]  ;;  %v1868_v44 = vpack.c.bf16 %v1628_v36, %v9199_v42  ;;  %v2463_v31 = vld [vmem:[#allocation2 + $0xb9] sm:$0xff] }
 0x145   : > { %1691 = vst [vmem:[#allocation2 + $0xf8] sm:$0xff] %v9234_v24  ;;  %v1214_v16 = vadd.f32 %v9033_v48, %v1147_v9  ;;  %v1148_v61 = vmul.f32 %v7204_v13, %v9026_v43  ;;  %v998_v47 = vpop.f32.mrb[35].mxu0  ;;  %v2464_v50 = vld [vmem:[#allocation2 + $0xc1] sm:$0xff]  ;;  %v2465_v52 = vld [vmem:[#allocation2 + $0xc9] sm:$0xff] }
 0x146   : > { %1689 = vst [vmem:[#allocation2 + $0xe8] sm:$0xff] %v1629_v15  ;;  %v1212_v55 = vadd.f32 %v9033_v48, %v1145_v10  ;;  %v1146_v42 = vmul.f32 %v9026_v43, %v998_v47  ;;  %v2501_v34 = vpack.c.bf16 %v2464_v50, %v2463_v31  ;;  %v2502_v33 = vpack.c.bf16 %v2466_v37, %v2465_v52  ;;  %v9255_v63 = vld [vmem:[#allocation2 + $0xc1] sm:$0xff]  ;;  %v9257_v9 = vld [vmem:[#allocation2 + $0xc9] sm:$0xff] }
 0x147   : > { %7269 = vmatprep.mubr.bf16.mxu0 %v1868_v44  ;;  %v1274_v59 = vmax.f32 %v1214_v16, 0.0  ;;  %v1215_v39 = vadd.f32 %v9033_v48, %v1148_v61  ;;  %v1869_v11 = vpack.c.bf16 %v1630_v58, %v1629_v15  ;;  %10692 = vst [vmem:[#allocation25_spill] sm:$0xff] %v9255_v63  ;;  %10693 = vst [vmem:[#allocation26_spill] sm:$0xff] %v9257_v9 }
 0x148   : > { %v1272_v36 = vmax.f32 %v1212_v55, 0.0  ;;  %v1213_v2 = vadd.f32 %v9033_v48, %v1146_v42  ;;  %7393 = vmatprep.mubr.bf16.mxu1 %v2501_v34  ;;  %v9272_v55 = vld [vmem:[#allocation2 + $0xd1] sm:$0xff] }
 0x149   : > { %v1634_v6 = vmul.f32 %v8973_v19, %v1274_v59  ;;  %v1275_v10 = vmax.f32 %v1215_v39, 0.0  ;;  %7394 = vmatmul.mubr.bf16.gmra.mrb[20].mxu1 %v2502_v33 }
 0x14a   : > { %7270 = vmatmul.mubr.bf16.gmra.mrb[84].mxu0 %v1869_v11  ;;  %v1632_v13 = vmul.f32 %v8969_v17, %v1272_v36  ;;  %v1273_v37 = vmax.f32 %v1213_v2, 0.0  ;;  %v7207_v44 = vpop.f32.mrb[36].mxu0 }
 0x14b   : > { %1694 = vst [vmem:[#allocation2 + $0x110] sm:$0xff] %v1634_v6  ;;  %v9262_v58 = vmul.f32 %v8975_v20, %v1275_v10  ;;  %v1151_v15 = vmul.f32 %v7207_v44, %v9026_v43  ;;  %v1011_v16 = vpop.f32.mrb[37].mxu0  ;;  %v9265_v61 = vld [vmem:[#allocation2 + $0xd9] sm:$0xff] }
 0x14c   : > { %10694 = vst [vmem:[#allocation27_spill] sm:$0xff] %v9265_v61  ;;  %1692 = vst [vmem:[#allocation2 + $0x100] sm:$0xff] %v1632_v13  ;;  %v1633_v19 = vmul.f32 %v8971_v18, %v1273_v37  ;;  %v1149_v31 = vmul.f32 %v9026_v43, %v1011_v16  ;;  %v7208_v17 = vpop.f32.mrb[38].mxu0  ;;  %v2470_v50 = vld [vmem:[#allocation2 + $0xf1] sm:$0xff]  ;;  %v1870_v52 = vpack.c.bf16 %v1632_v13, %v9234_v24  ;;  %v2467_v33 = vld [vmem:[#allocation2 + $0xd9] sm:$0xff] }
 0x14d   : > { %1695 = vst [vmem:[#allocation2 + $0x118] sm:$0xff] %v9262_v58  ;;  %v1218_v20 = vadd.f32 %v9033_v48, %v1151_v15  ;;  %v1152_v42 = vmul.f32 %v7208_v17, %v9026_v43  ;;  %v1014_v34 = vpop.f32.mrb[39].mxu0  ;;  %v2468_v59 = vld [vmem:[#allocation2 + $0xe1] sm:$0xff]  ;;  %v2469_v39 = vld [vmem:[#allocation2 + $0xe9] sm:$0xff] }
 0x14e   : > { %1693 = vst [vmem:[#allocation2 + $0x108] sm:$0xff] %v1633_v19  ;;  %v1216_v11 = vadd.f32 %v9033_v48, %v1149_v31  ;;  %v1150_v24 = vmul.f32 %v9026_v43, %v1014_v34  ;;  %v2503_v36 = vpack.c.bf16 %v2468_v59, %v2467_v33  ;;  %v2504_v2 = vpack.c.bf16 %v2470_v50, %v2469_v39  ;;  %v9283_v16 = vld [vmem:[#allocation2 + $0xe1] sm:$0xff]  ;;  %v9285_v17 = vld [vmem:[#allocation2 + $0xe9] sm:$0xff] }
 0x14f   : > { %7273 = vmatprep.mubr.bf16.mxu0 %v1870_v52  ;;  %v1278_v10 = vmax.f32 %v1218_v20, 0.0  ;;  %v1219_v13 = vadd.f32 %v9033_v48, %v1152_v42  ;;  %v1871_v37 = vpack.c.bf16 %v1634_v6, %v1633_v19 }
 0x150   : > { %v1276_v44 = vmax.f32 %v1216_v11, 0.0  ;;  %v1217_v15 = vadd.f32 %v9033_v48, %v1150_v24  ;;  %7397 = vmatprep.mubr.bf16.mxu1 %v2503_v36  ;;  %v9300_v24 = vld [vmem:[#allocation2 + $0xf1] sm:$0xff] }
 0x151   : > { %v1638_v18 = vmul.f32 %v8981_v23, %v1278_v10  ;;  %v1279_v31 = vmax.f32 %v1219_v13, 0.0  ;;  %7398 = vmatmul.mubr.bf16.gmra.mrb[24].mxu1 %v2504_v2 }
 0x152   : > { %7274 = vmatmul.mubr.bf16.gmra.mrb[88].mxu0 %v1871_v37  ;;  %v1636_v50 = vmul.f32 %v8977_v21, %v1276_v44  ;;  %v1277_v52 = vmax.f32 %v1217_v15, 0.0  ;;  %v7211_v20 = vpop.f32.mrb[40].mxu0 }
 0x153   : > { %1698 = vst [vmem:[#allocation2 + $0x130] sm:$0xff] %v1638_v18  ;;  %v9290_v6 = vmul.f32 %v8988_v25, %v1279_v31  ;;  %v1155_v19 = vmul.f32 %v7211_v20, %v9026_v43  ;;  %v1027_v42 = vpop.f32.mrb[41].mxu0  ;;  %v9293_v34 = vld [vmem:[#allocation2 + $0xf9] sm:$0xff] }
 0x154   : > { %1696 = vst [vmem:[#allocation2 + $0x120] sm:$0xff] %v1636_v50  ;;  %v1637_v23 = vmul.f32 %v8979_v22, %v1277_v52  ;;  %v1153_v59 = vmul.f32 %v9026_v43, %v1027_v42  ;;  %v7212_v21 = vpop.f32.mrb[42].mxu0  ;;  %v2474_v39 = vld [vmem:[#allocation2 + $0x111] sm:$0xff]  ;;  %v1872_v11 = vpack.c.bf16 %v1636_v50, %v9262_v58  ;;  %v2471_v10 = vld [vmem:[#allocation2 + $0xf9] sm:$0xff] }
 0x155   : > { %1699 = vst [vmem:[#allocation2 + $0x138] sm:$0xff] %v9290_v6  ;;  %v1222_v25 = vadd.f32 %v9033_v48, %v1155_v19  ;;  %v1156_v36 = vmul.f32 %v7212_v21, %v9026_v43  ;;  %v1030_v2 = vpop.f32.mrb[43].mxu0  ;;  %v2472_v13 = vld [vmem:[#allocation2 + $0x101] sm:$0xff]  ;;  %v2473_v37 = vld [vmem:[#allocation2 + $0x109] sm:$0xff] }
 0x156   : > { %1697 = vst [vmem:[#allocation2 + $0x128] sm:$0xff] %v1637_v23  ;;  %v1220_v44 = vadd.f32 %v9033_v48, %v1153_v59  ;;  %v1154_v58 = vmul.f32 %v9026_v43, %v1030_v2  ;;  %v2505_v15 = vpack.c.bf16 %v2472_v13, %v2471_v10  ;;  %v2506_v31 = vpack.c.bf16 %v2474_v39, %v2473_v37  ;;  %v9311_v21 = vld [vmem:[#allocation2 + $0x101] sm:$0xff]  ;;  %v9313_v33 = vld [vmem:[#allocation2 + $0x109] sm:$0xff] }
 0x157   : > { %7277 = vmatprep.mubr.bf16.mxu0 %v1872_v11  ;;  %v1282_v50 = vmax.f32 %v1222_v25, 0.0  ;;  %v1223_v52 = vadd.f32 %v9033_v48, %v1156_v36  ;;  %v1873_v20 = vpack.c.bf16 %v1638_v18, %v1637_v23 }
 0x158   : > { %v1280_v19 = vmax.f32 %v1220_v44, 0.0  ;;  %v1221_v42 = vadd.f32 %v9033_v48, %v1154_v58  ;;  %7401 = vmatprep.mubr.bf16.mxu1 %v2505_v15  ;;  %v9328_v58 = vld [vmem:[#allocation2 + $0x111] sm:$0xff] }
 0x159   : > { %v1642_v22 = vmul.f32 %v8995_v28, %v1282_v50  ;;  %v1283_v59 = vmax.f32 %v1223_v52, 0.0  ;;  %7402 = vmatmul.mubr.bf16.gmra.mrb[28].mxu1 %v2506_v31 }
 0x15a   : > { %7278 = vmatmul.mubr.bf16.gmra.mrb[92].mxu0 %v1873_v20  ;;  %v1640_v39 = vmul.f32 %v8990_v26, %v1280_v19  ;;  %v1281_v11 = vmax.f32 %v1221_v42, 0.0  ;;  %v7215_v25 = vpop.f32.mrb[44].mxu0 }
 0x15b   : > { %1702 = vst [vmem:[#allocation2 + $0x150] sm:$0xff] %v1642_v22  ;;  %v9318_v18 = vmul.f32 %v8997_v29, %v1283_v59  ;;  %v1159_v23 = vmul.f32 %v7215_v25, %v9026_v43  ;;  %v1043_v36 = vpop.f32.mrb[45].mxu0  ;;  %v9321_v2 = vld [vmem:[#allocation2 + $0x119] sm:$0xff] }
 0x15c   : > { %1700 = vst [vmem:[#allocation2 + $0x140] sm:$0xff] %v1640_v39  ;;  %v1641_v28 = vmul.f32 %v8993_v27, %v1281_v11  ;;  %v1157_v13 = vmul.f32 %v9026_v43, %v1043_v36  ;;  %v7216_v26 = vpop.f32.mrb[46].mxu0  ;;  %v2478_v37 = vld [vmem:[#allocation2 + $0x131] sm:$0xff]  ;;  %v1874_v44 = vpack.c.bf16 %v1640_v39, %v9290_v6  ;;  %v2475_v50 = vld [vmem:[#allocation2 + $0x119] sm:$0xff] }
 0x15d   : > { %1703 = vst [vmem:[#allocation2 + $0x158] sm:$0xff] %v9318_v18  ;;  %v1226_v29 = vadd.f32 %v9033_v48, %v1159_v23  ;;  %v1160_v15 = vmul.f32 %v7216_v26, %v9026_v43  ;;  %v1046_v31 = vpop.f32.mrb[47].mxu0  ;;  %v2476_v52 = vld [vmem:[#allocation2 + $0x121] sm:$0xff]  ;;  %v2477_v20 = vld [vmem:[#allocation2 + $0x129] sm:$0xff] }
 0x15e   : > { %1701 = vst [vmem:[#allocation2 + $0x148] sm:$0xff] %v1641_v28  ;;  %v1224_v19 = vadd.f32 %v9033_v48, %v1157_v13  ;;  %v1158_v6 = vmul.f32 %v9026_v43, %v1046_v31  ;;  %v2507_v42 = vpack.c.bf16 %v2476_v52, %v2475_v50  ;;  %v2508_v59 = vpack.c.bf16 %v2478_v37, %v2477_v20  ;;  %v9339_v26 = vld [vmem:[#allocation2 + $0x121] sm:$0xff]  ;;  %v9341_v10 = vld [vmem:[#allocation2 + $0x129] sm:$0xff] }
 0x15f   : > { %7281 = vmatprep.mubr.bf16.mxu0 %v1874_v44  ;;  %v1286_v39 = vmax.f32 %v1226_v29, 0.0  ;;  %v1227_v11 = vadd.f32 %v9033_v48, %v1160_v15  ;;  %v1875_v25 = vpack.c.bf16 %v1642_v22, %v1641_v28  ;;  %v10695_v15 = vld [vmem:[#allocation4_spill] sm:$0xff] }
 0x160   : > { %v1284_v23 = vmax.f32 %v1224_v19, 0.0  ;;  %v1225_v36 = vadd.f32 %v9033_v48, %v1158_v6  ;;  %7405 = vmatprep.mubr.bf16.mxu1 %v2507_v42 }
 0x161   : > { %v1646_v27 = vmul.f32 %v9003_v32, %v1286_v39  ;;  %v1287_v13 = vmax.f32 %v1227_v11, 0.0  ;;  %7406 = vmatmul.mubr.bf16.gmra.mrb[32].mxu1 %v2508_v59  ;;  %v10696_v32 = vld [vmem:[#allocation3_spill] sm:$0xff]  ;;  %v9356_v59 = vld [vmem:[#allocation2 + $0x131] sm:$0xff] }
 0x162   : > { %7282 = vmatmul.mubr.bf16.gmra.mrb[96].mxu0 %v1875_v25  ;;  %v1644_v37 = vmul.f32 %v8999_v30, %v1284_v23  ;;  %v1285_v44 = vmax.f32 %v1225_v36, 0.0  ;;  %v7219_v29 = vpop.f32.mrb[48].mxu0  ;;  %v9459_v7 = vld [vmem:[#allocation2 + $0x150] sm:$0xff] }
 0x163   : > { %1706 = vst [vmem:[#allocation2 + $0x170] sm:$0xff] %v1646_v27  ;;  %v9346_v22 = vmul.f32 %v10695_v15, %v1287_v13  ;;  %v1163_v28 = vmul.f32 %v7219_v29, %v9026_v43  ;;  %v1059_v31 = vpop.f32.mrb[49].mxu0  ;;  %v9349_v50 = vld [vmem:[#allocation2 + $0x139] sm:$0xff] }
 0x164   : > { %1704 = vst [vmem:[#allocation2 + $0x160] sm:$0xff] %v1644_v37  ;;  %v1645_v20 = vmul.f32 %v10696_v32, %v1285_v44  ;;  %v1161_v19 = vmul.f32 %v9026_v43, %v1059_v31  ;;  %v7220_v30 = vpop.f32.mrb[50].mxu0  ;;  %v2482_v6 = vld [vmem:[#allocation2 + $0x151] sm:$0xff]  ;;  %v1876_v42 = vpack.c.bf16 %v1644_v37, %v9318_v18  ;;  %v2479_v23 = vld [vmem:[#allocation2 + $0x139] sm:$0xff] }
 0x165   : > { %1707 = vst [vmem:[#allocation2 + $0x178] sm:$0xff] %v9346_v22  ;;  %v1230_v39 = vadd.f32 %v9033_v48, %v1163_v28  ;;  %v1164_v11 = vmul.f32 %v7220_v30, %v9026_v43  ;;  %v1062_v25 = vpop.f32.mrb[51].mxu0  ;;  %v2480_v36 = vld [vmem:[#allocation2 + $0x141] sm:$0xff]  ;;  %v2481_v13 = vld [vmem:[#allocation2 + $0x149] sm:$0xff]  ;;  %v9367_v18 = vld [vmem:[%s10645_s3] ss:$0 sm:$0xff] }
 0x166   : > { %1705 = vst [vmem:[#allocation2 + $0x168] sm:$0xff] %v1645_v20  ;;  %v1228_v29 = vadd.f32 %v9033_v48, %v1161_v19  ;;  %v1162_v37 = vmul.f32 %v9367_v18, %v1062_v25  ;;  %v2509_v15 = vpack.c.bf16 %v2480_v36, %v2479_v23  ;;  %v2510_v28 = vpack.c.bf16 %v2482_v6, %v2481_v13  ;;  %v9373_v31 = vld [vmem:[%s10646_s4] ss:$0 sm:$0xff]  ;;  %v9377_v44 = vld [vmem:[#allocation2 + $0x141] sm:$0xff]  ;;  %v9379_v52 = vld [vmem:[#allocation2 + $0x149] sm:$0xff] }
 0x167   : > { %7285 = vmatprep.mubr.bf16.mxu0 %v1876_v42  ;;  %v1290_v43 = vmax.f32 %v1230_v39, 0.0  ;;  %v1231_v32 = vadd.f32 %v9373_v31, %v1164_v11  ;;  %v1877_v30 = vpack.c.bf16 %v1646_v27, %v1645_v20  ;;  %v10697_v25 = vld [vmem:[#allocation7_spill] sm:$0xff]  ;;  %v10698_v39 = vld [vmem:[#allocation5_spill] sm:$0xff]  ;;  %v10699_v11 = vld [vmem:[#allocation8_spill] sm:$0xff] }
 0x168   : > { %v1288_v48 = vmax.f32 %v1228_v29, 0.0  ;;  %v1229_v19 = vadd.f32 %v9373_v31, %v1162_v37  ;;  %7409 = vmatprep.mubr.bf16.mxu1 %v2509_v15  ;;  %v10700_v15 = vld [vmem:[#allocation6_spill] sm:$0xff] }
 0x169   : > { %v1650_v6 = vmul.f32 %v10697_v25, %v1290_v43  ;;  %v1291_v42 = vmax.f32 %v1231_v32, 0.0  ;;  %7410 = vmatmul.mubr.bf16.gmra.mrb[36].mxu1 %v2510_v28 }
 0x16a   : > { %7286 = vmatmul.mubr.bf16.gmra.mrb[100].mxu0 %v1877_v30  ;;  %v1648_v23 = vmul.f32 %v10698_v39, %v1288_v48  ;;  %v1289_v36 = vmax.f32 %v1229_v19, 0.0  ;;  %v7223_v13 = vpop.f32.mrb[52].mxu0  ;;  %v1721_v48 = vld [vmem:[#allocation2 + $0x1f] sm:$0xff]  ;;  %v9469_v63 = vld [vmem:[#allocation2 + $0x170] sm:$0xff] }
 0x16b   : > { %1710 = vst [vmem:[#allocation2 + $0x190] sm:$0xff] %v1650_v6  ;;  %v1651_v27 = vmul.f32 %v10699_v11, %v1291_v42  ;;  %v1167_v20 = vmul.f32 %v9367_v18, %v7223_v13  ;;  %v1075_v29 = vpop.f32.mrb[53].mxu0  ;;  %v2483_v39 = vld [vmem:[#allocation2 + $0x159] sm:$0xff] }
 0x16c   : > { %1708 = vst [vmem:[#allocation2 + $0x180] sm:$0xff] %v1648_v23  ;;  %v1649_v47 = vmul.f32 %v10700_v15, %v1289_v36  ;;  %v1165_v43 = vmul.f32 %v9367_v18, %v1075_v29  ;;  %v7224_v28 = vpop.f32.mrb[54].mxu0  ;;  %v2486_v32 = vld [vmem:[#allocation2 + $0x171] sm:$0xff]  ;;  %v1878_v30 = vpack.c.bf16 %v1648_v23, %v9346_v22 }
 0x16d   : > { %1711 = vst [vmem:[#allocation2 + $0x198] sm:$0xff] %v1651_v27  ;;  %v1234_v19 = vadd.f32 %v9373_v31, %v1167_v20  ;;  %v1168_v25 = vmul.f32 %v9367_v18, %v7224_v28  ;;  %v1078_v42 = vpop.f32.mrb[55].mxu0  ;;  %v2484_v13 = vld [vmem:[#allocation2 + $0x161] sm:$0xff]  ;;  %v2485_v11 = vld [vmem:[#allocation2 + $0x169] sm:$0xff]  ;;  %v1720_v20 = vld [vmem:[#allocation2 + $0x17] sm:$0xff] }
 0x16e   : > { %1709 = vst [vmem:[#allocation2 + $0x188] sm:$0xff] %v1649_v47  ;;  %v1232_v37 = vadd.f32 %v9373_v31, %v1165_v43  ;;  %v1166_v36 = vmul.f32 %v9367_v18, %v1078_v42  ;;  %v9394_v29 = vpack.c.bf16 %v2484_v13, %v2483_v39  ;;  %v9396_v15 = vpack.c.bf16 %v2486_v32, %v2485_v11  ;;  %v10702_v32 = vld [vmem:[#allocation9_spill] sm:$0xff]  ;;  %v10704_v13 = vld [vmem:[#allocation10_spill] sm:$0xff] }
 0x16f   : > { %7289 = vmatprep.mubr.bf16.mxu0 %v1878_v30  ;;  %v1294_v22 = vmax.f32 %v1234_v19, 0.0  ;;  %v1235_v23 = vadd.f32 %v9373_v31, %v1168_v25  ;;  %v1879_v27 = vpack.c.bf16 %v1650_v6, %v1649_v47  ;;  %v1768_v53 = vpack.c.bf16 %v1721_v48, %v1720_v20  ;;  %v10703_v47 = vld [vmem:[#allocation12_spill] sm:$0xff]  ;;  %v2854_v39 = vld [vmem:[#allocation2 + $0x37] sm:$0xff] }
 0x170   : > { %v1292_v28 = vmax.f32 %v1232_v37, 0.0  ;;  %v1233_v14 = vadd.f32 %v9373_v31, %v1166_v36  ;;  %7413 = vmatprep.mubr.bf16.mxu1 %v9394_v29  ;;  %v2853_v25 = vld [vmem:[#allocation2 + $0x2f] sm:$0xff]  ;;  %v9471_v9 = vld [vmem:[#allocation2 + $0x178] sm:$0xff] }
 0x171   : > { %v1654_v43 = vmul.f32 %v10701_v3, %v1294_v22  ;;  %v1295_v8 = vmax.f32 %v1235_v23, 0.0  ;;  %7414 = vmatmul.mubr.bf16.gmra.mrb[40].mxu1 %v9396_v15  ;;  %v1722_v22 = vld [vmem:[#allocation2 + $0x27] sm:$0xff]  ;;  %v9407_v23 = vld [vmem:[#allocation2 + $0x3f] sm:$0xff] }
 0x172   : > { %7290 = vmatmul.mubr.bf16.gmra.mrb[104].mxu0 %v1879_v27  ;;  %v1652_v42 = vmul.f32 %v10702_v32, %v1292_v28  ;;  %v1293_v30 = vmax.f32 %v1233_v14, 0.0  ;;  %v7227_v19 = vpop.f32.mrb[56].mxu0  ;;  %v9484_v57 = vld [vmem:[#allocation2 + $0x190] sm:$0xff] }
 0x173   : > { %7309 = vmatprep.mubr.bf16.mxu0 %v1768_v53  ;;  %1714 = vst [vmem:[#allocation2 + $0x1b0] sm:$0xff] %v1654_v43  ;;  %v1655_v6 = vmul.f32 %v10703_v47, %v1295_v8  ;;  %v1091_v37 = vpop.f32.mrb[57].mxu0  ;;  %v2487_v27 = vld [vmem:[#allocation2 + $0x179] sm:$0xff] }
 0x174   : > { %1712 = vst [vmem:[#allocation2 + $0x1a0] sm:$0xff] %v1652_v42  ;;  %v1653_v48 = vmul.f32 %v10704_v13, %v1293_v30  ;;  %v1169_v3 = vmul.f32 %v9367_v18, %v1091_v37  ;;  %v7228_v11 = vpop.f32.mrb[58].mxu0  ;;  %v2490_v36 = vld [vmem:[#allocation2 + $0x191] sm:$0xff]  ;;  %v1769_v42 = vpack.c.bf16 %v2853_v25, %v1722_v22  ;;  %v1593_v30 = vpop.permute.xlu0 %1592  ;;  %v1770_v37 = vpack.c.bf16 %v9407_v23, %v2854_v39  ;;  %v8423_v13 = vld [vmem:[%s10647_s5 + $0x208] sm:$0xff]  }
 0x175   : > { %1715 = vst [vmem:[#allocation2 + $0x1b8] sm:$0xff] %v1655_v6  ;;  %v1094_v14 = vpop.f32.mrb[59].mxu0  ;;  %v2488_v53 = vld [vmem:[#allocation2 + $0x181] sm:$0xff]  ;;  %v2489_v20 = vld [vmem:[#allocation2 + $0x189] sm:$0xff]  ;;  %v2901_v6 = vpack.c.bf16 %v2854_v39, %v2853_v25  ;;  %v10706_v39 = vld [vmem:[#allocation14_spill] sm:$0xff] }
 0x176   : > { %1713 = vst [vmem:[#allocation2 + $0x1a8] sm:$0xff] %v1653_v48  ;;  %v1236_v8 = vadd.f32 %v9373_v31, %v1169_v3  ;;  %v1170_v28 = vmul.f32 %v9367_v18, %v1094_v14  ;;  %v9411_v43 = vpack.c.bf16 %v2488_v53, %v2487_v27  ;;  %v9413_v32 = vpack.c.bf16 %v2490_v36, %v2489_v20  ;;  %v1598_v18 = vpop.permute.xlu1 %1597  ;;  %v10705_v48 = vld [vmem:[#allocation13_spill] sm:$0xff]  ;;  %v2856_v36 = vld [vmem:[#allocation2 + $0x47] sm:$0xff]  ;;  %v9423_v14 = vld [vmem:[#allocation2 + $0x5f] sm:$0xff] }
 0x177   : > { %v2857_v22 = vld [vmem:[#allocation2 + $0x4f] sm:$0xff]  ;;  %v9452_v18 = vld [vmem:[#allocation2 + $0x160] sm:$0xff]  ;;  %v9486_v12 = vld [vmem:[#allocation2 + $0x198] sm:$0xff] }
 0x178   : > { %v1296_v19 = vmax.f32 %v1236_v8, 0.0  ;;  %v1237_v47 = vadd.f32 %v9373_v31, %v1170_v28  ;;  %7417 = vmatprep.mubr.bf16.mxu1 %v9411_v43  ;;  %v2858_v31 = vld [vmem:[#allocation2 + $0x57] sm:$0xff]  ;;  %v9430_v53 = vld [vmem:[#allocation2 + $0x108] sm:$0xff]  ;;  %v9434_v8 = vld [vmem:[#allocation2 + $0x120] sm:$0xff] }
 0x179   : > { %7418 = vmatmul.mubr.bf16.gmra.mrb[44].mxu1 %v9413_v32  ;;  %v8425_v25 = vld [vmem:[%s10647_s5 + $0x210] sm:$0xff]   ;;  %v9436_v28 = vld [vmem:[#allocation2 + $0x128] sm:$0xff]  ;;  %v1772_v51 = vpack.c.bf16 %v9423_v14, %v2858_v31 }
 0x17a   : > { %7310 = vmatmul.mubr.bf16.vlgmr.msra.gmra.mrb[60].mxu0 %v1769_v42  ;;  %v1656_v3 = vmul.f32 %v10705_v48, %v1296_v19  ;;  %v1297_v11 = vmax.f32 %v1237_v47, 0.0  ;;  %7437 = vmatprep.mubr.bf16.mxu1 %v2901_v6  ;;  %v9432_v20 = vld [vmem:[#allocation2 + $0x110] sm:$0xff]  ;;  %v9441_v42 = vld [vmem:[#allocation2 + $0x118] sm:$0xff]  ;;  %v9447_v47 = vld [vmem:[#allocation2 + $0x140] sm:$0xff] }
 0x17b   : > { %7313 = vmatprep.mubr.bf16.mxu0 %v1770_v37  ;;  %7742 = vmatpush3.bf16.msra.mxu0 %v9195_v41  ;;  %v8417_v41 = vld [vmem:[%s10647_s5 + $0x108] sm:$0xff]   ;;  %v9443_v30 = vld [vmem:[#allocation2 + $0x130] sm:$0xff]  ;;  %v9445_v19 = vld [vmem:[#allocation2 + $0x138] sm:$0xff]  ;;  %v2902_v37 = vpack.c.bf16 %v2856_v36, %v9407_v23 }
 0x17c   : > { %1716 = vst [vmem:[#allocation2 + $0x1c0] sm:$0xff] %v1656_v3  ;;  %v1657_v27 = vmul.f32 %v10706_v39, %v1297_v11  ;;  %7743 = vmatprep.subr.bf16.mxu0 %v8423_v13  ;;  %v9449_v6 = vld [vmem:[#allocation2 + $0x148] sm:$0xff]  ;;  %v9456_v3 = vld [vmem:[#allocation2 + $0x180] sm:$0xff]  ;;  %v2903_v11 = vpack.c.bf16 %v2858_v31, %v2857_v22  ;;  %v1771_v39 = vpack.c.bf16 %v2857_v22, %v2856_v36  ;;  %v8426_v23 = vld [vmem:[%s10647_s5 + $0x218] sm:$0xff]  }
 0x17d   : > { %v9454_v48 = vld [vmem:[#allocation2 + $0x168] sm:$0xff]  ;;  %v9463_v61 = vld [vmem:[#allocation2 + $0x1a0] sm:$0xff]  ;;  %v8418_v36 = vld [vmem:[%s10647_s5 + $0x110] sm:$0xff]  }
 0x17e   : > { %1717 = vst [vmem:[#allocation2 + $0x1c8] sm:$0xff] %v1657_v27  ;;  %v9461_v54 = vld [vmem:[#allocation2 + $0x188] sm:$0xff]  ;;  %v9467_v27 = vld [vmem:[#allocation2 + $0x158] sm:$0xff] }
 0x17f   : > { %7744 = vmatpush3.bf16.msra.mxu0 %v8423_v13  ;;  %v2860_v22 = vld [vmem:[#allocation2 + $0x67] sm:$0xff]  ;;  %v2861_v13 = vld [vmem:[#allocation2 + $0x6f] sm:$0xff]  ;;  %v1733_v31 = vld [vmem:[#allocation2 + $0x7f] sm:$0xff] }
 0x180   : > { %7745 = vmatprep.subr.bf16.mxu0 %v8425_v25 }
 0x181   : > { %7438 = vmatmul.mubr.bf16.vlgmr.msra.gmra.mrb[0].mxu1 %v2902_v37  ;;  %v1774_v37 = vpack.c.bf16 %v1733_v31, %v2862_v56 }
 0x182   : > { %7314 = vmatmul.mubr.bf16.gmra.mrb[64].mxu0 %v1771_v39  ;;  %7486 = vmatpush3.bf16.msra.mxu1 %v9212_v4  ;;  %v2904_v4 = vpack.c.bf16 %v2860_v22, %v9423_v14  ;;  %v2905_v39 = vpack.c.bf16 %v2862_v56, %v2861_v13  ;;  %v2864_v14 = vld [vmem:[#allocation2 + $0x87] sm:$0xff] }
 0x183   : > { %7441 = vmatprep.mubr.bf16.mxu1 %v2903_v11  ;;  %7317 = vmatprep.mubr.bf16.mxu0 %v1772_v51  ;;  %v1773_v11 = vpack.c.bf16 %v2861_v13, %v2860_v22  ;;  %v8427_v51 = vld [vmem:[%s10647_s5 + $0x220] sm:$0xff]   ;;  %v2866_v13 = vld [vmem:[#allocation2 + $0x97] sm:$0xff]  ;;  %v2906_v22 = vpack.c.bf16 %v2864_v14, %v1733_v31 }
 0x184   : > { %7487 = vmatprep.subr.bf16.mxu1 %v8417_v41  ;;  %7746 = vmatpush3.bf16.msra.mxu0 %v8425_v25  ;;  %v8429_v25 = vld [vmem:[%s10647_s5 + $0x228] sm:$0xff]   ;;  %v8420_v56 = vld [vmem:[%s10647_s5 + $0x120] sm:$0xff]   ;;  %v8431_v31 = vld [vmem:[%s10647_s5 + $0x238] sm:$0xff]  }
 0x185   : > { %7747 = vmatprep.subr.bf16.mxu0 %v8426_v23 }
 0x186   : > { %7488 = vmatpush3.bf16.msra.mxu1 %v8417_v41  ;;  %v2865_v41 = vld [vmem:[#allocation2 + $0x8f] sm:$0xff] }
 0x187   : > { %7489 = vmatprep.subr.bf16.mxu1 %v8418_v36 }
 0x188   : > { %7748 = vmatpush3.bf16.msra.mxu0 %v8426_v23  ;;  %v1737_v23 = vld [vmem:[#allocation2 + $0x9f] sm:$0xff] }
 0x189   : > { %7442 = vmatmul.mubr.bf16.gmra.mrb[4].mxu1 %v2904_v4  ;;  %7749 = vmatprep.subr.bf16.mxu0 %v8427_v51  ;;  %v1775_v4 = vpack.c.bf16 %v2865_v41, %v2864_v14  ;;  %v8424_v14 = vld [vmem:[%s10647_s5 + $0x130] sm:$0xff]  }
 0x18a   : > { %7318 = vmatmul.mubr.bf16.gmra.mrb[68].mxu0 %v1773_v11  ;;  %7445 = vmatprep.mubr.bf16.mxu1 %v2905_v39  ;;  %v1776_v39 = vpack.c.bf16 %v1737_v23, %v2866_v13  ;;  %v8421_v11 = vld [vmem:[%s10647_s5 + $0x128] sm:$0xff]  }
 0x18b   : > { %7321 = vmatprep.mubr.bf16.mxu0 %v1774_v37  ;;  %7490 = vmatpush3.bf16.msra.mxu1 %v8418_v36  ;;  %v8430_v37 = vld [vmem:[%s10647_s5 + $0x230] sm:$0xff]   ;;  %v2907_v36 = vpack.c.bf16 %v2866_v13, %v2865_v41 }
 0x18c   : > { %7491 = vmatprep.subr.bf16.mxu1 %v8419_v5  ;;  %7750 = vmatpush3.bf16.msra.mxu0 %v8427_v51  ;;  %v2869_v51 = vld [vmem:[#allocation2 + $0xaf] sm:$0xff]  ;;  %v2870_v41 = vld [vmem:[#allocation2 + $0xb7] sm:$0xff] }
 0x18d   : > { %7751 = vmatprep.subr.bf16.mxu0 %v8429_v25 }
 0x18f   : > { %7492 = vmatpush3.bf16.msra.mxu1 %v8419_v5  ;;  %v2868_v5 = vld [vmem:[#allocation2 + $0xa7] sm:$0xff] }
 0x190   : > { %7493 = vmatprep.subr.bf16.mxu1 %v8420_v56  ;;  %7752 = vmatpush3.bf16.msra.mxu0 %v8429_v25  ;;  %v1741_v25 = vld [vmem:[#allocation2 + $0xbf] sm:$0xff]  ;;  %v2908_v13 = vpack.c.bf16 %v2868_v5, %v1737_v23 }
 0x191   : > { %7446 = vmatmul.mubr.bf16.gmra.mrb[8].mxu1 %v2906_v22  ;;  %7753 = vmatprep.subr.bf16.mxu0 %v8430_v37  ;;  %v1777_v22 = vpack.c.bf16 %v2869_v51, %v2868_v5  ;;  %v1778_v40 = vpack.c.bf16 %v1741_v25, %v2870_v41  ;;  %v9533_v23 = vld [vmem:[%s10647_s5 + $0x140] sm:$0xff]  }
 0x192   : > { %7322 = vmatmul.mubr.bf16.gmra.mrb[72].mxu0 %v1775_v4  ;;  %7449 = vmatprep.mubr.bf16.mxu1 %v2907_v36  ;;  %v2909_v4 = vpack.c.bf16 %v2870_v41, %v2869_v51  ;;  %v2873_v36 = vld [vmem:[#allocation2 + $0xcf] sm:$0xff] }
 0x193   : > { %7325 = vmatprep.mubr.bf16.mxu0 %v1776_v39  ;;  %7494 = vmatpush3.bf16.msra.mxu1 %v8420_v56  ;;  %v8428_v56 = vld [vmem:[%s10647_s5 + $0x138] sm:$0xff]  }
 0x194   : > { %7495 = vmatprep.subr.bf16.mxu1 %v8421_v11  ;;  %7754 = vmatpush3.bf16.msra.mxu0 %v8430_v37  ;;  %v2872_v37 = vld [vmem:[#allocation2 + $0xc7] sm:$0xff]  ;;  %v2874_v39 = vld [vmem:[#allocation2 + $0xd7] sm:$0xff] }
 0x195   : > { %7755 = vmatprep.subr.bf16.mxu0 %v8431_v31  ;;  %v2910_v5 = vpack.c.bf16 %v2872_v37, %v1741_v25  ;;  %v1779_v51 = vpack.c.bf16 %v2873_v36, %v2872_v37  ;;  %v2911_v41 = vpack.c.bf16 %v2874_v39, %v2873_v36  ;;  %v2880_v25 = vld [vmem:[#allocation2 + $0x107] sm:$0xff]  ;;  %v2882_v37 = vld [vmem:[#allocation2 + $0x117] sm:$0xff]  ;;  %v1753_v36 = vld [vmem:[#allocation2 + $0x11f] sm:$0xff] }
 0x197   : > { %7496 = vmatpush3.bf16.msra.mxu1 %v8421_v11  ;;  %v1745_v11 = vld [vmem:[#allocation2 + $0xdf] sm:$0xff] }
 0x198   : > { %7497 = vmatprep.subr.bf16.mxu1 %v8424_v14  ;;  %7756 = vmatpush3.bf16.msra.mxu0 %v8431_v31  ;;  %v1780_v31 = vpack.c.bf16 %v1745_v11, %v2874_v39 }
 0x199   : > { %7450 = vmatmul.mubr.bf16.gmra.mrb[12].mxu1 %v2908_v13  ;;  %v2878_v13 = vld [vmem:[#allocation2 + $0xf7] sm:$0xff] }
 0x19a   : > { %7326 = vmatmul.mubr.bf16.gmra.mrb[76].mxu0 %v1777_v22  ;;  %7453 = vmatprep.mubr.bf16.mxu1 %v2909_v4  ;;  %v1749_v22 = vld [vmem:[#allocation2 + $0xff] sm:$0xff] }
 0x19b   : > { %7329 = vmatprep.mubr.bf16.mxu0 %v1778_v40  ;;  %7498 = vmatpush3.bf16.msra.mxu1 %v8424_v14  ;;  %v2876_v40 = vld [vmem:[#allocation2 + $0xe7] sm:$0xff]  ;;  %v2877_v14 = vld [vmem:[#allocation2 + $0xef] sm:$0xff]  ;;  %v1782_v45 = vpack.c.bf16 %v1749_v22, %v2878_v13  ;;  %v2914_v39 = vpack.c.bf16 %v2880_v25, %v1749_v22 }
 0x19c   : > { %7499 = vmatprep.subr.bf16.mxu1 %v8428_v56  ;;  %v2912_v4 = vpack.c.bf16 %v2876_v40, %v1745_v11  ;;  %v1781_v62 = vpack.c.bf16 %v2877_v14, %v2876_v40  ;;  %v2913_v35 = vpack.c.bf16 %v2878_v13, %v2877_v14  ;;  %v2884_v11 = vld [vmem:[#allocation2 + $0x127] sm:$0xff]  ;;  %v2886_v40 = vld [vmem:[#allocation2 + $0x137] sm:$0xff]  ;;  %v1757_v14 = vld [vmem:[#allocation2 + $0x13f] sm:$0xff] }
 0x19d   : > { %v2916_v13 = vpack.c.bf16 %v2884_v11, %v1753_v36  ;;  %v2888_v22 = vld [vmem:[#allocation2 + $0x147] sm:$0xff] }
 0x19f   : > { %7500 = vmatpush3.bf16.msra.mxu1 %v8428_v56  ;;  %v2881_v56 = vld [vmem:[#allocation2 + $0x10f] sm:$0xff] }
 0x1a0   : > { %7549 = vmatprep.subr.bf16.mxu1 %v9533_v23 }
 0x1a1   : > { %7454 = vmatmul.mubr.bf16.gmra.mrb[16].mxu1 %v2910_v5  ;;  %v1783_v5 = vpack.c.bf16 %v2881_v56, %v2880_v25  ;;  %v2890_v25 = vld [vmem:[#allocation2 + $0x157] sm:$0xff] }
 0x1a2   : > { %7330 = vmatmul.mubr.bf16.gmra.mrb[80].mxu0 %v1779_v51  ;;  %7457 = vmatprep.mubr.bf16.mxu1 %v2911_v41  ;;  %v2915_v51 = vpack.c.bf16 %v2882_v37, %v2881_v56  ;;  %v1784_v41 = vpack.c.bf16 %v1753_v36, %v2882_v37  ;;  %v1761_v56 = vld [vmem:[#allocation2 + $0x15f] sm:$0xff]  ;;  %v2918_v37 = vpack.c.bf16 %v2888_v22, %v1757_v14  ;;  %v2892_v36 = vld [vmem:[#allocation2 + $0x167] sm:$0xff] }
 0x1a3   : > { %7333 = vmatprep.mubr.bf16.mxu0 %v1780_v31  ;;  %v2885_v31 = vld [vmem:[#allocation2 + $0x12f] sm:$0xff] }
 0x1a9   : > { %7458 = vmatmul.mubr.bf16.gmra.mrb[20].mxu1 %v2912_v4  ;;  %v2889_v4 = vld [vmem:[#allocation2 + $0x14f] sm:$0xff] }
 0x1aa   : > { %7334 = vmatmul.mubr.bf16.gmra.mrb[84].mxu0 %v1781_v62  ;;  %7461 = vmatprep.mubr.bf16.mxu1 %v2913_v35  ;;  %v1785_v62 = vpack.c.bf16 %v2885_v31, %v2884_v11  ;;  %v2917_v35 = vpack.c.bf16 %v2886_v40, %v2885_v31  ;;  %v2894_v11 = vld [vmem:[#allocation2 + $0x177] sm:$0xff]  ;;  %v1765_v31 = vld [vmem:[#allocation2 + $0x17f] sm:$0xff] }
 0x1ab   : > { %7337 = vmatprep.mubr.bf16.mxu0 %v1782_v45  ;;  %v1786_v45 = vpack.c.bf16 %v1757_v14, %v2886_v40  ;;  %v2920_v40 = vpack.c.bf16 %v2892_v36, %v1761_v56  ;;  %v2896_v14 = vld [vmem:[#allocation2 + $0x187] sm:$0xff] }
 0x1b1   : > { %7462 = vmatmul.mubr.bf16.gmra.mrb[24].mxu1 %v2914_v39  ;;  %v1787_v39 = vpack.c.bf16 %v2889_v4, %v2888_v22  ;;  %v2898_v22 = vld [vmem:[#allocation2 + $0x197] sm:$0xff] }
 0x1b2   : > { %7338 = vmatmul.mubr.bf16.gmra.mrb[88].mxu0 %v1783_v5  ;;  %7465 = vmatprep.mubr.bf16.mxu1 %v2915_v51  ;;  %v2919_v5 = vpack.c.bf16 %v2890_v25, %v2889_v4  ;;  %v1788_v51 = vpack.c.bf16 %v1761_v56, %v2890_v25  ;;  %v9536_v4 = vld [vmem:[#allocation2 + $0x49] sm:$0xff]  ;;  %v2922_v25 = vpack.c.bf16 %v2896_v14, %v1765_v31 }
 0x1b3   : > { %7341 = vmatprep.mubr.bf16.mxu0 %v1784_v41  ;;  %v2893_v41 = vld [vmem:[#allocation2 + $0x16f] sm:$0xff]  ;;  %v2900_v56 = vld [vmem:[#allocation2 + $0x1a7] sm:$0xff] }
 0x1b9   : > { %7466 = vmatmul.mubr.bf16.gmra.mrb[28].mxu1 %v2916_v13  ;;  %v1789_v13 = vpack.c.bf16 %v2893_v41, %v2892_v36  ;;  %v3264_v36 = vld [vmem:[#allocation2 + $0x38] sm:$0xff] }
 0x1ba   : > { %7342 = vmatmul.mubr.bf16.gmra.mrb[92].mxu0 %v1785_v62  ;;  %7469 = vmatprep.mubr.bf16.mxu1 %v2917_v35  ;;  %v2921_v62 = vpack.c.bf16 %v2894_v11, %v2893_v41  ;;  %v1790_v35 = vpack.c.bf16 %v1765_v31, %v2894_v11  ;;  %v2899_v41 = vld [vmem:[#allocation2 + $0x19f] sm:$0xff]  ;;  %v8478_v31 = vld [vmem:[#allocation2 + $0x71] sm:$0xff] }
 0x1bb   : > { %7345 = vmatprep.mubr.bf16.mxu0 %v1786_v45  ;;  %v2897_v45 = vld [vmem:[#allocation2 + $0x18f] sm:$0xff]  ;;  %v2924_v11 = vpack.c.bf16 %v2900_v56, %v2899_v41 }
 0x1bc   : > { %v8433_v41 = vld [vmem:[%s10647_s5 + $0x148] sm:$0xff]  }
 0x1c1   : > { %7470 = vmatmul.mubr.bf16.gmra.mrb[32].mxu1 %v2918_v37  ;;  %v1791_v37 = vpack.c.bf16 %v2897_v45, %v2896_v14  ;;  %v4953_v14 = vpack.c.bf16 %v8478_v31, %v8477_v1  ;;  %v8481_v1 = vld [vmem:[#allocation2 + $0x89] sm:$0xff] }
 0x1c2   : > { %7346 = vmatmul.mubr.bf16.gmra.mrb[96].mxu0 %v1787_v39  ;;  %7473 = vmatprep.mubr.bf16.mxu1 %v2919_v5  ;;  %v2923_v39 = vpack.c.bf16 %v2898_v22, %v2897_v45  ;;  %v8474_v5 = vld [vmem:[#allocation2 + $0x51] sm:$0xff]  ;;  %v3266_v45 = vld [vmem:[#allocation2 + $0x48] sm:$0xff] }
 0x1c3   : > { %7349 = vmatprep.mubr.bf16.mxu0 %v1788_v51  ;;  %v4951_v51 = vpack.c.bf16 %v8474_v5, %v9536_v4  ;;  %v3268_v22 = vld [vmem:[#allocation2 + $0x58] sm:$0xff] }
 0x1c4   : > { %v8479_v5 = vld [vmem:[#allocation2 + $0x79] sm:$0xff] }
 0x1c9   : > { %7474 = vmatmul.mubr.bf16.gmra.mrb[36].mxu1 %v2920_v40  ;;  %v3263_v40 = vld [vmem:[#allocation2 + $0x30] sm:$0xff] }
 0x1ca   : > { %7350 = vmatmul.mubr.bf16.gmra.mrb[100].mxu0 %v1789_v13  ;;  %7477 = vmatprep.mubr.bf16.mxu1 %v2921_v62  ;;  %v8475_v13 = vld [vmem:[#allocation2 + $0x59] sm:$0xff]  ;;  %v8476_v62 = vld [vmem:[#allocation2 + $0x61] sm:$0xff]  ;;  %v3311_v0 = vpack.c.bf16 %v3264_v36, %v3263_v40 }
 0x1cb   : > { %7353 = vmatprep.mubr.bf16.mxu0 %v1790_v35  ;;  %v4952_v35 = vpack.c.bf16 %v8476_v62, %v8475_v13  ;;  %v3270_v13 = vld [vmem:[#allocation2 + $0x68] sm:$0xff]  ;;  %v3272_v62 = vld [vmem:[#allocation2 + $0x78] sm:$0xff] }
 0x1d1   : > { %7478 = vmatmul.mubr.bf16.gmra.mrb[40].mxu1 %v2922_v25  ;;  %v3265_v25 = vld [vmem:[#allocation2 + $0x40] sm:$0xff] }
 0x1d2   : > { %7354 = vmatmul.mubr.bf16.gmra.mrb[104].mxu0 %v1791_v37  ;;  %7481 = vmatprep.mubr.bf16.mxu1 %v2923_v39  ;;  %v3312_v37 = vpack.c.bf16 %v3266_v45, %v3265_v25  ;;  %v3267_v39 = vld [vmem:[#allocation2 + $0x50] sm:$0xff]  ;;  %v8483_v45 = vld [vmem:[#allocation2 + $0x99] sm:$0xff] }
 0x1d3   : > { %7757 = vmatprep.mubr.bf16.mxu0 %v4951_v51  ;;  %v8480_v51 = vld [vmem:[#allocation2 + $0x81] sm:$0xff]  ;;  %v3313_v36 = vpack.c.bf16 %v3268_v22, %v3267_v39  ;;  %v8485_v39 = vld [vmem:[#allocation2 + $0xa9] sm:$0xff] }
 0x1d4   : > { %v4954_v56 = vpack.c.bf16 %v8480_v51, %v8479_v5  ;;  %v8484_v22 = vld [vmem:[#allocation2 + $0xa1] sm:$0xff]  ;;  %v8435_v51 = vld [vmem:[%s10647_s5 + $0x158] sm:$0xff]  }
 0x1d5   : > { %v4956_v25 = vpack.c.bf16 %v8484_v22, %v8483_v45  ;;  %v3278_v22 = vld [vmem:[#allocation2 + $0xa8] sm:$0xff] }
 0x1d9   : > { %7482 = vmatmul.mubr.bf16.gmra.mrb[44].mxu1 %v2924_v11  ;;  %v8482_v11 = vld [vmem:[#allocation2 + $0x91] sm:$0xff] }
 0x1da   : > { %7758 = vmatmul.mubr.bf16.vlgmr.msra.gmra.mrb[108].mxu0 %v4952_v35  ;;  %7501 = vmatprep.mubr.bf16.mxu1 %v3311_v0  ;;  %v4955_v40 = vpack.c.bf16 %v8482_v11, %v8481_v1  ;;  %v8434_v0 = vld [vmem:[%s10647_s5 + $0x150] sm:$0xff]   ;;  %v3269_v35 = vld [vmem:[#allocation2 + $0x60] sm:$0xff] }
 0x1db   : > { %7761 = vmatprep.mubr.bf16.mxu0 %v4953_v14  ;;  %v3314_v31 = vpack.c.bf16 %v3270_v13, %v3269_v35  ;;  %v3271_v14 = vld [vmem:[#allocation2 + $0x70] sm:$0xff]  ;;  %v3273_v1 = vld [vmem:[#allocation2 + $0x80] sm:$0xff] }
 0x1dc   : > { %v8487_v13 = vld [vmem:[#allocation2 + $0xb9] sm:$0xff] }
 0x1e1   : > { %7502 = vmatmul.mubr.bf16.vlgmr.msra.gmra.mrb[0].mxu1 %v3312_v37  ;;  %v3315_v37 = vpack.c.bf16 %v3272_v62, %v3271_v14  ;;  %v8488_v62 = vld [vmem:[#allocation2 + $0xc1] sm:$0xff] }
 0x1e2   : > { %7762 = vmatmul.mubr.bf16.gmra.mrb[112].mxu0 %v4954_v56  ;;  %7550 = vmatpush3.bf16.msra.mxu1 %v9533_v23  ;;  %v8486_v23 = vld [vmem:[#allocation2 + $0xb1] sm:$0xff]  ;;  %v3274_v56 = vld [vmem:[#allocation2 + $0x88] sm:$0xff]  ;;  %v4958_v35 = vpack.c.bf16 %v8488_v62, %v8487_v13  ;;  %v3281_v62 = vld [vmem:[#allocation2 + $0xc0] sm:$0xff] }
 0x1e3   : > { %7505 = vmatprep.mubr.bf16.mxu1 %v3313_v36  ;;  %7765 = vmatprep.mubr.bf16.mxu0 %v4955_v40  ;;  %v4957_v5 = vpack.c.bf16 %v8486_v23, %v8485_v39  ;;  %v3276_v36 = vld [vmem:[#allocation2 + $0x98] sm:$0xff]  ;;  %v3316_v11 = vpack.c.bf16 %v3274_v56, %v3273_v1  ;;  %v3275_v40 = vld [vmem:[#allocation2 + $0x90] sm:$0xff]  ;;  %v3277_v39 = vld [vmem:[#allocation2 + $0xa0] sm:$0xff]  ;;  %v4961_v1 = vpack.c.bf16 %v9300_v24, %v9285_v17 }
 0x1e4   : > { %7551 = vmatprep.subr.bf16.mxu1 %v8433_v41  ;;  %v3317_v14 = vpack.c.bf16 %v3276_v36, %v3275_v40  ;;  %v3318_v23 = vpack.c.bf16 %v3278_v22, %v3277_v39  ;;  %v9568_v40 = vld [vmem:[%s10647_s5 + $0x180] sm:$0xff]   ;;  %v3284_v13 = vld [vmem:[#allocation2 + $0xd8] sm:$0xff]  ;;  %v3286_v22 = vld [vmem:[#allocation2 + $0xe8] sm:$0xff] }
 0x1e6   : > { %7552 = vmatpush3.bf16.msra.mxu1 %v8433_v41  ;;  %v8436_v41 = vld [vmem:[%s10647_s5 + $0x160] sm:$0xff]  }
 0x1e7   : > { %7553 = vmatprep.subr.bf16.mxu1 %v8434_v0 }
 0x1e9   : > { %7506 = vmatmul.mubr.bf16.gmra.mrb[4].mxu1 %v3314_v31  ;;  %v8489_v31 = vld [vmem:[#allocation2 + $0xc9] sm:$0xff] }
 0x1ea   : > { %7766 = vmatmul.mubr.bf16.gmra.mrb[116].mxu0 %v4956_v25  ;;  %7509 = vmatprep.mubr.bf16.mxu1 %v3315_v37  ;;  %v4959_v45 = vpack.c.bf16 %v9272_v55, %v8489_v31  ;;  %v8438_v25 = vld [vmem:[%s10647_s5 + $0x170] sm:$0xff]   ;;  %v3280_v37 = vld [vmem:[#allocation2 + $0xb8] sm:$0xff]  ;;  %v4962_v31 = vpack.c.bf16 %v9311_v21, %v9293_v34 }
 0x1eb   : > { %7769 = vmatprep.mubr.bf16.mxu0 %v4957_v5  ;;  %7554 = vmatpush3.bf16.msra.mxu1 %v8434_v0  ;;  %v8437_v0 = vld [vmem:[%s10647_s5 + $0x168] sm:$0xff]   ;;  %v3279_v5 = vld [vmem:[#allocation2 + $0xb0] sm:$0xff] }
 0x1ec   : > { %7555 = vmatprep.subr.bf16.mxu1 %v8435_v51  ;;  %v3319_v36 = vpack.c.bf16 %v3280_v37, %v3279_v5  ;;  %v3285_v37 = vld [vmem:[#allocation2 + $0xe0] sm:$0xff]  ;;  %v4964_v5 = vpack.c.bf16 %v9339_v26, %v9321_v2 }
 0x1ed   : > { %v3322_v39 = vpack.c.bf16 %v3286_v22, %v3285_v37  ;;  %v9605_v22 = vld [vmem:[#allocation2 + $0x199] sm:$0xff]  ;;  %v9617_v37 = vld [vmem:[#allocation2 + $0x1a8] sm:$0xff] }
 0x1ef   : > { %7556 = vmatpush3.bf16.msra.mxu1 %v8435_v51  ;;  %v8490_v51 = vld [vmem:[#allocation2 + $0xd9] sm:$0xff] }
 0x1f0   : > { %7557 = vmatprep.subr.bf16.mxu1 %v8436_v41  ;;  %v4960_v56 = vpack.c.bf16 %v9283_v16, %v8490_v51 }
 0x1f1   : > { %7510 = vmatmul.mubr.bf16.gmra.mrb[8].mxu1 %v3316_v11  ;;  %v3282_v11 = vld [vmem:[#allocation2 + $0xc8] sm:$0xff] }
 0x1f2   : > { %7770 = vmatmul.mubr.bf16.gmra.mrb[120].mxu0 %v4958_v35  ;;  %7513 = vmatprep.mubr.bf16.mxu1 %v3317_v14  ;;  %v3320_v35 = vpack.c.bf16 %v3282_v11, %v3281_v62  ;;  %v3283_v14 = vld [vmem:[#allocation2 + $0xd0] sm:$0xff]  ;;  %v4966_v11 = vpack.c.bf16 %v9377_v44, %v9349_v50 }
 0x1f3   : > { %7773 = vmatprep.mubr.bf16.mxu0 %v4959_v45  ;;  %7558 = vmatpush3.bf16.msra.mxu1 %v8436_v41  ;;  %v8439_v41 = vld [vmem:[%s10647_s5 + $0x178] sm:$0xff]   ;;  %v3321_v45 = vpack.c.bf16 %v3284_v13, %v3283_v14  ;;  %v3325_v13 = vpack.c.bf16 %v9441_v42, %v9432_v20  ;;  %v3327_v14 = vpack.c.bf16 %v9445_v19, %v9443_v30 }
 0x1f4   : > { %7559 = vmatprep.subr.bf16.mxu1 %v8437_v0 }
 0x1f7   : > { %7560 = vmatpush3.bf16.msra.mxu1 %v8437_v0  ;;  %v4963_v0 = vpack.c.bf16 %v9328_v58, %v9313_v33 }
 0x1f8   : > { %7561 = vmatprep.subr.bf16.mxu1 %v8438_v25 }
 0x1f9   : > { %7514 = vmatmul.mubr.bf16.gmra.mrb[12].mxu1 %v3318_v23  ;;  %v3287_v23 = vld [vmem:[#allocation2 + $0xf0] sm:$0xff] }
 0x1fa   : > { %7774 = vmatmul.mubr.bf16.gmra.mrb[124].mxu0 %v4960_v56  ;;  %7517 = vmatprep.mubr.bf16.mxu1 %v3319_v36  ;;  %v4965_v56 = vpack.c.bf16 %v9356_v59, %v9341_v10  ;;  %v9579_v36 = vld [vmem:[#allocation2 + $0x151] sm:$0xff] }
 0x1fb   : > { %7777 = vmatprep.mubr.bf16.mxu0 %v4961_v1  ;;  %7562 = vmatpush3.bf16.msra.mxu1 %v8438_v25  ;;  %v3288_v25 = vld [vmem:[#allocation2 + $0xf8] sm:$0xff]  ;;  %v9581_v1 = vld [vmem:[#allocation2 + $0x100] sm:$0xff]  ;;  %v4967_v62 = vpack.c.bf16 %v9579_v36, %v9379_v52 }
 0x1fc   : > { %7563 = vmatprep.subr.bf16.mxu1 %v8439_v41  ;;  %v3323_v51 = vpack.c.bf16 %v3288_v25, %v3287_v23  ;;  %v3331_v25 = vpack.c.bf16 %v9471_v9, %v9469_v63  ;;  %v3334_v23 = vpack.c.bf16 %v9617_v37, %v9463_v61 }
 0x1ff   : > { %7564 = vmatpush3.bf16.msra.mxu1 %v8439_v41  ;;  %v3324_v41 = vpack.c.bf16 %v9430_v53, %v9581_v1 }
 0x200   : > { %7613 = vmatprep.subr.bf16.mxu1 %v9568_v40 }
 0x201   : > { %7518 = vmatmul.mubr.bf16.gmra.mrb[16].mxu1 %v3320_v35  ;;  %v3326_v35 = vpack.c.bf16 %v9436_v28, %v9434_v8 }
 0x202   : > { %7778 = vmatmul.mubr.bf16.gmra.mrb[128].mxu0 %v4962_v31  ;;  %7521 = vmatprep.mubr.bf16.mxu1 %v3321_v45  ;;  %v3328_v31 = vpack.c.bf16 %v9449_v6, %v9447_v47  ;;  %v3329_v45 = vpack.c.bf16 %v9467_v27, %v9459_v7 }
 0x203   : > { %7781 = vmatprep.mubr.bf16.mxu0 %v4963_v0  ;;  %v9603_v0 = vld [vmem:[#allocation2 + $0x1a1] sm:$0xff] }
 0x209   : > { %7522 = vmatmul.mubr.bf16.gmra.mrb[20].mxu1 %v3322_v39  ;;  %v3674_v39 = vld [vmem:[#allocation2 + $0x39] sm:$0xff] }
 0x20a   : > { %7782 = vmatmul.mubr.bf16.gmra.mrb[132].mxu0 %v4964_v5  ;;  %7525 = vmatprep.mubr.bf16.mxu1 %v3323_v51  ;;  %v3673_v5 = vld [vmem:[#allocation2 + $0x31] sm:$0xff] }
 0x20b   : > { %7785 = vmatprep.mubr.bf16.mxu0 %v4965_v56  ;;  %v3721_v51 = vpack.c.bf16 %v3674_v39, %v3673_v5  ;;  %v3675_v56 = vld [vmem:[#allocation2 + $0x41] sm:$0xff]  ;;  %v8446_v5 = vld [vmem:[%s10647_s5 + $0x1b0] sm:$0xff]  }
 0x20c   : > { %v10716_v39 = vld [vmem:[#allocation20_spill] sm:$0xff] }
 0x211   : > { %7526 = vmatmul.mubr.bf16.gmra.mrb[24].mxu1 %v3324_v41  ;;  %v3722_v41 = vpack.c.bf16 %v9536_v4, %v3675_v56  ;;  %v8443_v4 = vld [vmem:[%s10647_s5 + $0x198] sm:$0xff]  }
 0x212   : > { %7786 = vmatmul.mubr.bf16.gmra.mrb[136].mxu0 %v4966_v11  ;;  %7529 = vmatprep.mubr.bf16.mxu1 %v3325_v13  ;;  %v8441_v11 = vld [vmem:[%s10647_s5 + $0x188] sm:$0xff]   ;;  %v10707_v13 = vpack.c.bf16 %v9125_v60, %v9133_v49  ;;  %v8444_v60 = vld [vmem:[%s10647_s5 + $0x1a0] sm:$0xff]  }
 0x213   : > { %7789 = vmatprep.mubr.bf16.mxu0 %v4967_v62  ;;  %v8442_v62 = vld [vmem:[%s10647_s5 + $0x190] sm:$0xff]  }
 0x219   : > { %7530 = vmatmul.mubr.bf16.gmra.mrb[28].mxu1 %v3326_v35  ;;  %v10708_v35 = vpack.c.bf16 %v9152_v38, %v9150_v46  ;;  %v8445_v46 = vld [vmem:[%s10647_s5 + $0x1a8] sm:$0xff]   ;;  %v10712_v38 = vld [vmem:[#allocation18_spill] sm:$0xff] }
 0x21a   : > { %7790 = vmatmul.mubr.bf16.gmra.mrb[140].mxu0 %v9394_v29  ;;  %7533 = vmatprep.mubr.bf16.mxu1 %v3327_v14  ;;  %v3330_v29 = vpack.c.bf16 %v9454_v48, %v9452_v18  ;;  %v10710_v14 = vld [vmem:[#allocation16_spill] sm:$0xff] }
 0x21b   : > { %7793 = vmatprep.mubr.bf16.mxu0 %v9396_v15  ;;  %v4972_v15 = vpack.c.bf16 %v9603_v0, %v9605_v22 }
 0x221   : > { %7534 = vmatmul.mubr.bf16.gmra.mrb[32].mxu1 %v3328_v31 }
 0x222   : > { %7794 = vmatmul.mubr.bf16.gmra.mrb[144].mxu0 %v9411_v43  ;;  %7537 = vmatprep.mubr.bf16.mxu1 %v3329_v45  ;;  %v3332_v43 = vpack.c.bf16 %v9461_v54, %v9456_v3 }
 0x223   : > { %7797 = vmatprep.mubr.bf16.mxu0 %v9413_v32  ;;  %v3333_v32 = vpack.c.bf16 %v9486_v12, %v9484_v57 }
 0x229   : > { %7538 = vmatmul.mubr.bf16.gmra.mrb[36].mxu1 %v3330_v29 }
 0x22a   : > { %7798 = vmatmul.mubr.bf16.gmra.mrb[148].mxu0 %v4972_v15  ;;  %7541 = vmatprep.mubr.bf16.mxu1 %v3331_v25  ;;  %v10713_v25 = vld [vmem:[#allocation17_spill] sm:$0xff] }
 0x231   : > { %7542 = vmatmul.mubr.bf16.gmra.mrb[40].mxu1 %v3332_v43  ;;  %v10714_v43 = vpack.c.bf16 %v10712_v38, %v10713_v25 }
 0x232   : > { %7545 = vmatprep.mubr.bf16.mxu1 %v3333_v32  ;;  %v10715_v32 = vld [vmem:[#allocation19_spill] sm:$0xff] }
 0x239   : > { %7546 = vmatmul.mubr.bf16.gmra.mrb[44].mxu1 %v3334_v23  ;;  %v10717_v23 = vpack.c.bf16 %v10715_v32, %v10716_v39  ;;  %v10724_v32 = vld [vmem:[#allocation26_spill] sm:$0xff]  ;;  %v10725_v39 = vld [vmem:[#allocation25_spill] sm:$0xff] }
 0x23a   : > { %7565 = vmatprep.mubr.bf16.mxu1 %v3721_v51 }
 0x241   : > { %7566 = vmatmul.mubr.bf16.vlgmr.msra.gmra.mrb[0].mxu1 %v3722_v41 }
 0x242   : > { %7614 = vmatpush3.bf16.msra.mxu1 %v9568_v40  ;;  %7569 = vmatprep.mubr.bf16.mxu1 %v10707_v13  ;;  %v10709_v40 = vld [vmem:[#allocation15_spill] sm:$0xff]  ;;  %v8447_v13 = vld [vmem:[%s10647_s5 + $0x1b8] sm:$0xff]  }
 0x243   : > { %7615 = vmatprep.subr.bf16.mxu1 %v8441_v11  ;;  %v10711_v31 = vpack.c.bf16 %v10709_v40, %v10710_v14  ;;  %v10721_v40 = vld [vmem:[#allocation23_spill] sm:$0xff]  ;;  %v10722_v14 = vld [vmem:[#allocation24_spill] sm:$0xff] }
 0x246   : > { %7616 = vmatpush3.bf16.msra.mxu1 %v8441_v11 }
 0x247   : > { %7617 = vmatprep.subr.bf16.mxu1 %v8442_v62 }
 0x249   : > { %7570 = vmatmul.mubr.bf16.gmra.mrb[4].mxu1 %v10708_v35 }
 0x24a   : > { %7573 = vmatprep.mubr.bf16.mxu1 %v10711_v31  ;;  %7618 = vmatpush3.bf16.msra.mxu1 %v8442_v62  ;;  %v10718_v62 = vld [vmem:[#allocation22_spill] sm:$0xff]  ;;  %v10723_v31 = vpack.c.bf16 %v10721_v40, %v10722_v14 }
 0x24b   : > { %7619 = vmatprep.subr.bf16.mxu1 %v8443_v4 }
 0x24d   : > { %v9644_v49 = vpop.f32.mrb[60].mxu0 }
 0x24e   : > { %v9646_v45 = vpop.f32.mrb[61].mxu0  ;;  %7620 = vmatpush3.bf16.msra.mxu1 %v8443_v4  ;;  %v10719_v4 = vld [vmem:[#allocation21_spill] sm:$0xff] }
 0x24f   : > { %v9648_v29 = vpop.f32.mrb[62].mxu0  ;;  %7621 = vmatprep.subr.bf16.mxu1 %v8444_v60  ;;  %v10720_v35 = vpack.c.bf16 %v10718_v62, %v10719_v4 }
 0x250   : > { %v9650_v15 = vpop.f32.mrb[63].mxu0 }
 0x251   : > { %7574 = vmatmul.mubr.bf16.gmra.mrb[8].mxu1 %v10714_v43 }
 0x252   : > { %7577 = vmatprep.mubr.bf16.mxu1 %v10717_v23  ;;  %7622 = vmatpush3.bf16.msra.mxu1 %v8444_v60  ;;  %v9684_v60 = vld [vmem:[%s10647_s5 + $0x1c0] sm:$0xff]   ;;  %v10726_v23 = vpack.c.bf16 %v10724_v32, %v10725_v39 }
 0x253   : > { %7623 = vmatprep.subr.bf16.mxu1 %v8445_v46 }
 0x255   : > { %v9664_v51 = vpop.f32.mrb[64].mxu0 }
 0x256   : > { %v9666_v56 = vpop.f32.mrb[65].mxu0  ;;  %7624 = vmatpush3.bf16.msra.mxu1 %v8445_v46 }
 0x257   : > { %v9668_v41 = vpop.f32.mrb[66].mxu0  ;;  %7625 = vmatprep.subr.bf16.mxu1 %v8446_v5 }
 0x258   : > { %v9670_v11 = vpop.f32.mrb[67].mxu0 }
 0x259   : > { %7578 = vmatmul.mubr.bf16.gmra.mrb[12].mxu1 %v10720_v35 }
 0x25a   : > { %7581 = vmatprep.mubr.bf16.mxu1 %v10723_v31  ;;  %7626 = vmatpush3.bf16.msra.mxu1 %v8446_v5  ;;  %v10727_v5 = vld [vmem:[#allocation27_spill] sm:$0xff]  ;;  %v10734_v31 = vpack.c.bf16 %v9293_v34, %v9300_v24 }
 0x25b   : > { %7627 = vmatprep.subr.bf16.mxu1 %v8447_v13  ;;  %v10728_v62 = vpack.c.bf16 %v10727_v5, %v9272_v55  ;;  %v10739_v5 = vpack.c.bf16 %v9313_v33, %v9311_v21  ;;  %v10746_v33 = vpack.c.bf16 %v9349_v50, %v9356_v59  ;;  %v3714_v59 = vld [vmem:[#allocation2 + $0x179] sm:$0xff] }
 0x25d   : > { %v9686_v46 = vpop.f32.mrb[68].mxu0 }
 0x25e   : > { %v9688_v38 = vpop.f32.mrb[69].mxu0  ;;  %7628 = vmatpush3.bf16.msra.mxu1 %v8447_v13  ;;  %v10733_v13 = vpack.c.bf16 %v9285_v17, %v9283_v16  ;;  %v10740_v16 = vpack.c.bf16 %v9321_v2, %v9328_v58  ;;  %v3710_v2 = vld [vmem:[#allocation2 + $0x159] sm:$0xff] }
 0x25f   : > { %v9690_v25 = vpop.f32.mrb[70].mxu0  ;;  %7677 = vmatprep.subr.bf16.mxu1 %v9684_v60 }
 0x260   : > { %v9692_v43 = vpop.f32.mrb[71].mxu0 }
 0x261   : > { %7582 = vmatmul.mubr.bf16.gmra.mrb[16].mxu1 %v10726_v23 }
 0x262   : > { %7585 = vmatprep.mubr.bf16.mxu1 %v10728_v62 }
 0x265   : > { %v9701_v4 = vpop.f32.mrb[72].mxu0 }
 0x266   : > { %10729 = vst [vmem:[#allocation4_spill] sm:$0xff] %v9701_v4  ;;  %v9703_v35 = vpop.f32.mrb[73].mxu0 }
 0x267   : > { %10730 = vst [vmem:[#allocation3_spill] sm:$0xff] %v9703_v35  ;;  %v9705_v40 = vpop.f32.mrb[74].mxu0  ;;  %v4110_v35 = vld [vmem:[#allocation2 + $0x11f] sm:$0xff] }
 0x268   : > { %10731 = vst [vmem:[#allocation7_spill] sm:$0xff] %v9705_v40  ;;  %v9707_v14 = vpop.f32.mrb[75].mxu0 }
 0x269   : > { %10732 = vst [vmem:[#allocation5_spill] sm:$0xff] %v9707_v14  ;;  %7586 = vmatmul.mubr.bf16.gmra.mrb[20].mxu1 %v10733_v13  ;;  %v10745_v13 = vpack.c.bf16 %v9341_v10, %v9339_v26  ;;  %v3711_v10 = vld [vmem:[#allocation2 + $0x161] sm:$0xff]  ;;  %v3712_v26 = vld [vmem:[#allocation2 + $0x169] sm:$0xff] }
 0x26a   : > { %7589 = vmatprep.mubr.bf16.mxu1 %v10734_v31 }
 0x26d   : > { %v9715_v32 = vpop.f32.mrb[76].mxu0 }
 0x26e   : > { %10735 = vst [vmem:[#allocation8_spill] sm:$0xff] %v9715_v32  ;;  %v9717_v55 = vpop.f32.mrb[77].mxu0 }
 0x26f   : > { %10736 = vst [vmem:[#allocation6_spill] sm:$0xff] %v9717_v55  ;;  %v9719_v39 = vpop.f32.mrb[78].mxu0  ;;  %v4108_v55 = vld [vmem:[#allocation2 + $0x10f] sm:$0xff] }
 0x270   : > { %10737 = vst [vmem:[#allocation11_spill] sm:$0xff] %v9719_v39  ;;  %v9721_v23 = vpop.f32.mrb[79].mxu0 }
 0x271   : > { %10738 = vst [vmem:[#allocation9_spill] sm:$0xff] %v9721_v23  ;;  %7590 = vmatmul.mubr.bf16.gmra.mrb[24].mxu1 %v10739_v5 }
 0x272   : > { %7593 = vmatprep.mubr.bf16.mxu1 %v10740_v16  ;;  %v3739_v16 = vpack.c.bf16 %v3710_v2, %v9579_v36  ;;  %v3715_v36 = vld [vmem:[#allocation2 + $0x181] sm:$0xff] }
 0x275   : > { %v9729_v17 = vpop.f32.mrb[80].mxu0 }
 0x276   : > { %10741 = vst [vmem:[#allocation12_spill] sm:$0xff] %v9729_v17  ;;  %v9731_v34 = vpop.f32.mrb[81].mxu0  ;;  %v4104_v17 = vld [vmem:[#allocation2 + $0xef] sm:$0xff] }
 0x277   : > { %10742 = vst [vmem:[#allocation10_spill] sm:$0xff] %v9731_v34  ;;  %v9733_v24 = vpop.f32.mrb[82].mxu0  ;;  %v4103_v34 = vld [vmem:[#allocation2 + $0xe7] sm:$0xff] }
 0x278   : > { %10743 = vst [vmem:[#allocation13_spill] sm:$0xff] %v9733_v24  ;;  %v9735_v62 = vpop.f32.mrb[83].mxu0 }
 0x279   : > { %10744 = vst [vmem:[#allocation14_spill] sm:$0xff] %v9735_v62  ;;  %7594 = vmatmul.mubr.bf16.gmra.mrb[28].mxu1 %v10745_v13  ;;  %v10751_v62 = vpack.c.bf16 %v9379_v52, %v9377_v44  ;;  %v3716_v52 = vld [vmem:[#allocation2 + $0x189] sm:$0xff] }
 0x27a   : > { %7597 = vmatprep.mubr.bf16.mxu1 %v10746_v33 }
 0x27d   : > { %v9743_v21 = vpop.f32.mrb[84].mxu0 }
 0x27e   : > { %10747 = vst [vmem:[#allocation15_spill] sm:$0xff] %v9743_v21  ;;  %v9745_v58 = vpop.f32.mrb[85].mxu0 }
 0x27f   : > { %10748 = vst [vmem:[#allocation16_spill] sm:$0xff] %v9745_v58  ;;  %v9747_v31 = vpop.f32.mrb[86].mxu0  ;;  %v3740_v58 = vpack.c.bf16 %v3712_v26, %v3711_v10  ;;  %v9772_v26 = vld [vmem:[#allocation2 + $0x1a9] sm:$0xff] }
 0x280   : > { %10749 = vst [vmem:[#allocation18_spill] sm:$0xff] %v9747_v31  ;;  %v9749_v5 = vpop.f32.mrb[87].mxu0  ;;  %v3713_v31 = vld [vmem:[#allocation2 + $0x171] sm:$0xff] }
 0x281   : > { %10750 = vst [vmem:[#allocation17_spill] sm:$0xff] %v9749_v5  ;;  %7598 = vmatmul.mubr.bf16.gmra.mrb[32].mxu1 %v10751_v62  ;;  %v3741_v5 = vpack.c.bf16 %v3714_v59, %v3713_v31  ;;  %v4083_v31 = vld [vmem:[#allocation2 + $0x47] sm:$0xff] }
 0x282   : > { %7601 = vmatprep.mubr.bf16.mxu1 %v3739_v16  ;;  %v3742_v16 = vpack.c.bf16 %v3716_v52, %v3715_v36  ;;  %v3744_v36 = vpack.c.bf16 %v9772_v26, %v9603_v0  ;;  %v8449_v0 = vld [vmem:[%s10647_s5 + $0x1c8] sm:$0xff]  }
 0x285   : > { %v9755_v50 = vpop.f32.mrb[88].mxu0 }
 0x286   : > { %10752 = vst [vmem:[#allocation19_spill] sm:$0xff] %v9755_v50  ;;  %v9757_v13 = vpop.f32.mrb[89].mxu0  ;;  %v3717_v50 = vld [vmem:[#allocation2 + $0x191] sm:$0xff] }
 0x287   : > { %10753 = vst [vmem:[#allocation20_spill] sm:$0xff] %v9757_v13  ;;  %v9759_v33 = vpop.f32.mrb[90].mxu0  ;;  %v3743_v10 = vpack.c.bf16 %v9605_v22, %v3717_v50  ;;  %v4086_v22 = vld [vmem:[#allocation2 + $0x5f] sm:$0xff] }
 0x288   : > { %10754 = vst [vmem:[#allocation22_spill] sm:$0xff] %v9759_v33  ;;  %v9761_v21 = vpop.f32.mrb[91].mxu0 }
 0x289   : > { %10755 = vst [vmem:[#allocation21_spill] sm:$0xff] %v9761_v21  ;;  %7602 = vmatmul.mubr.bf16.gmra.mrb[36].mxu1 %v3740_v58  ;;  %v4097_v21 = vld [vmem:[#allocation2 + $0xb7] sm:$0xff] }
 0x28a   : > { %7605 = vmatprep.mubr.bf16.mxu1 %v3741_v5  ;;  %v4084_v5 = vld [vmem:[#allocation2 + $0x4f] sm:$0xff] }
 0x28d   : > { %v9763_v44 = vpop.f32.mrb[92].mxu0 }
 0x28e   : > { %10756 = vst [vmem:[#allocation23_spill] sm:$0xff] %v9763_v44  ;;  %v9765_v62 = vpop.f32.mrb[93].mxu0 }
 0x28f   : > { %10757 = vst [vmem:[#allocation24_spill] sm:$0xff] %v9765_v62  ;;  %v9767_v2 = vpop.f32.mrb[94].mxu0 }
 0x290   : > { %10758 = vst [vmem:[#allocation26_spill] sm:$0xff] %v9767_v2  ;;  %v9769_v13 = vpop.f32.mrb[95].mxu0  ;;  %v4085_v2 = vld [vmem:[#allocation2 + $0x57] sm:$0xff] }
 0x291   : > { %10759 = vst [vmem:[#allocation25_spill] sm:$0xff] %v9769_v13  ;;  %7606 = vmatmul.mubr.bf16.gmra.mrb[40].mxu1 %v3742_v16  ;;  %v4131_v13 = vpack.c.bf16 %v4084_v5, %v4083_v31  ;;  %v4087_v16 = vld [vmem:[#allocation2 + $0x67] sm:$0xff]  ;;  %v4090_v5 = vld [vmem:[#allocation2 + $0x7f] sm:$0xff] }
 0x292   : > { %7609 = vmatprep.mubr.bf16.mxu1 %v3743_v10  ;;  %v4088_v10 = vld [vmem:[#allocation2 + $0x6f] sm:$0xff] }
 0x293   : > { %v4133_v31 = vpack.c.bf16 %v4088_v10, %v4087_v16 }
 0x295   : > { %v9774_v58 = vpop.f32.mrb[96].mxu0 }
 0x296   : > { %10760 = vst [vmem:[#allocation27_spill] sm:$0xff] %v9774_v58  ;;  %v9776_v59 = vpop.f32.mrb[97].mxu0 }
 0x297   : > { %10761 = vst [vmem:[#allocation28_spill] sm:$0xff] %v9776_v59  ;;  %v9778_v44 = vpop.f32.mrb[98].mxu0  ;;  %v4132_v59 = vpack.c.bf16 %v4086_v22, %v4085_v2  ;;  %v4091_v2 = vld [vmem:[#allocation2 + $0x87] sm:$0xff]  ;;  %v4092_v22 = vld [vmem:[#allocation2 + $0x8f] sm:$0xff] }
 0x298   : > { %10762 = vst [vmem:[#allocation29_spill] sm:$0xff] %v9778_v44  ;;  %v9782_v52 = vpop.f32.mrb[99].mxu0  ;;  %v4135_v10 = vpack.c.bf16 %v4092_v22, %v4091_v2 }
 0x299   : > { %10763 = vst [vmem:[#allocation30_spill] sm:$0xff] %v9782_v52  ;;  %7610 = vmatmul.mubr.bf16.gmra.mrb[44].mxu1 %v3744_v36 }
 0x29a   : > { %7629 = vmatprep.mubr.bf16.mxu1 %v4131_v13  ;;  %v8450_v13 = vld [vmem:[%s10647_s5 + $0x1d0] sm:$0xff]  }
 0x29d   : > { %v9784_v50 = vpop.f32.mrb[100].mxu0 }
 0x29e   : > { %10764 = vst [vmem:[#allocation31_spill] sm:$0xff] %v9784_v50  ;;  %v9786_v58 = vpop.f32.mrb[101].mxu0  ;;  %v4098_v50 = vld [vmem:[#allocation2 + $0xbf] sm:$0xff] }
 0x29f   : > { %10765 = vst [vmem:[#allocation32_spill] sm:$0xff] %v9786_v58  ;;  %v9788_v62 = vpop.f32.mrb[102].mxu0 }
 0x2a0   : > { %10766 = vst [vmem:[#allocation33_spill] sm:$0xff] %v9788_v62  ;;  %v9790_v44 = vpop.f32.mrb[103].mxu0  ;;  %v4089_v62 = vld [vmem:[#allocation2 + $0x77] sm:$0xff] }
 0x2a1   : > { %10767 = vst [vmem:[#allocation34_spill] sm:$0xff] %v9790_v44  ;;  %7630 = vmatmul.mubr.bf16.vlgmr.msra.gmra.mrb[0].mxu1 %v4132_v59  ;;  %v4134_v59 = vpack.c.bf16 %v4090_v5, %v4089_v62  ;;  %v4095_v62 = vld [vmem:[#allocation2 + $0xa7] sm:$0xff] }
 0x2a2   : > { %7678 = vmatpush3.bf16.msra.mxu1 %v9684_v60  ;;  %7633 = vmatprep.mubr.bf16.mxu1 %v4133_v31  ;;  %v8451_v60 = vld [vmem:[%s10647_s5 + $0x1d8] sm:$0xff]   ;;  %v8452_v31 = vld [vmem:[%s10647_s5 + $0x1e0] sm:$0xff]  }
 0x2a3   : > { %7679 = vmatprep.subr.bf16.mxu1 %v8449_v0 }
 0x2a5   : > { %v9799_v36 = vpop.f32.mrb[104].mxu0 }
 0x2a6   : > { %10768 = vst [vmem:[#allocation35_spill] sm:$0xff] %v9799_v36  ;;  %v9801_v44 = vpop.f32.mrb[105].mxu0  ;;  %7680 = vmatpush3.bf16.msra.mxu1 %v8449_v0  ;;  %v4096_v0 = vld [vmem:[#allocation2 + $0xaf] sm:$0xff] }
 0x2a7   : > { %10769 = vst [vmem:[#allocation36_spill] sm:$0xff] %v9801_v44  ;;  %v9803_v58 = vpop.f32.mrb[106].mxu0  ;;  %7681 = vmatprep.subr.bf16.mxu1 %v8450_v13  ;;  %v4094_v44 = vld [vmem:[#allocation2 + $0x9f] sm:$0xff] }
 0x2a8   : > { %10770 = vst [vmem:[#allocation37_spill] sm:$0xff] %v9803_v58  ;;  %v9805_v16 = vpop.f32.mrb[107].mxu0 }
 0x2a9   : > { %10771 = vst [vmem:[#allocation38_spill] sm:$0xff] %v9805_v16  ;;  %7634 = vmatmul.mubr.bf16.gmra.mrb[4].mxu1 %v4134_v59  ;;  %v4093_v16 = vld [vmem:[#allocation2 + $0x97] sm:$0xff]  ;;  %v4137_v59 = vpack.c.bf16 %v4096_v0, %v4095_v62  ;;  %v4138_v62 = vpack.c.bf16 %v4098_v50, %v4097_v21 }
 0x2aa   : > { %7637 = vmatprep.mubr.bf16.mxu1 %v4135_v10  ;;  %7682 = vmatpush3.bf16.msra.mxu1 %v8450_v13  ;;  %v4136_v2 = vpack.c.bf16 %v4094_v44, %v4093_v16  ;;  %v8453_v13 = vld [vmem:[%s10647_s5 + $0x1e8] sm:$0xff]   ;;  %v8454_v10 = vld [vmem:[%s10647_s5 + $0x1f0] sm:$0xff]  }
 0x2ab   : > { %7683 = vmatprep.subr.bf16.mxu1 %v8451_v60  ;;  %v4099_v44 = vld [vmem:[#allocation2 + $0xc7] sm:$0xff]  ;;  %v4100_v16 = vld [vmem:[#allocation2 + $0xcf] sm:$0xff]  ;;  %v4101_v21 = vld [vmem:[#allocation2 + $0xd7] sm:$0xff] }
 0x2ad   : > { %v9813_v58 = vpop.f32.mrb[108].mxu0 }
 0x2ae   : > { %v9815_v5 = vpop.f32.mrb[109].mxu0  ;;  %7684 = vmatpush3.bf16.msra.mxu1 %v8451_v60 }
 0x2af   : > { %v9817_v36 = vpop.f32.mrb[110].mxu0  ;;  %7685 = vmatprep.subr.bf16.mxu1 %v8452_v31 }
 0x2b0   : > { %v9819_v22 = vpop.f32.mrb[111].mxu0 }
 0x2b1   : > { %7638 = vmatmul.mubr.bf16.gmra.mrb[8].mxu1 %v4136_v2  ;;  %v4139_v2 = vpack.c.bf16 %v4100_v16, %v4099_v44  ;;  %v9849_v44 = vld [vmem:[%s10647_s5 + $0x200] sm:$0xff]  }
 0x2b2   : > { %7641 = vmatprep.mubr.bf16.mxu1 %v4137_v59  ;;  %7686 = vmatpush3.bf16.msra.mxu1 %v8452_v31  ;;  %v8455_v31 = vld [vmem:[%s10647_s5 + $0x1f8] sm:$0xff]  }
 0x2b3   : > { %7687 = vmatprep.subr.bf16.mxu1 %v8453_v13  ;;  %v4102_v59 = vld [vmem:[#allocation2 + $0xdf] sm:$0xff] }
 0x2b4   : > { %v4106_v16 = vld [vmem:[#allocation2 + $0xff] sm:$0xff] }
 0x2b5   : > { %v9827_v52 = vpop.f32.mrb[112].mxu0 }
 0x2b6   : > { %v9829_v60 = vpop.f32.mrb[113].mxu0  ;;  %7688 = vmatpush3.bf16.msra.mxu1 %v8453_v13  ;;  %v4140_v13 = vpack.c.bf16 %v4102_v59, %v4101_v21 }
 0x2b7   : > { %v9831_v33 = vpop.f32.mrb[114].mxu0  ;;  %7689 = vmatprep.subr.bf16.mxu1 %v8454_v10 }
 0x2b8   : > { %v9833_v0 = vpop.f32.mrb[115].mxu0 }
 0x2b9   : > { %7642 = vmatmul.mubr.bf16.gmra.mrb[12].mxu1 %v4138_v62 }
 0x2ba   : > { %7645 = vmatprep.mubr.bf16.mxu1 %v4139_v2  ;;  %7690 = vmatpush3.bf16.msra.mxu1 %v8454_v10  ;;  %v4141_v10 = vpack.c.bf16 %v4104_v17, %v4103_v34  ;;  %v4107_v2 = vld [vmem:[#allocation2 + $0x107] sm:$0xff] }
 0x2bb   : > { %7691 = vmatprep.subr.bf16.mxu1 %v8455_v31  ;;  %v4143_v40 = vpack.c.bf16 %v4108_v55, %v4107_v2  ;;  %v4111_v34 = vld [vmem:[#allocation2 + $0x127] sm:$0xff]  ;;  %v4116_v2 = vld [vmem:[#allocation2 + $0x14f] sm:$0xff] }
 0x2bd   : > { %v9838_v24 = vpop.f32.mrb[116].mxu0 }
 0x2be   : > { %v9840_v23 = vpop.f32.mrb[117].mxu0  ;;  %7692 = vmatpush3.bf16.msra.mxu1 %v8455_v31  ;;  %v4105_v31 = vld [vmem:[#allocation2 + $0xf7] sm:$0xff] }
 0x2bf   : > { %v9842_v50 = vpop.f32.mrb[118].mxu0  ;;  %7933 = vmatprep.subr.bf16.mxu1 %v9849_v44  ;;  %v4142_v21 = vpack.c.bf16 %v4106_v16, %v4105_v31  ;;  %v4114_v16 = vld [vmem:[#allocation2 + $0x13f] sm:$0xff] }
 0x2c0   : > { %v9844_v39 = vpop.f32.mrb[119].mxu0 }
 0x2c1   : > { %10772 = vst [vmem:[#allocation39_spill] sm:$0xff] %v9844_v39  ;;  %7646 = vmatmul.mubr.bf16.gmra.mrb[16].mxu1 %v4140_v13  ;;  %v4112_v13 = vld [vmem:[#allocation2 + $0x12f] sm:$0xff] }
 0x2c2   : > { %7649 = vmatprep.mubr.bf16.mxu1 %v4141_v10 }
 0x2c5   : > { %v9852_v62 = vpop.f32.mrb[120].mxu0 }
 0x2c6   : > { %10773 = vst [vmem:[#allocation40_spill] sm:$0xff] %v9852_v62  ;;  %v9854_v32 = vpop.f32.mrb[121].mxu0  ;;  %v4109_v62 = vld [vmem:[#allocation2 + $0x117] sm:$0xff] }
 0x2c7   : > { %10774 = vst [vmem:[#allocation41_spill] sm:$0xff] %v9854_v32  ;;  %v9856_v59 = vpop.f32.mrb[122].mxu0  ;;  %v4144_v32 = vpack.c.bf16 %v4110_v35, %v4109_v62  ;;  %v4118_v35 = vld [vmem:[#allocation2 + $0x15f] sm:$0xff] }
 0x2c8   : > { %10775 = vst [vmem:[#allocation42_spill] sm:$0xff] %v9856_v59  ;;  %v9858_v14 = vpop.f32.mrb[123].mxu0  ;;  %v4145_v59 = vpack.c.bf16 %v4112_v13, %v4111_v34  ;;  %v4117_v13 = vld [vmem:[#allocation2 + $0x157] sm:$0xff] }
 0x2c9   : > { %10776 = vst [vmem:[#allocation43_spill] sm:$0xff] %v9858_v14  ;;  %7650 = vmatmul.mubr.bf16.gmra.mrb[20].mxu1 %v4142_v21  ;;  %v4113_v21 = vld [vmem:[#allocation2 + $0x137] sm:$0xff] }
 0x2ca   : > { %7653 = vmatprep.mubr.bf16.mxu1 %v4143_v40  ;;  %v4115_v40 = vld [vmem:[#allocation2 + $0x147] sm:$0xff] }
 0x2cd   : > { %v9860_v17 = vpop.f32.mrb[124].mxu0 }
 0x2ce   : > { %10777 = vst [vmem:[#allocation44_spill] sm:$0xff] %v9860_v17  ;;  %v9862_v10 = vpop.f32.mrb[125].mxu0 }
 0x2cf   : > { %10778 = vst [vmem:[#allocation45_spill] sm:$0xff] %v9862_v10  ;;  %v9864_v4 = vpop.f32.mrb[126].mxu0  ;;  %v4146_v10 = vpack.c.bf16 %v4114_v16, %v4113_v21  ;;  %v4122_v16 = vld [vmem:[#allocation2 + $0x17f] sm:$0xff] }
 0x2d0   : > { %10779 = vst [vmem:[#allocation46_spill] sm:$0xff] %v9864_v4  ;;  %v9866_v39 = vpop.f32.mrb[127].mxu0  ;;  %v4147_v4 = vpack.c.bf16 %v4116_v2, %v4115_v40  ;;  %v4123_v40 = vld [vmem:[#allocation2 + $0x187] sm:$0xff] }
 0x2d1   : > { %10780 = vst [vmem:[#allocation47_spill] sm:$0xff] %v9866_v39  ;;  %7654 = vmatmul.mubr.bf16.gmra.mrb[24].mxu1 %v4144_v32  ;;  %v4119_v32 = vld [vmem:[#allocation2 + $0x167] sm:$0xff] }
 0x2d2   : > { %7657 = vmatprep.mubr.bf16.mxu1 %v4145_v59  ;;  %v4120_v59 = vld [vmem:[#allocation2 + $0x16f] sm:$0xff]  ;;  %v8456_v21 = vld [vmem:[%s10650_s8] sm:$0xff]  }
 0x2d3   : > { %7805 = vmatprep.subr.bf16.mxu0 %v8456_v21 }
 0x2d4   : > { %7806 = vmatpush3.bf16.msra.mxu0 %v8456_v21 }
 0x2d5   : > { %v9868_v55 = vpop.f32.mrb[128].mxu0 }
 0x2d6   : > { %10781 = vst [vmem:[#allocation48_spill] sm:$0xff] %v9868_v55  ;;  %v9870_v31 = vpop.f32.mrb[129].mxu0 }
 0x2d7   : > { %10782 = vst [vmem:[#allocation49_spill] sm:$0xff] %v9870_v31  ;;  %v9872_v17 = vpop.f32.mrb[130].mxu0  ;;  %v4148_v31 = vpack.c.bf16 %v4118_v35, %v4117_v13  ;;  %v8457_v35 = vld [vmem:[%s10650_s8 + $0x8] sm:$0xff]   ;;  %v4121_v13 = vld [vmem:[#allocation2 + $0x177] sm:$0xff] }
 0x2d8   : > { %10783 = vst [vmem:[#allocation50_spill] sm:$0xff] %v9872_v17  ;;  %v9874_v14 = vpop.f32.mrb[131].mxu0  ;;  %v4149_v17 = vpack.c.bf16 %v4120_v59, %v4119_v32  ;;  %7807 = vmatprep.subr.bf16.mxu0 %v8457_v35  ;;  %v8458_v59 = vld [vmem:[%s10650_s8 + $0x10] sm:$0xff]  }
 0x2d9   : > { %7658 = vmatmul.mubr.bf16.gmra.mrb[28].mxu1 %v4146_v10  ;;  %7808 = vmatpush3.bf16.msra.mxu0 %v8457_v35  ;;  %v8460_v35 = vld [vmem:[%s10650_s8 + $0x20] sm:$0xff]  }
 0x2da   : > { %7661 = vmatprep.mubr.bf16.mxu1 %v4147_v4  ;;  %v4124_v4 = vld [vmem:[#allocation2 + $0x18f] sm:$0xff]  ;;  %7809 = vmatprep.subr.bf16.mxu0 %v8458_v59 }
 0x2db   : > { %v4151_v32 = vpack.c.bf16 %v4124_v4, %v4123_v40  ;;  %v4125_v40 = vld [vmem:[#allocation2 + $0x197] sm:$0xff] }
 0x2dd   : > { %v9876_v62 = vpop.f32.mrb[132].mxu0  ;;  %7810 = vmatpush3.bf16.msra.mxu0 %v8458_v59 }
 0x2de   : > { %10784 = vst [vmem:[#allocation51_spill] sm:$0xff] %v9876_v62  ;;  %v9878_v34 = vpop.f32.mrb[133].mxu0 }
 0x2df   : > { %10785 = vst [vmem:[#allocation52_spill] sm:$0xff] %v9878_v34  ;;  %v9880_v55 = vpop.f32.mrb[134].mxu0  ;;  %v4128_v34 = vld [vmem:[#allocation2 + $0x1af] sm:$0xff] }
 0x2e0   : > { %10786 = vst [vmem:[#allocation53_spill] sm:$0xff] %v9880_v55  ;;  %v9882_v39 = vpop.f32.mrb[135].mxu0  ;;  %v4127_v55 = vld [vmem:[#allocation2 + $0x1a7] sm:$0xff] }
 0x2e1   : > { %10787 = vst [vmem:[#allocation54_spill] sm:$0xff] %v9882_v39  ;;  %7662 = vmatmul.mubr.bf16.gmra.mrb[32].mxu1 %v4148_v31  ;;  %v4150_v31 = vpack.c.bf16 %v4122_v16, %v4121_v13  ;;  %v8459_v16 = vld [vmem:[%s10650_s8 + $0x18] sm:$0xff]  }
 0x2e2   : > { %7665 = vmatprep.mubr.bf16.mxu1 %v4149_v17  ;;  %7811 = vmatprep.subr.bf16.mxu0 %v8459_v16 }
 0x2e3   : > { %7812 = vmatpush3.bf16.msra.mxu0 %v8459_v16  ;;  %v4496_v16 = vld [vmem:[#allocation2 + $0x60] sm:$0xff] }
 0x2e4   : > { %7813 = vmatprep.subr.bf16.mxu0 %v8460_v35 }
 0x2e5   : > { %v9884_v10 = vpop.f32.mrb[136].mxu0 }
 0x2e6   : > { %10788 = vst [vmem:[#allocation55_spill] sm:$0xff] %v9884_v10  ;;  %v9886_v2 = vpop.f32.mrb[137].mxu0 }
 0x2e7   : > { %10789 = vst [vmem:[#allocation56_spill] sm:$0xff] %v9886_v2  ;;  %v9894_v39 = vpop.f32.mrb[138].mxu0  ;;  %v4126_v2 = vld [vmem:[#allocation2 + $0x19f] sm:$0xff]  ;;  %7814 = vmatpush3.bf16.msra.mxu0 %v8460_v35 }
 0x2e8   : > { %10790 = vst [vmem:[#allocation57_spill] sm:$0xff] %v9894_v39  ;;  %v9896_v17 = vpop.f32.mrb[139].mxu0  ;;  %v4152_v21 = vpack.c.bf16 %v4126_v2, %v4125_v40  ;;  %v4494_v40 = vld [vmem:[#allocation2 + $0x50] sm:$0xff]  ;;  %v4500_v35 = vld [vmem:[#allocation2 + $0x80] sm:$0xff] }
 0x2e9   : > { %10791 = vst [vmem:[#allocation58_spill] sm:$0xff] %v9896_v17  ;;  %7666 = vmatmul.mubr.bf16.gmra.mrb[36].mxu1 %v4150_v31  ;;  %v4153_v31 = vpack.c.bf16 %v4128_v34, %v4127_v55  ;;  %v8461_v55 = vld [vmem:[%s10650_s8 + $0x28] sm:$0xff]   ;;  %v4129_v34 = vld [vmem:[#allocation2 + $0x1b7] sm:$0xff] }
 0x2ea   : > { %7669 = vmatprep.mubr.bf16.mxu1 %v4151_v32  ;;  %v4130_v32 = vld [vmem:[#allocation2 + $0x1bf] sm:$0xff]  ;;  %7815 = vmatprep.subr.bf16.mxu0 %v8461_v55 }
 0x2eb   : > { %v4154_v59 = vpack.c.bf16 %v4130_v32, %v4129_v34  ;;  %7816 = vmatpush3.bf16.msra.mxu0 %v8461_v55  ;;  %v4498_v32 = vld [vmem:[#allocation2 + $0x70] sm:$0xff]  ;;  %v4501_v55 = vld [vmem:[#allocation2 + $0x88] sm:$0xff] }
 0x2ed   : > { %v9901_v10 = vpop.f32.mrb[140].mxu0 }
 0x2ee   : > { %10792 = vst [vmem:[#allocation59_spill] sm:$0xff] %v9901_v10  ;;  %v9903_v39 = vpop.f32.mrb[141].mxu0  ;;  %v4493_v10 = vld [vmem:[#allocation2 + $0x48] sm:$0xff] }
 0x2ef   : > { %10793 = vst [vmem:[#allocation60_spill] sm:$0xff] %v9903_v39  ;;  %v9908_v4 = vpop.f32.mrb[142].mxu0 }
 0x2f0   : > { %10794 = vst [vmem:[#allocation61_spill] sm:$0xff] %v9908_v4  ;;  %v9910_v13 = vpop.f32.mrb[143].mxu0  ;;  %v4495_v4 = vld [vmem:[#allocation2 + $0x58] sm:$0xff] }
 0x2f1   : > { %10795 = vst [vmem:[#allocation62_spill] sm:$0xff] %v9910_v13  ;;  %7670 = vmatmul.mubr.bf16.gmra.mrb[40].mxu1 %v4152_v21 }
 0x2f2   : > { %7673 = vmatprep.mubr.bf16.mxu1 %v4153_v31  ;;  %v4541_v31 = vpack.c.bf16 %v4494_v40, %v4493_v10  ;;  %v8492_v10 = vld [vmem:[%s10647_s5 + $0x208] sm:$0xff]  }
 0x2f5   : > { %v9915_v39 = vpop.f32.mrb[144].mxu0 }
 0x2f6   : > { %10796 = vst [vmem:[#allocation63_spill] sm:$0xff] %v9915_v39  ;;  %v9917_v17 = vpop.f32.mrb[145].mxu0 }
 0x2f7   : > { %10797 = vst [vmem:[#allocation64_spill] sm:$0xff] %v9917_v17  ;;  %v9922_v2 = vpop.f32.mrb[146].mxu0  ;;  %v4497_v17 = vld [vmem:[#allocation2 + $0x68] sm:$0xff] }
 0x2f8   : > { %10798 = vst [vmem:[#allocation65_spill] sm:$0xff] %v9922_v2  ;;  %v9924_v21 = vpop.f32.mrb[147].mxu0  ;;  %v4542_v2 = vpack.c.bf16 %v4496_v16, %v4495_v4  ;;  %v8493_v4 = vld [vmem:[%s10647_s5 + $0x210] sm:$0xff]   ;;  %v4503_v16 = vld [vmem:[#allocation2 + $0x98] sm:$0xff] }
 0x2f9   : > { %10799 = vst [vmem:[#allocation66_spill] sm:$0xff] %v9924_v21  ;;  %7674 = vmatmul.mubr.bf16.gmra.mrb[44].mxu1 %v4154_v59  ;;  %v4543_v21 = vpack.c.bf16 %v4498_v32, %v4497_v17  ;;  %v4499_v59 = vld [vmem:[#allocation2 + $0x78] sm:$0xff] }
 0x2fa   : > { %7693 = vmatprep.mubr.bf16.mxu1 %v4541_v31  ;;  %v4544_v40 = vpack.c.bf16 %v4500_v35, %v4499_v59  ;;  %v4502_v31 = vld [vmem:[#allocation2 + $0x90] sm:$0xff]  ;;  %v8495_v35 = vld [vmem:[%s10647_s5 + $0x220] sm:$0xff]   ;;  %v8496_v59 = vld [vmem:[%s10647_s5 + $0x228] sm:$0xff]  }
 0x2fb   : > { %v4545_v17 = vpack.c.bf16 %v4502_v31, %v4501_v55  ;;  %v4509_v31 = vld [vmem:[#allocation2 + $0xc8] sm:$0xff] }
 0x2fd   : > { %v9926_v39 = vpop.f32.mrb[148].mxu0 }
 0x2fe   : > { %v9928_v13 = vpop.f32.mrb[149].mxu0 }
 0x2ff   : > { %v9930_v62 = vpop.f32.mrb[150].mxu0 }
 0x300   : > { %v9932_v34 = vpop.f32.mrb[151].mxu0 }
 0x301   : > { %7694 = vmatmul.mubr.bf16.vlgmr.msra.gmra.mrb[0].mxu1 %v4542_v2  ;;  %v4504_v2 = vld [vmem:[#allocation2 + $0xa0] sm:$0xff] }
 0x302   : > { %7941 = vmatpush3.bf16.msra.mxu1 %v9849_v44  ;;  %7697 = vmatprep.mubr.bf16.mxu1 %v4543_v21  ;;  %v8494_v44 = vld [vmem:[%s10647_s5 + $0x218] sm:$0xff]   ;;  %v4505_v21 = vld [vmem:[#allocation2 + $0xa8] sm:$0xff]  ;;  %v4546_v32 = vpack.c.bf16 %v4504_v2, %v4503_v16  ;;  %v8497_v2 = vld [vmem:[%s10647_s5 + $0x230] sm:$0xff]  }
 0x303   : > { %7934 = vmatprep.subr.bf16.mxu1 %v8492_v10  ;;  %v8498_v16 = vld [vmem:[%s10647_s5 + $0x238] sm:$0xff]  }
 0x306   : > { %7942 = vmatpush3.bf16.msra.mxu1 %v8492_v10  ;;  %v4506_v10 = vld [vmem:[#allocation2 + $0xb0] sm:$0xff] }
 0x307   : > { %7935 = vmatprep.subr.bf16.mxu1 %v8493_v4  ;;  %v4547_v55 = vpack.c.bf16 %v4506_v10, %v4505_v21  ;;  %v4513_v10 = vld [vmem:[#allocation2 + $0xe8] sm:$0xff] }
 0x309   : > { %7698 = vmatmul.mubr.bf16.gmra.mrb[4].mxu1 %v4544_v40  ;;  %v4508_v40 = vld [vmem:[#allocation2 + $0xc0] sm:$0xff] }
 0x30a   : > { %7701 = vmatprep.mubr.bf16.mxu1 %v4545_v17  ;;  %7943 = vmatpush3.bf16.msra.mxu1 %v8493_v4  ;;  %v4507_v4 = vld [vmem:[#allocation2 + $0xb8] sm:$0xff] }
 0x30b   : > { %7936 = vmatprep.subr.bf16.mxu1 %v8494_v44  ;;  %v4548_v17 = vpack.c.bf16 %v4508_v40, %v4507_v4  ;;  %v4515_v4 = vld [vmem:[#allocation2 + $0xf8] sm:$0xff] }
 0x30e   : > { %7944 = vmatpush3.bf16.msra.mxu1 %v8494_v44  ;;  %v4510_v44 = vld [vmem:[#allocation2 + $0xd0] sm:$0xff] }
 0x30f   : > { %7937 = vmatprep.subr.bf16.mxu1 %v8495_v35  ;;  %v4549_v21 = vpack.c.bf16 %v4510_v44, %v4509_v31  ;;  %v4552_v31 = vpack.c.bf16 %v9581_v1, %v4515_v4  ;;  %v10801_v44 = vpack.c.bf16 %v9434_v8, %v9441_v42  ;;  %v10804_v1 = vpack.c.bf16 %v9459_v7, %v9449_v6  ;;  %v4538_v42 = vld [vmem:[#allocation2 + $0x1b0] sm:$0xff] }
 0x310   : > { %v10807_v8 = vpack.c.bf16 %v9456_v3, %v9471_v9  ;;  %v4563_v7 = vpack.c.bf16 %v4538_v42, %v9617_v37  ;;  %v4950_v9 = vld [vmem:[#allocation2 + $0x1c1] sm:$0xff] }
 0x311   : > { %7702 = vmatmul.mubr.bf16.gmra.mrb[8].mxu1 %v4546_v32  ;;  %v4512_v32 = vld [vmem:[#allocation2 + $0xe0] sm:$0xff] }
 0x312   : > { %7705 = vmatprep.mubr.bf16.mxu1 %v4547_v55  ;;  %7945 = vmatpush3.bf16.msra.mxu1 %v8495_v35  ;;  %v4511_v35 = vld [vmem:[#allocation2 + $0xd8] sm:$0xff] }
 0x313   : > { %7938 = vmatprep.subr.bf16.mxu1 %v8496_v59  ;;  %v4550_v55 = vpack.c.bf16 %v4512_v32, %v4511_v35 }
 0x316   : > { %7946 = vmatpush3.bf16.msra.mxu1 %v8496_v59  ;;  %v4514_v59 = vld [vmem:[#allocation2 + $0xf0] sm:$0xff] }
 0x317   : > { %7939 = vmatprep.subr.bf16.mxu1 %v8497_v2  ;;  %v4551_v40 = vpack.c.bf16 %v4514_v59, %v4513_v10  ;;  %v10010_v59 = vld [vmem:[%s10649_s7] ss:$0 sm:$0xff] }
 0x319   : > { %7706 = vmatmul.mubr.bf16.gmra.mrb[12].mxu1 %v4548_v17  ;;  %v10800_v17 = vpack.c.bf16 %v9432_v20, %v9430_v53  ;;  %v10805_v53 = vpack.c.bf16 %v9452_v18, %v9467_v27  ;;  %v10806_v20 = vpack.c.bf16 %v9469_v63, %v9454_v48  ;;  %v4539_v63 = vld [vmem:[#allocation2 + $0x1b8] sm:$0xff] }
 0x31a   : > { %7709 = vmatprep.mubr.bf16.mxu1 %v4549_v21  ;;  %7947 = vmatpush3.bf16.msra.mxu1 %v8497_v2  ;;  %v10802_v2 = vpack.c.bf16 %v9443_v30, %v9436_v28  ;;  %v10803_v21 = vpack.c.bf16 %v9447_v47, %v9445_v19  ;;  %v10808_v28 = vpack.c.bf16 %v9484_v57, %v9461_v54  ;;  %v4540_v19 = vld [vmem:[#allocation2 + $0x1c0] sm:$0xff]  ;;  %v4948_v47 = vld [vmem:[#allocation2 + $0x1b1] sm:$0xff] }
 0x31b   : > { %7940 = vmatprep.subr.bf16.mxu1 %v8498_v16  ;;  %v10809_v30 = vpack.c.bf16 %v9463_v61, %v9486_v12  ;;  %v4564_v6 = vpack.c.bf16 %v4540_v19, %v4539_v63  ;;  %v4973_v18 = vpack.c.bf16 %v4948_v47, %v9772_v26  ;;  %v8462_v54 = vld [vmem:[%s10650_s8 + $0x30] sm:$0xff]   ;;  %v4949_v57 = vld [vmem:[#allocation2 + $0x1b9] sm:$0xff] }
 0x31c   : > { %v4974_v48 = vpack.c.bf16 %v4950_v9, %v4949_v57  ;;  %7817 = vmatprep.subr.bf16.mxu0 %v8462_v54  ;;  %v8463_v12 = vld [vmem:[%s10650_s8 + $0x38] sm:$0xff]   ;;  %v8464_v61 = vld [vmem:[%s10653_s11] sm:$0xff]  }
 0x31d   : > { %7818 = vmatpush3.bf16.msra.mxu0 %v8462_v54  ;;  %v10002_v26 = vld [vmem:[%s10648_s6] ss:$0 sm:$0xff] }
 0x31e   : > { %7948 = vmatpush3.bf16.msra.mxu1 %v8498_v16  ;;  %7819 = vmatprep.subr.bf16.mxu0 %v8463_v12 }
 0x321   : > { %7710 = vmatmul.mubr.bf16.gmra.mrb[16].mxu1 %v4550_v55  ;;  %7820 = vmatpush3.bf16.msra.mxu0 %v8463_v12 }
 0x322   : > { %7713 = vmatprep.mubr.bf16.mxu1 %v4551_v40  ;;  %7869 = vmatprep.subr.bf16.mxu0 %v8464_v61 }
 0x329   : > { %7714 = vmatmul.mubr.bf16.gmra.mrb[20].mxu1 %v4552_v31 }
 0x32a   : > { %7717 = vmatprep.mubr.bf16.mxu1 %v10800_v17 }
 0x331   : > { %7718 = vmatmul.mubr.bf16.gmra.mrb[24].mxu1 %v10801_v44 }
 0x332   : > { %7721 = vmatprep.mubr.bf16.mxu1 %v10802_v2 }
 0x339   : > { %7722 = vmatmul.mubr.bf16.gmra.mrb[28].mxu1 %v10803_v21 }
 0x33a   : > { %7725 = vmatprep.mubr.bf16.mxu1 %v10804_v1 }
 0x341   : > { %7726 = vmatmul.mubr.bf16.gmra.mrb[32].mxu1 %v10805_v53 }
 0x342   : > { %7729 = vmatprep.mubr.bf16.mxu1 %v10806_v20 }
 0x349   : > { %7730 = vmatmul.mubr.bf16.gmra.mrb[36].mxu1 %v10807_v8 }
 0x34a   : > { %7733 = vmatprep.mubr.bf16.mxu1 %v10808_v28 }
 0x351   : > { %7734 = vmatmul.mubr.bf16.gmra.mrb[40].mxu1 %v10809_v30 }
 0x352   : > { %7737 = vmatprep.mubr.bf16.mxu1 %v4563_v7 }
 0x359   : > { %7738 = vmatmul.mubr.bf16.gmra.mrb[44].mxu1 %v4564_v6 }
 0x35a   : > { %7801 = vmatprep.mubr.bf16.mxu1 %v4973_v18 }
 0x365   : > { %7802 = vmatmul.mubr.bf16.vlgmr.msra.gmra.mrb[44].mxu1 %v4974_v48 }
 0x3d4   : > { %v7695_v3 = vpop.f32.mrb[0].mxu1 }
 0x3d5   : > { %v7949_v27 = vadd.f32 %v7695_v3, %v9644_v49  ;;  %v4664_v37 = vpop.f32.mrb[1].mxu1 }
 0x3d6   : > { %v7951_v16 = vadd.f32 %v4664_v37, %v9646_v45  ;;  %v7696_v32 = vpop.f32.mrb[2].mxu1 }
 0x3d7   : > { %v7950_v10 = vadd.f32 %v7949_v27, %v9813_v58  ;;  %v7953_v35 = vadd.f32 %v7696_v32, %v9648_v29  ;;  %v4667_v55 = vpop.f32.mrb[3].mxu1 }
 0x3d8   : > { %v7952_v49 = vadd.f32 %v7951_v16, %v9815_v5  ;;  %v7955_v40 = vadd.f32 %v4667_v55, %v9650_v15 }
 0x3d9   : > { %v5322_v4 = vmul.f32 %v7950_v10, %v10002_v26  ;;  %v7954_v31 = vadd.f32 %v7953_v35, %v9817_v36 }
 0x3da   : > { %v5320_v45 = vmul.f32 %v7952_v49, %v10002_v26  ;;  %v7956_v58 = vadd.f32 %v7955_v40, %v9819_v22 }
 0x3db   : > { %v5377_v29 = vadd.f32 %v10010_v59, %v5322_v4  ;;  %v5323_v17 = vmul.f32 %v7954_v31, %v10002_v26 }
 0x3dc   : > { %v5321_v44 = vmul.f32 %v7956_v58, %v10002_v26  ;;  %v7699_v2 = vpop.f32.mrb[4].mxu1  ;;  %v5375_v21 = vadd.f32 %v10010_v59, %v5320_v45  ;;  %v10810_v45 = vld [vmem:[#allocation39_spill] sm:$0xff] }
 0x3dd   : > { %v5378_v5 = vadd.f32 %v10010_v59, %v5323_v17  ;;  %v7957_v15 = vadd.f32 %v7699_v2, %v9664_v51  ;;  %v4680_v1 = vpop.f32.mrb[5].mxu1  ;;  %v5425_v22 = vmax.f32 %v5377_v29, 0.0 }
 0x3de   : > { %v7959_v36 = vadd.f32 %v4680_v1, %v9666_v56  ;;  %v7700_v53 = vpop.f32.mrb[6].mxu1  ;;  %v5376_v20 = vadd.f32 %v10010_v59, %v5321_v44  ;;  %v5423_v47 = vmax.f32 %v5375_v21, 0.0  ;;  %v10811_v21 = vld [vmem:[#allocation4_spill] sm:$0xff] }
 0x3df   : > { %v5426_v8 = vmax.f32 %v5378_v5, 0.0  ;;  %v7958_v28 = vadd.f32 %v7957_v15, %v9827_v52  ;;  %v7961_v42 = vadd.f32 %v7700_v53, %v9668_v41  ;;  %v4683_v7 = vpop.f32.mrb[7].mxu1 }
 0x3e0   : > { %v7960_v30 = vadd.f32 %v7959_v36, %v9829_v60  ;;  %v7963_v19 = vadd.f32 %v4683_v7, %v9670_v11  ;;  %v5424_v63 = vmax.f32 %v5376_v20, 0.0  ;;  %v8465_v11 = vld [vmem:[%s10653_s11 + $0x8] sm:$0xff]   ;;  %v10812_v36 = vld [vmem:[#allocation3_spill] sm:$0xff] }
 0x3e1   : > { %v5472_v51 = vpack.c.bf16 %v5426_v8, %v5425_v22  ;;  %v5326_v6 = vmul.f32 %v7958_v28, %v10002_v26  ;;  %v7962_v56 = vadd.f32 %v7961_v42, %v9831_v33  ;;  %v10813_v8 = vld [vmem:[#allocation40_spill] sm:$0xff]  ;;  %v10814_v42 = vld [vmem:[#allocation7_spill] sm:$0xff] }
 0x3e2   : > { %v5324_v18 = vmul.f32 %v7960_v30, %v10002_v26  ;;  %v7964_v9 = vadd.f32 %v7963_v19, %v9833_v0  ;;  %v5471_v54 = vpack.c.bf16 %v5424_v63, %v5423_v47  ;;  %v8468_v63 = vld [vmem:[%s10653_s11 + $0x20] sm:$0xff]  }
 0x3e3   : > { %v5327_v52 = vmul.f32 %v7962_v56, %v10002_v26  ;;  %v5381_v41 = vadd.f32 %v10010_v59, %v5326_v6  ;;  %v10816_v56 = vld [vmem:[#allocation5_spill] sm:$0xff] }
 0x3e4   : > { %v5325_v60 = vmul.f32 %v7964_v9, %v10002_v26  ;;  %v7703_v57 = vpop.f32.mrb[8].mxu1  ;;  %7821 = vmatprep.mubr.bf16.mxu0 %v5471_v54  ;;  %v5379_v48 = vadd.f32 %v10010_v59, %v5324_v18 }
 0x3e5   : > { %v7965_v33 = vadd.f32 %v7703_v57, %v9686_v46  ;;  %v4696_v12 = vpop.f32.mrb[9].mxu1  ;;  %7822 = vmatmul.mubr.bf16.vlgmr.msra.gmra.mrb[152].mxu0 %v5472_v51  ;;  %v5382_v0 = vadd.f32 %v10010_v59, %v5327_v52  ;;  %v5429_v35 = vmax.f32 %v5381_v41, 0.0  ;;  %v8466_v46 = vld [vmem:[%s10653_s11 + $0x10] sm:$0xff]   ;;  %v10817_v41 = vld [vmem:[#allocation42_spill] sm:$0xff] }
 0x3e6   : > { %v7967_v3 = vadd.f32 %v4696_v12, %v9688_v38  ;;  %v7704_v27 = vpop.f32.mrb[10].mxu1  ;;  %v5380_v37 = vadd.f32 %v10010_v59, %v5325_v60  ;;  %7870 = vmatpush3.bf16.msra.mxu0 %v8464_v61  ;;  %v5427_v40 = vmax.f32 %v5379_v48, 0.0  ;;  %v10815_v51 = vld [vmem:[#allocation41_spill] sm:$0xff]  ;;  %v10818_v48 = vld [vmem:[#allocation43_spill] sm:$0xff] }
 0x3e7   : > { %v7966_v16 = vadd.f32 %v7965_v33, %v9838_v24  ;;  %v7969_v32 = vadd.f32 %v7704_v27, %v9690_v25  ;;  %v4699_v10 = vpop.f32.mrb[11].mxu1  ;;  %v5430_v55 = vmax.f32 %v5382_v0, 0.0  ;;  %7871 = vmatprep.subr.bf16.mxu0 %v8465_v11  ;;  %v8469_v27 = vld [vmem:[%s10653_s11 + $0x28] sm:$0xff]  }
 0x3e8   : > { %v7968_v49 = vadd.f32 %v7967_v3, %v9840_v23  ;;  %v7971_v38 = vadd.f32 %v4699_v10, %v9692_v43  ;;  %v5428_v4 = vmax.f32 %v5380_v37, 0.0  ;;  %v8467_v43 = vld [vmem:[%s10653_s11 + $0x18] sm:$0xff]   ;;  %v10819_v10 = vld [vmem:[#allocation8_spill] sm:$0xff] }
 0x3e9   : > { %v5330_v61 = vmul.f32 %v7966_v16, %v10002_v26  ;;  %v7970_v24 = vadd.f32 %v7969_v32, %v9842_v50  ;;  %v5474_v31 = vpack.c.bf16 %v5430_v55, %v5429_v35 }
 0x3ea   : > { %v5328_v25 = vmul.f32 %v7968_v49, %v10002_v26  ;;  %v7972_v58 = vadd.f32 %v7971_v38, %v10810_v45  ;;  %v5473_v29 = vpack.c.bf16 %v5428_v4, %v5427_v40  ;;  %7872 = vmatpush3.bf16.msra.mxu0 %v8465_v11  ;;  %v10820_v49 = vld [vmem:[#allocation6_spill] sm:$0xff] }
 0x3eb   : > { %v5331_v17 = vmul.f32 %v7970_v24, %v10002_v26  ;;  %v5385_v44 = vadd.f32 %v10010_v59, %v5330_v61  ;;  %7873 = vmatprep.subr.bf16.mxu0 %v8466_v46  ;;  %v10821_v61 = vld [vmem:[#allocation44_spill] sm:$0xff] }
 0x3ec   : > { %v5329_v23 = vmul.f32 %v7972_v58, %v10002_v26  ;;  %v7707_v2 = vpop.f32.mrb[12].mxu1  ;;  %7825 = vmatprep.mubr.bf16.mxu0 %v5473_v29  ;;  %v5383_v50 = vadd.f32 %v10010_v59, %v5328_v25 }
 0x3ed   : > { %v7973_v5 = vadd.f32 %v7707_v2, %v10811_v21  ;;  %v4712_v15 = vpop.f32.mrb[13].mxu1  ;;  %7826 = vmatmul.mubr.bf16.gmra.mrb[156].mxu0 %v5474_v31  ;;  %v5386_v1 = vadd.f32 %v10010_v59, %v5331_v17  ;;  %v5433_v19 = vmax.f32 %v5385_v44, 0.0  ;;  %v10822_v31 = vld [vmem:[#allocation11_spill] sm:$0xff]  ;;  %v8470_v17 = vld [vmem:[%s10653_s11 + $0x30] sm:$0xff]  }
 0x3ee   : > { %v7975_v53 = vadd.f32 %v4712_v15, %v10812_v36  ;;  %v7708_v20 = vpop.f32.mrb[14].mxu1  ;;  %v5384_v22 = vadd.f32 %v10010_v59, %v5329_v23  ;;  %7874 = vmatpush3.bf16.msra.mxu0 %v8466_v46  ;;  %v5431_v9 = vmax.f32 %v5383_v50, 0.0  ;;  %v10823_v44 = vld [vmem:[#allocation45_spill] sm:$0xff]  ;;  %v10825_v15 = vld [vmem:[#allocation46_spill] sm:$0xff] }
 0x3ef   : > { %v7974_v28 = vadd.f32 %v7973_v5, %v10813_v8  ;;  %v7977_v7 = vadd.f32 %v7708_v20, %v10814_v42  ;;  %v4715_v30 = vpop.f32.mrb[15].mxu1  ;;  %v5434_v47 = vmax.f32 %v5386_v1, 0.0  ;;  %7875 = vmatprep.subr.bf16.mxu0 %v8467_v43  ;;  %v10824_v23 = vld [vmem:[#allocation9_spill] sm:$0xff]  ;;  %v10826_v20 = vld [vmem:[#allocation47_spill] sm:$0xff] }
 0x3f0   : > { %v7976_v6 = vadd.f32 %v7975_v53, %v10815_v51  ;;  %v7979_v18 = vadd.f32 %v4715_v30, %v10816_v56  ;;  %v5432_v54 = vmax.f32 %v5384_v22, 0.0 }
 0x3f1   : > { %v5334_v52 = vmul.f32 %v7974_v28, %v10002_v26  ;;  %v7978_v11 = vadd.f32 %v7977_v7, %v10817_v41  ;;  %v5476_v60 = vpack.c.bf16 %v5434_v47, %v5433_v19  ;;  %v8471_v7 = vld [vmem:[%s10653_s11 + $0x38] sm:$0xff]   ;;  %v10829_v41 = vld [vmem:[#allocation48_spill] sm:$0xff] }
 0x3f2   : > { %v5332_v57 = vmul.f32 %v7976_v6, %v10002_v26  ;;  %v7980_v33 = vadd.f32 %v7979_v18, %v10818_v48  ;;  %v5475_v12 = vpack.c.bf16 %v5432_v54, %v5431_v9  ;;  %7876 = vmatpush3.bf16.msra.mxu0 %v8467_v43  ;;  %v10828_v18 = vld [vmem:[#allocation10_spill] sm:$0xff] }
 0x3f3   : > { %v5335_v0 = vmul.f32 %v7978_v11, %v10002_v26  ;;  %v5389_v3 = vadd.f32 %v10010_v59, %v5334_v52  ;;  %7877 = vmatprep.subr.bf16.mxu0 %v8468_v63 }
 0x3f4   : > { %v5333_v37 = vmul.f32 %v7980_v33, %v10002_v26  ;;  %v7711_v16 = vpop.f32.mrb[16].mxu1  ;;  %7829 = vmatprep.mubr.bf16.mxu0 %v5475_v12  ;;  %v5387_v32 = vadd.f32 %v10010_v59, %v5332_v57 }
 0x3f5   : > { %v7981_v35 = vadd.f32 %v7711_v16, %v10819_v10  ;;  %v4728_v55 = vpop.f32.mrb[17].mxu1  ;;  %7830 = vmatmul.mubr.bf16.gmra.mrb[160].mxu0 %v5476_v60  ;;  %v5390_v46 = vadd.f32 %v10010_v59, %v5335_v0  ;;  %v5437_v58 = vmax.f32 %v5389_v3, 0.0  ;;  %v10830_v60 = vld [vmem:[#allocation13_spill] sm:$0xff] }
 0x3f6   : > { %v7983_v38 = vadd.f32 %v4728_v55, %v10820_v49  ;;  %v7712_v40 = vpop.f32.mrb[18].mxu1  ;;  %v5388_v4 = vadd.f32 %v10010_v59, %v5333_v37  ;;  %7878 = vmatpush3.bf16.msra.mxu0 %v8468_v63  ;;  %v5435_v50 = vmax.f32 %v5387_v32, 0.0  ;;  %v10827_v63 = vld [vmem:[#allocation12_spill] sm:$0xff]  ;;  %v10831_v0 = vld [vmem:[#allocation49_spill] sm:$0xff] }
 0x3f7   : > { %v7982_v24 = vadd.f32 %v7981_v35, %v10821_v61  ;;  %v7985_v25 = vadd.f32 %v7712_v40, %v10822_v31  ;;  %v4731_v45 = vpop.f32.mrb[19].mxu1  ;;  %v5438_v29 = vmax.f32 %v5390_v46, 0.0  ;;  %7879 = vmatprep.subr.bf16.mxu0 %v8469_v27  ;;  %v10833_v35 = vld [vmem:[#allocation50_spill] sm:$0xff] }
 0x3f8   : > { %v7984_v43 = vadd.f32 %v7983_v38, %v10823_v44  ;;  %v7987_v2 = vadd.f32 %v4731_v45, %v10824_v23  ;;  %v5436_v21 = vmax.f32 %v5388_v4, 0.0  ;;  %v10834_v45 = vld [vmem:[#allocation15_spill] sm:$0xff]  ;;  %v10835_v44 = vld [vmem:[#allocation16_spill] sm:$0xff] }
 0x3f9   : > { %v5338_v5 = vmul.f32 %v7982_v24, %v10002_v26  ;;  %v7986_v1 = vadd.f32 %v7985_v25, %v10825_v15  ;;  %v5478_v36 = vpack.c.bf16 %v5438_v29, %v5437_v58 }
 0x3fa   : > { %v5336_v53 = vmul.f32 %v7984_v43, %v10002_v26  ;;  %v7988_v22 = vadd.f32 %v7987_v2, %v10826_v20  ;;  %v5477_v8 = vpack.c.bf16 %v5436_v21, %v5435_v50  ;;  %7880 = vmatpush3.bf16.msra.mxu0 %v8469_v27  ;;  %v10832_v27 = vld [vmem:[#allocation14_spill] sm:$0xff]  ;;  %v10836_v2 = vld [vmem:[#allocation51_spill] sm:$0xff] }
 0x3fb   : > { %v5339_v28 = vmul.f32 %v7986_v1, %v10002_v26  ;;  %v5393_v42 = vadd.f32 %v10010_v59, %v5338_v5  ;;  %7881 = vmatprep.subr.bf16.mxu0 %v8470_v17  ;;  %v10837_v21 = vld [vmem:[#allocation18_spill] sm:$0xff] }
 0x3fc   : > { %v5337_v30 = vmul.f32 %v7988_v22, %v10002_v26  ;;  %v7715_v19 = vpop.f32.mrb[20].mxu1  ;;  %7833 = vmatprep.mubr.bf16.mxu0 %v5477_v8  ;;  %v5391_v47 = vadd.f32 %v10010_v59, %v5336_v53  ;;  %v10838_v53 = vld [vmem:[#allocation52_spill] sm:$0xff]  ;;  %v10839_v22 = vld [vmem:[#allocation17_spill] sm:$0xff] }
 0x3fd   : > { %v7989_v51 = vadd.f32 %v7715_v19, %v10827_v63  ;;  %v4744_v6 = vpop.f32.mrb[21].mxu1  ;;  %7834 = vmatmul.mubr.bf16.gmra.mrb[164].mxu0 %v5478_v36  ;;  %v5394_v56 = vadd.f32 %v10010_v59, %v5339_v28  ;;  %v5441_v33 = vmax.f32 %v5393_v42, 0.0 }
 0x3fe   : > { %v7991_v9 = vadd.f32 %v4744_v6, %v10828_v18  ;;  %v7716_v54 = vpop.f32.mrb[22].mxu1  ;;  %v5392_v52 = vadd.f32 %v10010_v59, %v5337_v30  ;;  %7882 = vmatpush3.bf16.msra.mxu0 %v8470_v17  ;;  %v5439_v16 = vmax.f32 %v5391_v47, 0.0  ;;  %v10840_v30 = vld [vmem:[#allocation53_spill] sm:$0xff] }
 0x3ff   : > { %v7990_v11 = vadd.f32 %v7989_v51, %v10829_v41  ;;  %v7993_v57 = vadd.f32 %v7716_v54, %v10830_v60  ;;  %v4747_v48 = vpop.f32.mrb[23].mxu1  ;;  %v5442_v12 = vmax.f32 %v5394_v56, 0.0  ;;  %7883 = vmatprep.subr.bf16.mxu0 %v8471_v7  ;;  %v10841_v51 = vld [vmem:[#allocation54_spill] sm:$0xff] }
 0x400   : > { %v7992_v3 = vadd.f32 %v7991_v9, %v10831_v0  ;;  %v7995_v37 = vadd.f32 %v4747_v48, %v10832_v27  ;;  %v5440_v32 = vmax.f32 %v5392_v52, 0.0  ;;  %v10844_v27 = vld [vmem:[#allocation55_spill] sm:$0xff] }
 0x401   : > { %v5342_v10 = vmul.f32 %v7990_v11, %v10002_v26  ;;  %v7994_v55 = vadd.f32 %v7993_v57, %v10833_v35  ;;  %v5480_v46 = vpack.c.bf16 %v5442_v12, %v5441_v33  ;;  %v10842_v11 = vld [vmem:[#allocation19_spill] sm:$0xff]  ;;  %v10843_v33 = vld [vmem:[#allocation20_spill] sm:$0xff] }
 0x402   : > { %v5340_v49 = vmul.f32 %v7992_v3, %v10002_v26  ;;  %v7996_v38 = vadd.f32 %v7995_v37, %v9874_v14  ;;  %v5479_v40 = vpack.c.bf16 %v5440_v32, %v5439_v16  ;;  %7884 = vmatpush3.bf16.msra.mxu0 %v8471_v7  ;;  %v10845_v16 = vld [vmem:[#allocation22_spill] sm:$0xff] }
 0x403   : > { %v5343_v4 = vmul.f32 %v7994_v55, %v10002_v26  ;;  %v5397_v61 = vadd.f32 %v10010_v59, %v5342_v10 }
 0x404   : > { %v5341_v24 = vmul.f32 %v7996_v38, %v10002_v26  ;;  %v7719_v31 = vpop.f32.mrb[24].mxu1  ;;  %7837 = vmatprep.mubr.bf16.mxu0 %v5479_v40  ;;  %v5395_v25 = vadd.f32 %v10010_v59, %v5340_v49  ;;  %v10847_v38 = vld [vmem:[#allocation21_spill] sm:$0xff] }
 0x405   : > { %v7997_v58 = vadd.f32 %v7719_v31, %v10834_v45  ;;  %v4760_v29 = vpop.f32.mrb[25].mxu1  ;;  %7838 = vmatmul.mubr.bf16.gmra.mrb[168].mxu0 %v5480_v46  ;;  %v5398_v17 = vadd.f32 %v10010_v59, %v5343_v4  ;;  %v5445_v1 = vmax.f32 %v5397_v61, 0.0  ;;  %v10846_v46 = vld [vmem:[#allocation56_spill] sm:$0xff]  ;;  %v10848_v31 = vld [vmem:[#allocation57_spill] sm:$0xff] }
 0x406   : > { %v7999_v14 = vadd.f32 %v4760_v29, %v10835_v44  ;;  %v7720_v43 = vpop.f32.mrb[26].mxu1  ;;  %v5396_v23 = vadd.f32 %v10010_v59, %v5341_v24  ;;  %v5443_v28 = vmax.f32 %v5395_v25, 0.0  ;;  %v10849_v29 = vld [vmem:[#allocation58_spill] sm:$0xff] }
 0x407   : > { %v7998_v50 = vadd.f32 %v7997_v58, %v10836_v2  ;;  %v8001_v5 = vadd.f32 %v7720_v43, %v10837_v21  ;;  %v4763_v15 = vpop.f32.mrb[27].mxu1  ;;  %v5446_v36 = vmax.f32 %v5398_v17, 0.0  ;;  %v10850_v21 = vld [vmem:[#allocation23_spill] sm:$0xff] }
 0x408   : > { %v8000_v20 = vadd.f32 %v7999_v14, %v10838_v53  ;;  %v8003_v8 = vadd.f32 %v4763_v15, %v10839_v22  ;;  %v5444_v42 = vmax.f32 %v5396_v23, 0.0 }
 0x409   : > { %v5346_v7 = vmul.f32 %v7998_v50, %v10002_v26  ;;  %v8002_v19 = vadd.f32 %v8001_v5, %v10840_v30  ;;  %v5482_v47 = vpack.c.bf16 %v5446_v36, %v5445_v1  ;;  %v10851_v36 = vld [vmem:[#allocation24_spill] sm:$0xff] }
 0x40a   : > { %v5344_v63 = vmul.f32 %v8000_v20, %v10002_v26  ;;  %v8004_v6 = vadd.f32 %v8003_v8, %v10841_v51  ;;  %v5481_v56 = vpack.c.bf16 %v5444_v42, %v5443_v28  ;;  %v10852_v8 = vld [vmem:[#allocation59_spill] sm:$0xff]  ;;  %v10853_v42 = vld [vmem:[#allocation26_spill] sm:$0xff] }
 0x40b   : > { %v5347_v18 = vmul.f32 %v8002_v19, %v10002_v26  ;;  %v5401_v9 = vadd.f32 %v10010_v59, %v5346_v7 }
 0x40c   : > { %v5345_v54 = vmul.f32 %v8004_v6, %v10002_v26  ;;  %v7723_v52 = vpop.f32.mrb[28].mxu1  ;;  %7841 = vmatprep.mubr.bf16.mxu0 %v5481_v56  ;;  %v5399_v41 = vadd.f32 %v10010_v59, %v5344_v63  ;;  %v10854_v63 = vld [vmem:[#allocation60_spill] sm:$0xff]  ;;  %v10855_v6 = vld [vmem:[#allocation25_spill] sm:$0xff] }
 0x40d   : > { %v8005_v60 = vadd.f32 %v7723_v52, %v10842_v11  ;;  %v4776_v57 = vpop.f32.mrb[29].mxu1  ;;  %7842 = vmatmul.mubr.bf16.gmra.mrb[172].mxu0 %v5482_v47  ;;  %v5402_v48 = vadd.f32 %v10010_v59, %v5347_v18  ;;  %v5449_v35 = vmax.f32 %v5401_v9, 0.0  ;;  %v10856_v52 = vld [vmem:[#allocation61_spill] sm:$0xff] }
 0x40e   : > { %v8007_v12 = vadd.f32 %v4776_v57, %v10843_v33  ;;  %v7724_v0 = vpop.f32.mrb[30].mxu1  ;;  %v5400_v3 = vadd.f32 %v10010_v59, %v5345_v54  ;;  %v5447_v4 = vmax.f32 %v5399_v41, 0.0  ;;  %v10857_v57 = vld [vmem:[#allocation62_spill] sm:$0xff] }
 0x40f   : > { %v8006_v37 = vadd.f32 %v8005_v60, %v10844_v27  ;;  %v8009_v32 = vadd.f32 %v7724_v0, %v10845_v16  ;;  %v4779_v10 = vpop.f32.mrb[31].mxu1  ;;  %v5450_v55 = vmax.f32 %v5402_v48, 0.0  ;;  %v10858_v16 = vld [vmem:[#allocation27_spill] sm:$0xff] }
 0x410   : > { %v8008_v49 = vadd.f32 %v8007_v12, %v10846_v46  ;;  %v8011_v40 = vadd.f32 %v4779_v10, %v10847_v38  ;;  %v5448_v61 = vmax.f32 %v5400_v3, 0.0 }
 0x411   : > { %v5350_v24 = vmul.f32 %v8006_v37, %v10002_v26  ;;  %v8010_v25 = vadd.f32 %v8009_v32, %v10848_v31  ;;  %v5484_v45 = vpack.c.bf16 %v5450_v55, %v5449_v35  ;;  %v10859_v55 = vld [vmem:[#allocation28_spill] sm:$0xff] }
 0x412   : > { %v5348_v58 = vmul.f32 %v8008_v49, %v10002_v26  ;;  %v8012_v17 = vadd.f32 %v8011_v40, %v10849_v29  ;;  %v5483_v44 = vpack.c.bf16 %v5448_v61, %v5447_v4  ;;  %v10860_v40 = vld [vmem:[#allocation63_spill] sm:$0xff]  ;;  %v10861_v61 = vld [vmem:[#allocation29_spill] sm:$0xff] }
 0x413   : > { %v5351_v14 = vmul.f32 %v8010_v25, %v10002_v26  ;;  %v5405_v43 = vadd.f32 %v10010_v59, %v5350_v24 }
 0x414   : > { %v5349_v23 = vmul.f32 %v8012_v17, %v10002_v26  ;;  %v7727_v2 = vpop.f32.mrb[32].mxu1  ;;  %7845 = vmatprep.mubr.bf16.mxu0 %v5483_v44  ;;  %v5403_v50 = vadd.f32 %v10010_v59, %v5348_v58  ;;  %v10862_v58 = vld [vmem:[#allocation64_spill] sm:$0xff]  ;;  %v10863_v17 = vld [vmem:[#allocation30_spill] sm:$0xff] }
 0x415   : > { %v8013_v5 = vadd.f32 %v7727_v2, %v10850_v21  ;;  %v4792_v15 = vpop.f32.mrb[33].mxu1  ;;  %7846 = vmatmul.mubr.bf16.gmra.mrb[176].mxu0 %v5484_v45  ;;  %v5406_v1 = vadd.f32 %v10010_v59, %v5351_v14  ;;  %v5453_v19 = vmax.f32 %v5405_v43, 0.0  ;;  %v10864_v2 = vld [vmem:[#allocation65_spill] sm:$0xff] }
 0x416   : > { %v8015_v53 = vadd.f32 %v4792_v15, %v10851_v36  ;;  %v7728_v20 = vpop.f32.mrb[34].mxu1  ;;  %v5404_v22 = vadd.f32 %v10010_v59, %v5349_v23  ;;  %v5451_v18 = vmax.f32 %v5403_v50, 0.0  ;;  %v10865_v15 = vld [vmem:[#allocation66_spill] sm:$0xff] }
 0x417   : > { %v8014_v28 = vadd.f32 %v8013_v5, %v10852_v8  ;;  %v8017_v7 = vadd.f32 %v7728_v20, %v10853_v42  ;;  %v4795_v30 = vpop.f32.mrb[35].mxu1  ;;  %v5454_v47 = vmax.f32 %v5406_v1, 0.0  ;;  %v10866_v42 = vld [vmem:[#allocation31_spill] sm:$0xff] }
 0x418   : > { %v8016_v51 = vadd.f32 %v8015_v53, %v10854_v63  ;;  %v8019_v56 = vadd.f32 %v4795_v30, %v10855_v6  ;;  %v5452_v9 = vmax.f32 %v5404_v22, 0.0 }
 0x419   : > { %v5354_v54 = vmul.f32 %v8014_v28, %v10002_v26  ;;  %v8018_v41 = vadd.f32 %v8017_v7, %v10856_v52  ;;  %v5486_v11 = vpack.c.bf16 %v5454_v47, %v5453_v19  ;;  %v10867_v47 = vld [vmem:[#allocation32_spill] sm:$0xff] }
 0x41a   : > { %v5352_v60 = vmul.f32 %v8016_v51, %v10002_v26  ;;  %v8020_v48 = vadd.f32 %v8019_v56, %v10857_v57  ;;  %v5485_v33 = vpack.c.bf16 %v5452_v9, %v5451_v18  ;;  %v10868_v18 = vld [vmem:[#allocation33_spill] sm:$0xff] }
 0x41b   : > { %v5355_v12 = vmul.f32 %v8018_v41, %v10002_v26  ;;  %v5409_v0 = vadd.f32 %v10010_v59, %v5354_v54 }
 0x41c   : > { %v5353_v3 = vmul.f32 %v8020_v48, %v10002_v26  ;;  %v7731_v27 = vpop.f32.mrb[36].mxu1  ;;  %7849 = vmatprep.mubr.bf16.mxu0 %v5485_v33  ;;  %v5407_v37 = vadd.f32 %v10010_v59, %v5352_v60  ;;  %v10869_v60 = vld [vmem:[#allocation34_spill] sm:$0xff] }
 0x41d   : > { %v8021_v32 = vadd.f32 %v7731_v27, %v10858_v16  ;;  %v4808_v10 = vpop.f32.mrb[37].mxu1  ;;  %7850 = vmatmul.mubr.bf16.gmra.mrb[180].mxu0 %v5486_v11  ;;  %v5410_v35 = vadd.f32 %v10010_v59, %v5355_v12  ;;  %v5457_v25 = vmax.f32 %v5409_v0, 0.0 }
 0x41e   : > { %v8023_v46 = vadd.f32 %v4808_v10, %v10859_v55  ;;  %v7732_v49 = vpop.f32.mrb[38].mxu1  ;;  %v5408_v38 = vadd.f32 %v10010_v59, %v5353_v3  ;;  %v5455_v14 = vmax.f32 %v5407_v37, 0.0 }
 0x41f   : > { %v8022_v4 = vadd.f32 %v8021_v32, %v10860_v40  ;;  %v8025_v24 = vadd.f32 %v7732_v49, %v10861_v61  ;;  %v4811_v31 = vpop.f32.mrb[39].mxu1  ;;  %v5458_v45 = vmax.f32 %v5410_v35, 0.0  ;;  %v10870_v61 = vld [vmem:[#allocation35_spill] sm:$0xff] }
 0x420   : > { %v8024_v29 = vadd.f32 %v8023_v46, %v10862_v58  ;;  %v8027_v44 = vadd.f32 %v4811_v31, %v10863_v17  ;;  %v5456_v43 = vmax.f32 %v5408_v38, 0.0  ;;  %v10872_v17 = vld [vmem:[#allocation37_spill] sm:$0xff] }
 0x421   : > { %v5358_v23 = vmul.f32 %v8022_v4, %v10002_v26  ;;  %v8026_v50 = vadd.f32 %v8025_v24, %v10864_v2  ;;  %v5488_v21 = vpack.c.bf16 %v5458_v45, %v5457_v25  ;;  %v10871_v25 = vld [vmem:[#allocation36_spill] sm:$0xff] }
 0x422   : > { %v5356_v5 = vmul.f32 %v8024_v29, %v10002_v26  ;;  %v8028_v1 = vadd.f32 %v8027_v44, %v10865_v15  ;;  %v5487_v36 = vpack.c.bf16 %v5456_v43, %v5455_v14 }
 0x423   : > { %v5359_v53 = vmul.f32 %v8026_v50, %v10002_v26  ;;  %v5413_v20 = vadd.f32 %v10010_v59, %v5358_v23  ;;  %v10873_v23 = vld [vmem:[#allocation38_spill] sm:$0xff] }
 0x424   : > { %v5357_v22 = vmul.f32 %v8028_v1, %v10002_v26  ;;  %v7735_v8 = vpop.f32.mrb[40].mxu1  ;;  %7853 = vmatprep.mubr.bf16.mxu0 %v5487_v36  ;;  %v5411_v28 = vadd.f32 %v10010_v59, %v5356_v5 }
 0x425   : > { %v8029_v7 = vadd.f32 %v7735_v8, %v10866_v42  ;;  %v4824_v30 = vpop.f32.mrb[41].mxu1  ;;  %7854 = vmatmul.mubr.bf16.gmra.mrb[184].mxu0 %v5488_v21  ;;  %v5414_v19 = vadd.f32 %v10010_v59, %v5359_v53  ;;  %v5461_v52 = vmax.f32 %v5413_v20, 0.0 }
 0x426   : > { %v8031_v63 = vadd.f32 %v4824_v30, %v10867_v47  ;;  %v7736_v51 = vpop.f32.mrb[42].mxu1  ;;  %v5412_v6 = vadd.f32 %v10010_v59, %v5357_v22  ;;  %v5459_v48 = vmax.f32 %v5411_v28, 0.0  ;;  %v8501_v30 = vld [vmem:[%s8648_s22 + $0x28] sm:$0xff]   ;;  %v8504_v47 = vld [vmem:[%s8648_s22 + $0x40] sm:$0xff]  }
 0x427   : > { %v8030_v56 = vadd.f32 %v8029_v7, %v9926_v39  ;;  %v8033_v9 = vadd.f32 %v7736_v51, %v10868_v18  ;;  %v4827_v54 = vpop.f32.mrb[43].mxu1  ;;  %v5462_v41 = vmax.f32 %v5414_v19, 0.0  ;;  %v8499_v7 = vld [vmem:[%s8648_s22 + $0x18] sm:$0xff]   ;;  %v8506_v51 = vld [vmem:[%s8648_s22 + $0x50] sm:$0xff]   ;;  %v8509_v18 = vld [vmem:[%s8648_s22 + $0x68] sm:$0xff]  }
 0x428   : > { %v8032_v11 = vadd.f32 %v8031_v63, %v9928_v13  ;;  %v8035_v57 = vadd.f32 %v4827_v54, %v10869_v60  ;;  %v5460_v33 = vmax.f32 %v5412_v6, 0.0  ;;  %v8503_v19 = vld [vmem:[%s8648_s22 + $0x38] sm:$0xff]   ;;  %v8505_v63 = vld [vmem:[%s8648_s22 + $0x48] sm:$0xff]  }
 0x429   : > { %v5362_v12 = vmul.f32 %v8030_v56, %v10002_v26  ;;  %v8034_v0 = vadd.f32 %v8033_v9, %v9930_v62  ;;  %v5490_v3 = vpack.c.bf16 %v5462_v41, %v5461_v52  ;;  %v8507_v6 = vld [vmem:[%s8648_s22 + $0x58] sm:$0xff]   ;;  %v8508_v56 = vld [vmem:[%s8648_s22 + $0x60] sm:$0xff]   ;;  %v8510_v9 = vld [vmem:[%s8648_s22 + $0x70] sm:$0xff]  }
 0x42a   : > { %v5360_v27 = vmul.f32 %v8032_v11, %v10002_v26  ;;  %v8036_v39 = vadd.f32 %v8035_v57, %v9932_v34  ;;  %v5489_v37 = vpack.c.bf16 %v5460_v33, %v5459_v48  ;;  %v8511_v54 = vld [vmem:[%s8648_s22 + $0x78] sm:$0xff]   ;;  %v8512_v52 = vld [vmem:[%s8648_s22 + $0x80] sm:$0xff]   ;;  %v8513_v41 = vld [vmem:[%s8648_s22 + $0x88] sm:$0xff]  }
 0x42b   : > { %v5363_v16 = vmul.f32 %v8034_v0, %v10002_v26  ;;  %v5417_v32 = vadd.f32 %v10010_v59, %v5362_v12  ;;  %v8514_v11 = vld [vmem:[%s8648_s22 + $0x90] sm:$0xff]   ;;  %v8515_v60 = vld [vmem:[%s8648_s22 + $0x98] sm:$0xff]   ;;  %v8516_v57 = vld [vmem:[%s8648_s22 + $0xa0] sm:$0xff]  }
 0x42c   : > { %v5361_v13 = vmul.f32 %v8036_v39, %v10002_v26  ;;  %7857 = vmatprep.mubr.bf16.mxu0 %v5489_v37  ;;  %v5415_v10 = vadd.f32 %v10010_v59, %v5360_v27  ;;  %v8517_v48 = vld [vmem:[%s8648_s22 + $0xa8] sm:$0xff]   ;;  %v8518_v33 = vld [vmem:[%s8648_s22 + $0xb0] sm:$0xff]   ;;  %v8519_v12 = vld [vmem:[%s8648_s22 + $0xb8] sm:$0xff]  }
 0x42d   : > { %7858 = vmatmul.mubr.bf16.gmra.mrb[188].mxu0 %v5490_v3  ;;  %v5418_v35 = vadd.f32 %v10010_v59, %v5363_v16  ;;  %v5465_v55 = vmax.f32 %v5417_v32, 0.0  ;;  %v8520_v0 = vld [vmem:[%s8648_s22 + $0xc0] sm:$0xff]   ;;  %v8521_v3 = vld [vmem:[%s8648_s22 + $0xc8] sm:$0xff]   ;;  %v8522_v27 = vld [vmem:[%s8648_s22 + $0xd0] sm:$0xff]  }
 0x42e   : > { %v5416_v62 = vadd.f32 %v10010_v59, %v5361_v13  ;;  %v5463_v49 = vmax.f32 %v5415_v10, 0.0 }
 0x42f   : > { %v5466_v46 = vmax.f32 %v5418_v35, 0.0 }
 0x430   : > { %v5464_v38 = vmax.f32 %v5416_v62, 0.0 }
 0x431   : > { %v5492_v34 = vpack.c.bf16 %v5466_v46, %v5465_v55 }
 0x432   : > { %v5491_v40 = vpack.c.bf16 %v5464_v38, %v5463_v49 }
 0x434   : > { %7861 = vmatprep.mubr.bf16.mxu0 %v5491_v40 }
 0x435   : > { %7862 = vmatmul.mubr.bf16.gmra.mrb[192].mxu0 %v5492_v34 }
 0x438   : > { %v7803_v4 = vpop.f32.mrb[44].mxu1 }
 0x439   : > { %v8037_v24 = vadd.f32 %v7803_v4, %v10870_v61  ;;  %v5250_v31 = vpop.f32.mrb[45].mxu1 }
 0x43a   : > { %v8038_v45 = vadd.f32 %v5250_v31, %v10871_v25  ;;  %v7804_v58 = vpop.f32.mrb[46].mxu1 }
 0x43b   : > { %v5366_v29 = vmul.f32 %v8037_v24, %v10002_v26  ;;  %v8039_v44 = vadd.f32 %v7804_v58, %v10872_v17  ;;  %v5253_v14 = vpop.f32.mrb[47].mxu1 }
 0x43c   : > { %v5364_v43 = vmul.f32 %v8038_v45, %v10002_v26  ;;  %v8040_v2 = vadd.f32 %v5253_v14, %v10873_v23 }
 0x43d   : > { %v5421_v50 = vadd.f32 %v10010_v59, %v5366_v29  ;;  %v5367_v21 = vmul.f32 %v8039_v44, %v10002_v26 }
 0x43e   : > { %v5419_v5 = vadd.f32 %v10010_v59, %v5364_v43  ;;  %v5365_v15 = vmul.f32 %v8040_v2, %v10002_v26  ;;  %v8500_v26 = vld [vmem:[%s8648_s22 + $0x20] sm:$0xff]  }
 0x43f   : > { %v5422_v1 = vadd.f32 %v10010_v59, %v5367_v21  ;;  %v5469_v53 = vmax.f32 %v5421_v50, 0.0 }
 0x440   : > { %v5420_v36 = vadd.f32 %v10010_v59, %v5365_v15  ;;  %v5467_v22 = vmax.f32 %v5419_v5, 0.0  ;;  %v8502_v59 = vld [vmem:[%s8648_s22 + $0x30] sm:$0xff]  }
 0x441   : > { %v5470_v20 = vmax.f32 %v5422_v1, 0.0 }
 0x442   : > { %v5468_v8 = vmax.f32 %v5420_v36, 0.0 }
 0x443   : > { %v5494_v28 = vpack.c.bf16 %v5470_v20, %v5469_v53 }
 0x444   : > { %v5493_v42 = vpack.c.bf16 %v5468_v8, %v5467_v22 }
 0x446   : > { %7865 = vmatprep.mubr.bf16.mxu0 %v5493_v42 }
 0x447   : > { %7866 = vmatmul.mubr.bf16.gmra.mrb[196].mxu0 %v5494_v28 }
 0x448   : > { %7885 = vmatprep.mubr.bf16.mxu0 %v8499_v7 }
 0x44f   : > { %7886 = vmatmul.mubr.bf16.vlgmr.msra.gmra.mrb[200].mxu0 %v8500_v26 }
 0x450   : > { %7889 = vmatprep.mubr.bf16.mxu0 %v8501_v30 }
 0x457   : > { %7890 = vmatmul.mubr.bf16.gmra.mrb[204].mxu0 %v8502_v59 }
 0x458   : > { %7893 = vmatprep.mubr.bf16.mxu0 %v8503_v19 }
 0x45f   : > { %7894 = vmatmul.mubr.bf16.gmra.mrb[208].mxu0 %v8504_v47 }
 0x460   : > { %7897 = vmatprep.mubr.bf16.mxu0 %v8505_v63 }
 0x467   : > { %7898 = vmatmul.mubr.bf16.gmra.mrb[212].mxu0 %v8506_v51 }
 0x468   : > { %7901 = vmatprep.mubr.bf16.mxu0 %v8507_v6  ;;  %v10332_v6 = vld [vmem:[%s10651_s9] ss:$0 sm:$0xff] }
 0x46f   : > { %7902 = vmatmul.mubr.bf16.gmra.mrb[216].mxu0 %v8508_v56  ;;  %v10337_v56 = vld [vmem:[%s10654_s12] ss:$0 sm:$0xff] }
 0x470   : > { %7905 = vmatprep.mubr.bf16.mxu0 %v8509_v18 }
 0x477   : > { %7906 = vmatmul.mubr.bf16.gmra.mrb[220].mxu0 %v8510_v9  ;;  %v10343_v9 = vld [vmem:[%s10652_s10] ss:$0 sm:$0xff] }
 0x478   : > { %7909 = vmatprep.mubr.bf16.mxu0 %v8511_v54 }
 0x47f   : > { %7910 = vmatmul.mubr.bf16.gmra.mrb[224].mxu0 %v8512_v52 }
 0x480   : > { %7913 = vmatprep.mubr.bf16.mxu0 %v8513_v41  ;;  %v10349_v41 = vld [vmem:[%s10655_s13] ss:$0 sm:$0xff] }
 0x487   : > { %7914 = vmatmul.mubr.bf16.gmra.mrb[228].mxu0 %v8514_v11 }
 0x488   : > { %7917 = vmatprep.mubr.bf16.mxu0 %v8515_v60 }
 0x48f   : > { %7918 = vmatmul.mubr.bf16.gmra.mrb[232].mxu0 %v8516_v57 }
 0x490   : > { %7921 = vmatprep.mubr.bf16.mxu0 %v8517_v48 }
 0x497   : > { %7922 = vmatmul.mubr.bf16.gmra.mrb[236].mxu0 %v8518_v33 }
 0x498   : > { %7925 = vmatprep.mubr.bf16.mxu0 %v8519_v12 }
 0x49f   : > { %7926 = vmatmul.mubr.bf16.gmra.mrb[240].mxu0 %v8520_v0 }
 0x4a0   : > { %7929 = vmatprep.mubr.bf16.mxu0 %v8521_v3 }
 0x4a7   : > { %7930 = vmatmul.mubr.bf16.gmra.mrb[244].mxu0 %v8522_v27 }
 0x4b8   : > { %v7823_v39 = vpop.f32.mrb[152].mxu0 }
 0x4b9   : > { %v5593_v37 = vpop.f32.mrb[153].mxu0  ;;  %v5793_v18 = vmul.f32 %v7823_v39, %v10332_v6 }
 0x4ba   : > { %v7824_v16 = vpop.f32.mrb[154].mxu0  ;;  %v5791_v54 = vmul.f32 %v10332_v6, %v5593_v37 }
 0x4bb   : > { %v5596_v32 = vpop.f32.mrb[155].mxu0  ;;  %v5794_v11 = vmul.f32 %v7824_v16, %v10332_v6  ;;  %v5848_v0 = vadd.f32 %v10343_v9, %v5793_v18 }
 0x4bc   : > { %v5792_v48 = vmul.f32 %v10332_v6, %v5596_v32  ;;  %v5846_v37 = vadd.f32 %v10343_v9, %v5791_v54 }
 0x4c0   : > { %v10241_v13 = vpop.f32.mrb[156].mxu0 }
 0x4c1   : > { %v10243_v10 = vpop.f32.mrb[157].mxu0 }
 0x4c2   : > { %v10245_v35 = vpop.f32.mrb[158].mxu0 }
 0x4c3   : > { %v10247_v62 = vpop.f32.mrb[159].mxu0 }
 0x4c8   : > { %v10249_v55 = vpop.f32.mrb[160].mxu0 }
 0x4c9   : > { %v10251_v46 = vpop.f32.mrb[161].mxu0 }
 0x4ca   : > { %v10253_v49 = vpop.f32.mrb[162].mxu0 }
 0x4cb   : > { %v10255_v38 = vpop.f32.mrb[163].mxu0 }
 0x4d0   : > { %v10257_v34 = vpop.f32.mrb[164].mxu0 }
 0x4d1   : > { %v10259_v40 = vpop.f32.mrb[165].mxu0 }
 0x4d2   : > { %v10261_v4 = vpop.f32.mrb[166].mxu0 }
 0x4d3   : > { %v10263_v61 = vpop.f32.mrb[167].mxu0 }
 0x4d8   : > { %v10265_v24 = vpop.f32.mrb[168].mxu0 }
 0x4d9   : > { %v10267_v31 = vpop.f32.mrb[169].mxu0 }
 0x4da   : > { %v10269_v25 = vpop.f32.mrb[170].mxu0 }
 0x4db   : > { %v10271_v45 = vpop.f32.mrb[171].mxu0 }
 0x4e0   : > { %v10273_v58 = vpop.f32.mrb[172].mxu0 }
 0x4e1   : > { %v10275_v29 = vpop.f32.mrb[173].mxu0 }
 0x4e2   : > { %v10277_v17 = vpop.f32.mrb[174].mxu0 }
 0x4e3   : > { %v10279_v44 = vpop.f32.mrb[175].mxu0 }
 0x4e8   : > { %v10281_v14 = vpop.f32.mrb[176].mxu0 }
 0x4e9   : > { %v10283_v43 = vpop.f32.mrb[177].mxu0 }
 0x4ea   : > { %v10285_v23 = vpop.f32.mrb[178].mxu0 }
 0x4eb   : > { %v10287_v2 = vpop.f32.mrb[179].mxu0 }
 0x4f0   : > { %v10289_v50 = vpop.f32.mrb[180].mxu0 }
 0x4f1   : > { %v10291_v21 = vpop.f32.mrb[181].mxu0 }
 0x4f2   : > { %v10293_v5 = vpop.f32.mrb[182].mxu0 }
 0x4f3   : > { %v10295_v15 = vpop.f32.mrb[183].mxu0 }
 0x4f8   : > { %v10297_v1 = vpop.f32.mrb[184].mxu0 }
 0x4f9   : > { %v10299_v36 = vpop.f32.mrb[185].mxu0 }
 0x4fa   : > { %v10301_v53 = vpop.f32.mrb[186].mxu0 }
 0x4fb   : > { %v10303_v20 = vpop.f32.mrb[187].mxu0 }
 0x500   : > { %v10305_v22 = vpop.f32.mrb[188].mxu0 }
 0x501   : > { %v10307_v8 = vpop.f32.mrb[189].mxu0 }
 0x502   : > { %v10309_v28 = vpop.f32.mrb[190].mxu0 }
 0x503   : > { %v10311_v42 = vpop.f32.mrb[191].mxu0 }
 0x508   : > { %v10313_v7 = vpop.f32.mrb[192].mxu0 }
 0x509   : > { %v10315_v26 = vpop.f32.mrb[193].mxu0 }
 0x50a   : > { %v10317_v30 = vpop.f32.mrb[194].mxu0 }
 0x50b   : > { %v10319_v59 = vpop.f32.mrb[195].mxu0 }
 0x51a   : > { %v10321_v19 = vpop.f32.mrb[196].mxu0 }
 0x51b   : > { %v10323_v47 = vpop.f32.mrb[197].mxu0 }
 0x51c   : > { %v10325_v63 = vpop.f32.mrb[198].mxu0 }
 0x51d   : > { %10874 = vst [vmem:[#allocation39_spill] sm:$0xff] %v10325_v63  ;;  %v10327_v51 = vpop.f32.mrb[199].mxu0 }
 0x51e   : > { %10875 = vst [vmem:[#allocation4_spill] sm:$0xff] %v10327_v51  ;;  %v5849_v51 = vadd.f32 %v10343_v9, %v5794_v11 }
 0x522   : > { %v7887_v52 = vpop.f32.mrb[200].mxu0 }
 0x523   : > { %v6192_v60 = vmul.f32 %v7887_v52, %v10337_v56  ;;  %v5992_v57 = vpop.f32.mrb[201].mxu0 }
 0x524   : > { %v6190_v33 = vmul.f32 %v10337_v56, %v5992_v57  ;;  %v7888_v12 = vpop.f32.mrb[202].mxu0  ;;  %v5847_v57 = vadd.f32 %v10343_v9, %v5792_v48 }
 0x525   : > { %v6247_v3 = vadd.f32 %v10349_v41, %v6192_v60  ;;  %v6193_v27 = vmul.f32 %v7888_v12, %v10337_v56  ;;  %v5995_v39 = vpop.f32.mrb[203].mxu0  ;;  %v5797_v60 = vmul.f32 %v10241_v13, %v10332_v6  ;;  %v5795_v12 = vmul.f32 %v10332_v6, %v10243_v10 }
 0x526   : > { %v6245_v16 = vadd.f32 %v10349_v41, %v6190_v33  ;;  %v6191_v52 = vmul.f32 %v10337_v56, %v5995_v39  ;;  %v5796_v13 = vmul.f32 %v10332_v6, %v10247_v62 }
 0x527   : > { %v6295_v32 = vadd.f32 %v6247_v3, %v5848_v0  ;;  %v6248_v63 = vadd.f32 %v10349_v41, %v6193_v27  ;;  %v5798_v27 = vmul.f32 %v10245_v35, %v10332_v6 }
 0x528   : > { %v6293_v18 = vadd.f32 %v6245_v16, %v5846_v37  ;;  %v6246_v54 = vadd.f32 %v10349_v41, %v6191_v52  ;;  %v5852_v52 = vadd.f32 %v10343_v9, %v5797_v60  ;;  %v5851_v60 = vadd.f32 %v10343_v9, %v5796_v13 }
 0x529   : > { %v6343_v33 = vmax.f32 %v6295_v32, 0.0  ;;  %v6296_v11 = vadd.f32 %v6248_v63, %v5849_v51 }
 0x52a   : > { %v6341_v48 = vmax.f32 %v6293_v18, 0.0  ;;  %v6294_v0 = vadd.f32 %v6246_v54, %v5847_v57  ;;  %v7891_v3 = vpop.f32.mrb[204].mxu0  ;;  %v5850_v18 = vadd.f32 %v10343_v9, %v5795_v12  ;;  %v5801_v12 = vmul.f32 %v10249_v55, %v10332_v6 }
 0x52b   : > { %6391 = vst [vmem:[%s10368_s27 + $0x10] sm:$0xff] %v6343_v33  ;;  %v6344_v39 = vmax.f32 %v6296_v11, 0.0  ;;  %v6196_v37 = vmul.f32 %v7891_v3, %v10337_v56  ;;  %v6008_v16 = vpop.f32.mrb[205].mxu0  ;;  %v5853_v33 = vadd.f32 %v10343_v9, %v5798_v27  ;;  %v5800_v55 = vmul.f32 %v10332_v6, %v10255_v38 }
 0x52c   : > { %6389 = vst [vmem:[%s10368_s27] sm:$0xff] %v6341_v48  ;;  %v6342_v63 = vmax.f32 %v6294_v0, 0.0  ;;  %v6194_v51 = vmul.f32 %v10337_v56, %v6008_v16  ;;  %v7892_v10 = vpop.f32.mrb[206].mxu0  ;;  %v5799_v16 = vmul.f32 %v10332_v6, %v10251_v46 }
 0x52d   : > { %6392 = vst [vmem:[%s10368_s27 + $0x18] sm:$0xff] %v6344_v39  ;;  %v6251_v32 = vadd.f32 %v10349_v41, %v6196_v37  ;;  %v6197_v35 = vmul.f32 %v7892_v10, %v10337_v56  ;;  %v6011_v57 = vpop.f32.mrb[207].mxu0  ;;  %v5802_v10 = vmul.f32 %v10253_v49, %v10332_v6 }
 0x52e   : > { %6390 = vst [vmem:[%s10368_s27 + $0x8] sm:$0xff] %v6342_v63  ;;  %v6249_v54 = vadd.f32 %v10349_v41, %v6194_v51  ;;  %v6195_v62 = vmul.f32 %v10337_v56, %v6011_v57 }
 0x52f   : > { %v6299_v11 = vadd.f32 %v6251_v32, %v5852_v52  ;;  %v6252_v48 = vadd.f32 %v10349_v41, %v6197_v35 }
 0x530   : > { %v6297_v0 = vadd.f32 %v6249_v54, %v5850_v18  ;;  %v6250_v3 = vadd.f32 %v10349_v41, %v6195_v62  ;;  %v5856_v18 = vadd.f32 %v10343_v9, %v5801_v12 }
 0x531   : > { %v6347_v39 = vmax.f32 %v6299_v11, 0.0  ;;  %v6300_v37 = vadd.f32 %v6252_v48, %v5853_v33  ;;  %v5854_v33 = vadd.f32 %v10343_v9, %v5799_v16  ;;  %v5857_v48 = vadd.f32 %v10343_v9, %v5802_v10 }
 0x532   : > { %v6345_v63 = vmax.f32 %v6297_v0, 0.0  ;;  %v6298_v27 = vadd.f32 %v6250_v3, %v5851_v60  ;;  %v7895_v51 = vpop.f32.mrb[208].mxu0  ;;  %v5855_v3 = vadd.f32 %v10343_v9, %v5800_v55 }
 0x533   : > { %6395 = vst [vmem:[%s10368_s27 + $0x30] sm:$0xff] %v6347_v39  ;;  %v6348_v13 = vmax.f32 %v6300_v37, 0.0  ;;  %v6200_v52 = vmul.f32 %v7895_v51, %v10337_v56  ;;  %v6024_v32 = vpop.f32.mrb[209].mxu0  ;;  %v5805_v37 = vmul.f32 %v10257_v34, %v10332_v6  ;;  %v5804_v34 = vmul.f32 %v10332_v6, %v10263_v61 }
 0x534   : > { %6393 = vst [vmem:[%s10368_s27 + $0x20] sm:$0xff] %v6345_v63  ;;  %v6346_v35 = vmax.f32 %v6298_v27, 0.0  ;;  %v6198_v57 = vmul.f32 %v10337_v56, %v6024_v32  ;;  %v7896_v46 = vpop.f32.mrb[210].mxu0  ;;  %v5803_v27 = vmul.f32 %v10332_v6, %v10259_v40 }
 0x535   : > { %6396 = vst [vmem:[%s10368_s27 + $0x38] sm:$0xff] %v6348_v13  ;;  %v6255_v54 = vadd.f32 %v10349_v41, %v6200_v52  ;;  %v6201_v49 = vmul.f32 %v7896_v46, %v10337_v56  ;;  %v6027_v62 = vpop.f32.mrb[211].mxu0  ;;  %v5806_v52 = vmul.f32 %v10261_v4, %v10332_v6 }
 0x536   : > { %6394 = vst [vmem:[%s10368_s27 + $0x28] sm:$0xff] %v6346_v35  ;;  %v6253_v11 = vadd.f32 %v10349_v41, %v6198_v57  ;;  %v6199_v38 = vmul.f32 %v10337_v56, %v6027_v62  ;;  %v5858_v62 = vadd.f32 %v10343_v9, %v5803_v27 }
 0x537   : > { %v6303_v60 = vadd.f32 %v6255_v54, %v5856_v18  ;;  %v6256_v0 = vadd.f32 %v10349_v41, %v6201_v49  ;;  %v5860_v18 = vadd.f32 %v10343_v9, %v5805_v37 }
 0x538   : > { %v6301_v12 = vadd.f32 %v6253_v11, %v5854_v33  ;;  %v6254_v39 = vadd.f32 %v10349_v41, %v6199_v38  ;;  %v5861_v11 = vadd.f32 %v10343_v9, %v5806_v52 }
 0x539   : > { %v6351_v16 = vmax.f32 %v6303_v60, 0.0  ;;  %v6304_v63 = vadd.f32 %v6256_v0, %v5857_v48  ;;  %v5859_v60 = vadd.f32 %v10343_v9, %v5804_v34 }
 0x53a   : > { %v6349_v51 = vmax.f32 %v6301_v12, 0.0  ;;  %v6302_v10 = vadd.f32 %v6254_v39, %v5855_v3  ;;  %v7899_v13 = vpop.f32.mrb[212].mxu0  ;;  %v5809_v12 = vmul.f32 %v10265_v24, %v10332_v6  ;;  %v5808_v24 = vmul.f32 %v10332_v6, %v10271_v45 }
 0x53b   : > { %6399 = vst [vmem:[%s10368_s27 + $0x50] sm:$0xff] %v6351_v16  ;;  %v6352_v32 = vmax.f32 %v6304_v63, 0.0  ;;  %v6204_v55 = vmul.f32 %v7899_v13, %v10337_v56  ;;  %v6040_v35 = vpop.f32.mrb[213].mxu0  ;;  %v5807_v16 = vmul.f32 %v10332_v6, %v10267_v31 }
 0x53c   : > { %6397 = vst [vmem:[%s10368_s27 + $0x40] sm:$0xff] %v6349_v51  ;;  %v6350_v57 = vmax.f32 %v6302_v10, 0.0  ;;  %v6202_v46 = vmul.f32 %v10337_v56, %v6040_v35  ;;  %v7900_v40 = vpop.f32.mrb[214].mxu0  ;;  %v5810_v10 = vmul.f32 %v10269_v25, %v10332_v6  ;;  %v5864_v34 = vadd.f32 %v10343_v9, %v5809_v12 }
 0x53d   : > { %6400 = vst [vmem:[%s10368_s27 + $0x58] sm:$0xff] %v6352_v32  ;;  %v6259_v54 = vadd.f32 %v10349_v41, %v6204_v55  ;;  %v6205_v4 = vmul.f32 %v7900_v40, %v10337_v56  ;;  %v6043_v49 = vpop.f32.mrb[215].mxu0  ;;  %v5862_v40 = vadd.f32 %v10343_v9, %v5807_v16 }
 0x53e   : > { %6398 = vst [vmem:[%s10368_s27 + $0x48] sm:$0xff] %v6350_v57  ;;  %v6257_v33 = vadd.f32 %v10349_v41, %v6202_v46  ;;  %v6203_v61 = vmul.f32 %v10337_v56, %v6043_v49 }
 0x53f   : > { %v6307_v38 = vadd.f32 %v6259_v54, %v5860_v18  ;;  %v6260_v48 = vadd.f32 %v10349_v41, %v6205_v4  ;;  %v5865_v54 = vadd.f32 %v10343_v9, %v5810_v10 }
 0x540   : > { %v6305_v0 = vadd.f32 %v6257_v33, %v5858_v62  ;;  %v6258_v3 = vadd.f32 %v10349_v41, %v6203_v61  ;;  %v5863_v62 = vadd.f32 %v10343_v9, %v5808_v24 }
 0x541   : > { %v6355_v39 = vmax.f32 %v6307_v38, 0.0  ;;  %v6308_v37 = vadd.f32 %v6260_v48, %v5861_v11  ;;  %v5813_v11 = vmul.f32 %v10273_v58, %v10332_v6  ;;  %v5812_v58 = vmul.f32 %v10332_v6, %v10279_v44 }
 0x542   : > { %v6353_v63 = vmax.f32 %v6305_v0, 0.0  ;;  %v6306_v27 = vadd.f32 %v6258_v3, %v5859_v60  ;;  %v7903_v51 = vpop.f32.mrb[216].mxu0  ;;  %v5811_v60 = vmul.f32 %v10332_v6, %v10275_v29 }
 0x543   : > { %6403 = vst [vmem:[%s10368_s27 + $0x70] sm:$0xff] %v6355_v39  ;;  %v6356_v13 = vmax.f32 %v6308_v37, 0.0  ;;  %v6208_v52 = vmul.f32 %v7903_v51, %v10337_v56  ;;  %v6056_v32 = vpop.f32.mrb[217].mxu0  ;;  %v5814_v39 = vmul.f32 %v10277_v17, %v10332_v6  ;;  %v5868_v10 = vadd.f32 %v10343_v9, %v5813_v11 }
 0x544   : > { %6401 = vst [vmem:[%s10368_s27 + $0x60] sm:$0xff] %v6353_v63  ;;  %v6354_v55 = vmax.f32 %v6306_v27, 0.0  ;;  %v6206_v35 = vmul.f32 %v10337_v56, %v6056_v32  ;;  %v7904_v31 = vpop.f32.mrb[218].mxu0  ;;  %v5866_v32 = vadd.f32 %v10343_v9, %v5811_v60 }
 0x545   : > { %6404 = vst [vmem:[%s10368_s27 + $0x78] sm:$0xff] %v6356_v13  ;;  %v6263_v57 = vadd.f32 %v10349_v41, %v6208_v52  ;;  %v6209_v25 = vmul.f32 %v7904_v31, %v10337_v56  ;;  %v6059_v46 = vpop.f32.mrb[219].mxu0 }
 0x546   : > { %6402 = vst [vmem:[%s10368_s27 + $0x68] sm:$0xff] %v6354_v55  ;;  %v6261_v18 = vadd.f32 %v10349_v41, %v6206_v35  ;;  %v6207_v45 = vmul.f32 %v10337_v56, %v6059_v46  ;;  %v5869_v55 = vadd.f32 %v10343_v9, %v5814_v39  ;;  %v5817_v46 = vmul.f32 %v10281_v14, %v10332_v6 }
 0x547   : > { %v6311_v4 = vadd.f32 %v6263_v57, %v5864_v34  ;;  %v6264_v49 = vadd.f32 %v10349_v41, %v6209_v25  ;;  %v5867_v34 = vadd.f32 %v10343_v9, %v5812_v58  ;;  %v5816_v14 = vmul.f32 %v10332_v6, %v10287_v2 }
 0x548   : > { %v6309_v33 = vadd.f32 %v6261_v18, %v5862_v40  ;;  %v6262_v61 = vadd.f32 %v10349_v41, %v6207_v45  ;;  %v5815_v45 = vmul.f32 %v10332_v6, %v10283_v43  ;;  %v5872_v60 = vadd.f32 %v10343_v9, %v5817_v46 }
 0x549   : > { %v6359_v38 = vmax.f32 %v6311_v4, 0.0  ;;  %v6312_v48 = vadd.f32 %v6264_v49, %v5865_v54  ;;  %v5871_v58 = vadd.f32 %v10343_v9, %v5816_v14 }
 0x54a   : > { %v6357_v0 = vmax.f32 %v6309_v33, 0.0  ;;  %v6310_v3 = vadd.f32 %v6262_v61, %v5863_v62  ;;  %v7907_v12 = vpop.f32.mrb[220].mxu0  ;;  %v5818_v62 = vmul.f32 %v10285_v23, %v10332_v6 }
 0x54b   : > { %6407 = vst [vmem:[%s10368_s27 + $0x90] sm:$0xff] %v6359_v38  ;;  %v6360_v37 = vmax.f32 %v6312_v48, 0.0  ;;  %v6212_v16 = vmul.f32 %v7907_v12, %v10337_v56  ;;  %v6072_v63 = vpop.f32.mrb[221].mxu0  ;;  %v5870_v12 = vadd.f32 %v10343_v9, %v5815_v45 }
 0x54c   : > { %6405 = vst [vmem:[%s10368_s27 + $0x80] sm:$0xff] %v6357_v0  ;;  %v6358_v27 = vmax.f32 %v6310_v3, 0.0  ;;  %v6210_v51 = vmul.f32 %v10337_v56, %v6072_v63  ;;  %v7908_v29 = vpop.f32.mrb[222].mxu0 }
 0x54d   : > { %6408 = vst [vmem:[%s10368_s27 + $0x98] sm:$0xff] %v6360_v37  ;;  %v6267_v13 = vadd.f32 %v10349_v41, %v6212_v16  ;;  %v6213_v17 = vmul.f32 %v7908_v29, %v10337_v56  ;;  %v6075_v52 = vpop.f32.mrb[223].mxu0  ;;  %v5873_v37 = vadd.f32 %v10343_v9, %v5818_v62  ;;  %v5821_v29 = vmul.f32 %v10289_v50, %v10332_v6 }
 0x54e   : > { %6406 = vst [vmem:[%s10368_s27 + $0x88] sm:$0xff] %v6358_v27  ;;  %v6265_v24 = vadd.f32 %v10349_v41, %v6210_v51  ;;  %v6211_v44 = vmul.f32 %v10337_v56, %v6075_v52  ;;  %v5820_v50 = vmul.f32 %v10332_v6, %v10295_v15 }
 0x54f   : > { %v6315_v35 = vadd.f32 %v6267_v13, %v5868_v10  ;;  %v6268_v31 = vadd.f32 %v10349_v41, %v6213_v17  ;;  %v5819_v17 = vmul.f32 %v10332_v6, %v10291_v21 }
 0x550   : > { %v6313_v57 = vadd.f32 %v6265_v24, %v5866_v32  ;;  %v6266_v25 = vadd.f32 %v10349_v41, %v6211_v44  ;;  %v5822_v44 = vmul.f32 %v10293_v5, %v10332_v6  ;;  %v5875_v62 = vadd.f32 %v10343_v9, %v5820_v50 }
 0x551   : > { %v6363_v40 = vmax.f32 %v6315_v35, 0.0  ;;  %v6316_v18 = vadd.f32 %v6268_v31, %v5869_v55 }
 0x552   : > { %v6361_v54 = vmax.f32 %v6313_v57, 0.0  ;;  %v6314_v4 = vadd.f32 %v6266_v25, %v5867_v34  ;;  %v7911_v49 = vpop.f32.mrb[224].mxu0  ;;  %v5876_v25 = vadd.f32 %v10343_v9, %v5821_v29 }
 0x553   : > { %6411 = vst [vmem:[%s10368_s27 + $0xb0] sm:$0xff] %v6363_v40  ;;  %v6364_v33 = vmax.f32 %v6316_v18, 0.0  ;;  %v6216_v61 = vmul.f32 %v7911_v49, %v10337_v56  ;;  %v6088_v11 = vpop.f32.mrb[225].mxu0  ;;  %v5874_v18 = vadd.f32 %v10343_v9, %v5819_v17 }
 0x554   : > { %6409 = vst [vmem:[%s10368_s27 + $0xa0] sm:$0xff] %v6361_v54  ;;  %v6362_v38 = vmax.f32 %v6314_v4, 0.0  ;;  %v6214_v48 = vmul.f32 %v10337_v56, %v6088_v11  ;;  %v7912_v43 = vpop.f32.mrb[226].mxu0  ;;  %v5877_v54 = vadd.f32 %v10343_v9, %v5822_v44  ;;  %v5825_v11 = vmul.f32 %v10297_v1, %v10332_v6 }
 0x555   : > { %6412 = vst [vmem:[%s10368_s27 + $0xb8] sm:$0xff] %v6364_v33  ;;  %v6271_v0 = vadd.f32 %v10349_v41, %v6216_v61  ;;  %v6217_v23 = vmul.f32 %v7912_v43, %v10337_v56  ;;  %v6091_v3 = vpop.f32.mrb[227].mxu0  ;;  %v5824_v1 = vmul.f32 %v10332_v6, %v10303_v20 }
 0x556   : > { %6410 = vst [vmem:[%s10368_s27 + $0xa8] sm:$0xff] %v6362_v38  ;;  %v6269_v39 = vadd.f32 %v10349_v41, %v6214_v48  ;;  %v6215_v2 = vmul.f32 %v10337_v56, %v6091_v3  ;;  %v5823_v48 = vmul.f32 %v10332_v6, %v10299_v36 }
 0x557   : > { %v6319_v16 = vadd.f32 %v6271_v0, %v5872_v60  ;;  %v6272_v63 = vadd.f32 %v10349_v41, %v6217_v23  ;;  %v5826_v23 = vmul.f32 %v10301_v53, %v10332_v6  ;;  %v5879_v17 = vadd.f32 %v10343_v9, %v5824_v1 }
 0x558   : > { %v6317_v27 = vadd.f32 %v6269_v39, %v5870_v12  ;;  %v6270_v51 = vadd.f32 %v10349_v41, %v6215_v2 }
 0x559   : > { %v6367_v10 = vmax.f32 %v6319_v16, 0.0  ;;  %v6320_v13 = vadd.f32 %v6272_v63, %v5873_v37  ;;  %v5880_v16 = vadd.f32 %v10343_v9, %v5825_v11  ;;  %v5881_v29 = vadd.f32 %v10343_v9, %v5826_v23 }
 0x55a   : > { %v6365_v52 = vmax.f32 %v6317_v27, 0.0  ;;  %v6318_v32 = vadd.f32 %v6270_v51, %v5871_v58  ;;  %v7915_v24 = vpop.f32.mrb[228].mxu0  ;;  %v5878_v27 = vadd.f32 %v10343_v9, %v5823_v48 }
 0x55b   : > { %6415 = vst [vmem:[%s10368_s27 + $0xd0] sm:$0xff] %v6367_v10  ;;  %v6368_v55 = vmax.f32 %v6320_v13, 0.0  ;;  %v6220_v35 = vmul.f32 %v7915_v24, %v10337_v56  ;;  %v6104_v31 = vpop.f32.mrb[229].mxu0  ;;  %v5829_v24 = vmul.f32 %v10305_v22, %v10332_v6  ;;  %v5828_v22 = vmul.f32 %v10332_v6, %v10311_v42 }
 0x55c   : > { %6413 = vst [vmem:[%s10368_s27 + $0xc0] sm:$0xff] %v6365_v52  ;;  %v6366_v34 = vmax.f32 %v6318_v32, 0.0  ;;  %v6218_v57 = vmul.f32 %v10337_v56, %v6104_v31  ;;  %v7916_v21 = vpop.f32.mrb[230].mxu0 }
 0x55d   : > { %6416 = vst [vmem:[%s10368_s27 + $0xd8] sm:$0xff] %v6368_v55  ;;  %v6275_v46 = vadd.f32 %v10349_v41, %v6220_v35  ;;  %v6221_v5 = vmul.f32 %v7916_v21, %v10337_v56  ;;  %v6107_v40 = vpop.f32.mrb[231].mxu0  ;;  %v5827_v35 = vmul.f32 %v10332_v6, %v10307_v8 }
 0x55e   : > { %6414 = vst [vmem:[%s10368_s27 + $0xc8] sm:$0xff] %v6366_v34  ;;  %v6273_v45 = vadd.f32 %v10349_v41, %v6218_v57  ;;  %v6219_v15 = vmul.f32 %v10337_v56, %v6107_v40  ;;  %v5830_v57 = vmul.f32 %v10309_v28, %v10332_v6 }
 0x55f   : > { %v6323_v4 = vadd.f32 %v6275_v46, %v5876_v25  ;;  %v6276_v49 = vadd.f32 %v10349_v41, %v6221_v5 }
 0x560   : > { %v6321_v33 = vadd.f32 %v6273_v45, %v5874_v18  ;;  %v6274_v61 = vadd.f32 %v10349_v41, %v6219_v15  ;;  %v5884_v18 = vadd.f32 %v10343_v9, %v5829_v24 }
 0x561   : > { %v6371_v14 = vmax.f32 %v6323_v4, 0.0  ;;  %v6324_v38 = vadd.f32 %v6276_v49, %v5877_v54  ;;  %v5882_v54 = vadd.f32 %v10343_v9, %v5827_v35  ;;  %v5885_v49 = vadd.f32 %v10343_v9, %v5830_v57 }
 0x562   : > { %v6369_v43 = vmax.f32 %v6321_v33, 0.0  ;;  %v6322_v60 = vadd.f32 %v6274_v61, %v5875_v62  ;;  %v7919_v0 = vpop.f32.mrb[232].mxu0  ;;  %v5883_v61 = vadd.f32 %v10343_v9, %v5828_v22 }
 0x563   : > { %6419 = vst [vmem:[%s10368_s27 + $0xf0] sm:$0xff] %v6371_v14  ;;  %v6372_v3 = vmax.f32 %v6324_v38, 0.0  ;;  %v6224_v12 = vmul.f32 %v7919_v0, %v10337_v56  ;;  %v6120_v39 = vpop.f32.mrb[233].mxu0  ;;  %v5833_v38 = vmul.f32 %v10313_v7, %v10332_v6  ;;  %v5832_v7 = vmul.f32 %v10332_v6, %v10319_v59 }
 0x564   : > { %6417 = vst [vmem:[%s10368_s27 + $0xe0] sm:$0xff] %v6369_v43  ;;  %v6370_v2 = vmax.f32 %v6322_v60, 0.0  ;;  %v6222_v37 = vmul.f32 %v10337_v56, %v6120_v39  ;;  %v7920_v36 = vpop.f32.mrb[234].mxu0  ;;  %v5831_v60 = vmul.f32 %v10332_v6, %v10315_v26 }
 0x565   : > { %6420 = vst [vmem:[%s10368_s27 + $0xf8] sm:$0xff] %v6372_v3  ;;  %v6279_v63 = vadd.f32 %v10349_v41, %v6224_v12  ;;  %v6225_v53 = vmul.f32 %v7920_v36, %v10337_v56  ;;  %v6123_v58 = vpop.f32.mrb[235].mxu0  ;;  %v5834_v12 = vmul.f32 %v10317_v30, %v10332_v6 }
 0x566   : > { %6418 = vst [vmem:[%s10368_s27 + $0xe8] sm:$0xff] %v6370_v2  ;;  %v6277_v51 = vadd.f32 %v10349_v41, %v6222_v37  ;;  %v6223_v20 = vmul.f32 %v10337_v56, %v6123_v58  ;;  %v5886_v58 = vadd.f32 %v10343_v9, %v5831_v60 }
 0x567   : > { %v6327_v10 = vadd.f32 %v6279_v63, %v5880_v16  ;;  %v6280_v13 = vadd.f32 %v10349_v41, %v6225_v53  ;;  %v5888_v16 = vadd.f32 %v10343_v9, %v5833_v38 }
 0x568   : > { %v6325_v52 = vadd.f32 %v6277_v51, %v5878_v27  ;;  %v6278_v32 = vadd.f32 %v10349_v41, %v6223_v20  ;;  %v5889_v51 = vadd.f32 %v10343_v9, %v5834_v12 }
 0x569   : > { %v6375_v44 = vmax.f32 %v6327_v10, 0.0  ;;  %v6328_v55 = vadd.f32 %v6280_v13, %v5881_v29  ;;  %v5887_v10 = vadd.f32 %v10343_v9, %v5832_v7 }
 0x56a   : > { %v6373_v31 = vmax.f32 %v6325_v52, 0.0  ;;  %v6326_v50 = vadd.f32 %v6278_v32, %v5879_v17  ;;  %v7923_v34 = vpop.f32.mrb[236].mxu0  ;;  %v5837_v52 = vmul.f32 %v10321_v19, %v10332_v6 }
 0x56b   : > { %6423 = vst [vmem:[%s10368_s27 + $0x110] sm:$0xff] %v6375_v44  ;;  %v6376_v21 = vmax.f32 %v6328_v55, 0.0  ;;  %v6228_v25 = vmul.f32 %v7923_v34, %v10337_v56  ;;  %v6136_v46 = vpop.f32.mrb[237].mxu0  ;;  %v5835_v44 = vmul.f32 %v10332_v6, %v10323_v47 }
 0x56c   : > { %6421 = vst [vmem:[%s10368_s27 + $0x100] sm:$0xff] %v6373_v31  ;;  %v6374_v5 = vmax.f32 %v6326_v50, 0.0  ;;  %v6226_v40 = vmul.f32 %v10337_v56, %v6136_v46  ;;  %v7924_v8 = vpop.f32.mrb[238].mxu0  ;;  %v10876_v50 = vld [vmem:[#allocation39_spill] sm:$0xff]  ;;  %v10877_v46 = vld [vmem:[#allocation4_spill] sm:$0xff] }
 0x56d   : > { %6424 = vst [vmem:[%s10368_s27 + $0x118] sm:$0xff] %v6376_v21  ;;  %v6283_v45 = vadd.f32 %v10349_v41, %v6228_v25  ;;  %v6229_v28 = vmul.f32 %v7924_v8, %v10337_v56  ;;  %v6139_v15 = vpop.f32.mrb[239].mxu0  ;;  %v5838_v34 = vmul.f32 %v10876_v50, %v10332_v6  ;;  %v5836_v19 = vmul.f32 %v10332_v6, %v10877_v46 }
 0x56e   : > { %6422 = vst [vmem:[%s10368_s27 + $0x108] sm:$0xff] %v6374_v5  ;;  %v6281_v4 = vadd.f32 %v10349_v41, %v6226_v40  ;;  %v6227_v42 = vmul.f32 %v10337_v56, %v6139_v15  ;;  %v5892_v40 = vadd.f32 %v10343_v9, %v5837_v52 }
 0x56f   : > { %v6331_v62 = vadd.f32 %v6283_v45, %v5884_v18  ;;  %v6284_v33 = vadd.f32 %v10349_v41, %v6229_v28  ;;  %v5890_v28 = vadd.f32 %v10343_v9, %v5835_v44 }
 0x570   : > { %v6329_v11 = vadd.f32 %v6281_v4, %v5882_v54  ;;  %v6282_v14 = vadd.f32 %v10349_v41, %v6227_v42  ;;  %v5893_v54 = vadd.f32 %v10343_v9, %v5838_v34 }
 0x571   : > { %v6379_v48 = vmax.f32 %v6331_v62, 0.0  ;;  %v6332_v43 = vadd.f32 %v6284_v33, %v5885_v49  ;;  %v5891_v49 = vadd.f32 %v10343_v9, %v5836_v19 }
 0x572   : > { %v6377_v0 = vmax.f32 %v6329_v11, 0.0  ;;  %v6330_v23 = vadd.f32 %v6282_v14, %v5883_v61  ;;  %v7927_v3 = vpop.f32.mrb[240].mxu0 }
 0x573   : > { %6427 = vst [vmem:[%s10368_s27 + $0x130] sm:$0xff] %v6379_v48  ;;  %v6380_v39 = vmax.f32 %v6332_v43, 0.0  ;;  %v6232_v1 = vmul.f32 %v7927_v3, %v10337_v56  ;;  %v6152_v2 = vpop.f32.mrb[241].mxu0 }
 0x574   : > { %6425 = vst [vmem:[%s10368_s27 + $0x120] sm:$0xff] %v6377_v0  ;;  %v6378_v37 = vmax.f32 %v6330_v23, 0.0  ;;  %v6230_v36 = vmul.f32 %v10337_v56, %v6152_v2  ;;  %v7928_v26 = vpop.f32.mrb[242].mxu0 }
 0x575   : > { %6428 = vst [vmem:[%s10368_s27 + $0x138] sm:$0xff] %v6380_v39  ;;  %v6287_v63 = vadd.f32 %v10349_v41, %v6232_v1  ;;  %v6233_v30 = vmul.f32 %v7928_v26, %v10337_v56  ;;  %v6155_v53 = vpop.f32.mrb[243].mxu0 }
 0x576   : > { %6426 = vst [vmem:[%s10368_s27 + $0x128] sm:$0xff] %v6378_v37  ;;  %v6285_v27 = vadd.f32 %v10349_v41, %v6230_v36  ;;  %v6231_v59 = vmul.f32 %v10337_v56, %v6155_v53 }
 0x577   : > { %v6335_v20 = vadd.f32 %v6287_v63, %v5888_v16  ;;  %v6288_v29 = vadd.f32 %v10349_v41, %v6233_v30 }
 0x578   : > { %v6333_v13 = vadd.f32 %v6285_v27, %v5886_v58  ;;  %v6286_v17 = vadd.f32 %v10349_v41, %v6231_v59 }
 0x579   : > { %v6383_v32 = vmax.f32 %v6335_v20, 0.0  ;;  %v6336_v24 = vadd.f32 %v6288_v29, %v5889_v51 }
 0x57a   : > { %v6381_v55 = vmax.f32 %v6333_v13, 0.0  ;;  %v6334_v35 = vadd.f32 %v6286_v17, %v5887_v10  ;;  %v7931_v31 = vpop.f32.mrb[244].mxu0 }
 0x57b   : > { %6431 = vst [vmem:[%s10368_s27 + $0x150] sm:$0xff] %v6383_v32  ;;  %v6384_v57 = vmax.f32 %v6336_v24, 0.0  ;;  %v6236_v21 = vmul.f32 %v7931_v31, %v10337_v56  ;;  %v6168_v25 = vpop.f32.mrb[245].mxu0 }
 0x57c   : > { %6429 = vst [vmem:[%s10368_s27 + $0x140] sm:$0xff] %v6381_v55  ;;  %v6382_v22 = vmax.f32 %v6334_v35, 0.0  ;;  %v6234_v5 = vmul.f32 %v10337_v56, %v6168_v25  ;;  %v7932_v47 = vpop.f32.mrb[246].mxu0 }
 0x57d   : > { %6432 = vst [vmem:[%s10368_s27 + $0x158] sm:$0xff] %v6384_v57  ;;  %v6291_v8 = vadd.f32 %v10349_v41, %v6236_v21  ;;  %v6237_v18 = vmul.f32 %v7932_v47, %v10337_v56  ;;  %v6171_v45 = vpop.f32.mrb[247].mxu0 }
 0x57e   : > { %6430 = vst [vmem:[%s10368_s27 + $0x148] sm:$0xff] %v6382_v22  ;;  %v6289_v6 = vadd.f32 %v10349_v41, %v6234_v5  ;;  %v6235_v15 = vmul.f32 %v10337_v56, %v6171_v45 }
 0x57f   : > { %v6339_v4 = vadd.f32 %v6291_v8, %v5892_v40  ;;  %v6292_v42 = vadd.f32 %v10349_v41, %v6237_v18 }
 0x580   : > { %v6337_v62 = vadd.f32 %v6289_v6, %v5890_v28  ;;  %v6290_v33 = vadd.f32 %v10349_v41, %v6235_v15 }
 0x581   : > { %v6387_v61 = vmax.f32 %v6339_v4, 0.0  ;;  %v6340_v11 = vadd.f32 %v6292_v42, %v5893_v54 }
 0x582   : > { %v6385_v14 = vmax.f32 %v6337_v62, 0.0  ;;  %v6338_v38 = vadd.f32 %v6290_v33, %v5891_v49 }
 0x583   : > { %6435 = vst [vmem:[%s10368_s27 + $0x170] sm:$0xff] %v6387_v61  ;;  %v6388_v48 = vmax.f32 %v6340_v11, 0.0 }
 0x584   : > { %6433 = vst [vmem:[%s10368_s27 + $0x160] sm:$0xff] %v6385_v14  ;;  %v6386_v43 = vmax.f32 %v6338_v38, 0.0 }
 0x585   : > { %6436 = vst [vmem:[%s10368_s27 + $0x178] sm:$0xff] %v6388_v48 }
 0x586   : > { %6434 = vst [vmem:[%s10368_s27 + $0x168] sm:$0xff] %v6386_v43 }
 0x587 PF: > { %s24_s29 = sadd.s32 1, %s8529_s29  }
 0x588   : > { %p21_p4 = scmp.ge.s32.totalorder %s24_s29, 4  }
 0x58a   :  { %23 = sbr.rel (!%p21_p4) target bundleno = 1 (0x1), region = 114 }

</bundles_post_ra>
